<compile_context>
chip_gen: v6e
topology: v6e:2x2x1
jax: 0.10.0
libtpu: 0.0.40
codegen_flags: <defaults>
</compile_context>

<pallas_src>
import functools

import jax
import jax.numpy as jnp
from jax import lax
from jax.experimental import pallas as pl
from jax.experimental.pallas import tpu as pltpu


def _dup_cols(n, dtype):
    """(n, 2n) 0/1 matrix M with M[j, 2j] = M[j, 2j+1] = 1 (right-multiply => repeat columns 2x)."""
    rows = jnp.arange(n, dtype=jnp.int32)[:, None]
    cols = jnp.arange(2 * n, dtype=jnp.int32)[None, :]
    return (cols // 2 == rows).astype(dtype)


def _choose_col_tile(W):
    """Column tile: full W when small / not 128-divisible, else 128-256 (block-diagonal dup_w)."""
    if W > 256 and W % 256 == 0:
        return 256
    if W > 128 and W % 128 == 0:
        return 128
    return W


def _choose_sub_tile(TR):
    """In-kernel row sub-tile SR: divides TR, <= 128, multiple of 8 when possible."""
    if TR <= 128:
        return TR
    best = 0
    for s in range(8, 129, 8):
        if TR % s == 0:
            best = s
    if best:
        return best
    for s in range(128, 0, -1):          # TR not a multiple of 8 (only when TR == M fallback)
        if TR % s == 0:
            return s
    return TR


def _step_vmem_bytes(TR, TW, itemsize):
    """Per-grid-step VMEM estimate: double-buffered data tiles + constants + in-kernel temps."""
    SR = _choose_sub_tile(TR)
    data = 2 * TR * TW + 2 * (2 * TR) * (2 * TW)          # x tile + out tile, double buffered
    dups = 2 * (2 * SR) * SR + 2 * TW * (2 * TW)          # dup_h + dup_w, double buffered
    temps = (2 * SR) * TW + (2 * SR) * (2 * TW) + SR * TW  # matmul intermediates
    return itemsize * (data + dups + temps)


def _choose_row_tile(M, TW, itemsize, budget_bytes=16 << 20, cap=512):
    """Largest multiple-of-8 divisor of M, capped at `cap` rows and at the VMEM budget."""
    cands = [t for t in range(8, min(M, cap) + 1, 8) if M % t == 0]
    if not cands:
        return M                                   # full array dim: always a legal block shape
    for tr in reversed(cands):
        if _step_vmem_bytes(tr, TW, itemsize) <= budget_bytes:
            return tr
    return cands[0]


def _upsample2x_kernel(x_ref, dup_h_ref, dup_w_ref, o_ref, *,
                       SR, n_sub, row_first, precision, compute_dtype):
    # x_ref: (TR, TW)   dup_h_ref: (2*SR, SR)   dup_w_ref: (TW, 2*TW)   o_ref: (2*TR, 2*TW)
    dup_h = dup_h_ref[...]
    dup_w = dup_w_ref[...]
    for r in range(n_sub):                          # static unroll, TR // SR <= 4 iterations
        v = x_ref[pl.ds(r * SR, SR), :].astype(compute_dtype)          # (SR, TW)
        if row_first:                               # cheaper when TW <= SR
            t = jnp.dot(dup_h, v, precision=precision,
                        preferred_element_type=jnp.float32)            # (2SR, TW): rows doubled
            out = jnp.dot(t.astype(compute_dtype), dup_w, precision=precision,
                          preferred_element_type=jnp.float32)          # (2SR, 2TW): cols doubled
        else:                                       # cheaper when TW > SR
            t = jnp.dot(v, dup_w, precision=precision,
                        preferred_element_type=jnp.float32)            # (SR, 2TW): cols doubled
            out = jnp.dot(dup_h, t.astype(compute_dtype), precision=precision,
                          preferred_element_type=jnp.float32)          # (2SR, 2TW): rows doubled
        o_ref[pl.ds(2 * r * SR, 2 * SR), :] = out.astype(o_ref.dtype)


def upsample_nearest2x(x):
    """Nearest-neighbour upsample of the last two spatial dims by 2x.

    4-D input (N, C, H, W)    -> (N, C, 2H, 2W)        (dims=2 branch, the default)
    5-D input (N, C, D, H, W) -> (N, C, D, 2H, 2W)     (dims=3 branch: depth unchanged)
    """
    if x.ndim == 4:
        N, C, H, W = x.shape
        lead = N * C
        out_final = (N, C, 2 * H, 2 * W)
    elif x.ndim == 5:
        N, C, D, H, W = x.shape
        lead = N * C * D
        out_final = (N, C, D, 2 * H, 2 * W)
    else:
        raise ValueError(f"expected 4-D (NCHW) or 5-D (NCDHW) input, got shape {x.shape}")

    # Fold all leading dims + H into one row axis (leading-dim reshape: layout-free, no copy).
    M = lead * H
    x2 = x.reshape(M, W)

    # bf16 stays bf16 (exact single-pass replication); everything else computes exactly in f32.
    compute_dtype = jnp.bfloat16 if x.dtype == jnp.bfloat16 else jnp.float32
    precision = (lax.Precision.DEFAULT if compute_dtype == jnp.bfloat16
                 else lax.Precision.HIGHEST)

    itemsize = jnp.dtype(x.dtype).itemsize
    TW = _choose_col_tile(W)
    TR = _choose_row_tile(M, TW, max(itemsize, 4))
    SR = _choose_sub_tile(TR)
    n_sub = TR // SR
    row_first = TW <= SR

    dup_w = _dup_cols(TW, compute_dtype)          # (TW, 2*TW): repeat every column twice
    dup_h = _dup_cols(SR, compute_dtype).T        # (2*SR, SR): repeat every row twice

    # Advisory cost estimate: MXU FLOPs + (read X, write 4X) bytes.
    flops_per_out = (SR + 2 * TW) if row_first else (TW + 2 * SR)
    cost = pl.CostEstimate(
        flops=int(flops_per_out) * 4 * int(M) * int(W),
        transcendentals=0,
        bytes_accessed=int(5 * M * W * itemsize
                           + (dup_w.size + dup_h.size) * jnp.dtype(compute_dtype).itemsize),
    )

    kernel = functools.partial(
        _upsample2x_kernel, SR=SR, n_sub=n_sub, row_first=row_first,
        precision=precision, compute_dtype=compute_dtype)

    grid_spec = pltpu.PrefetchScalarGridSpec(
        num_scalar_prefetch=0,
        grid=(M // TR, W // TW),
        in_specs=[
            pl.BlockSpec((TR, TW), lambda r, w: (r, w)),
            pl.BlockSpec((2 * SR, SR), lambda r, w: (0, 0)),   # constant: never re-fetched
            pl.BlockSpec((TW, 2 * TW), lambda r, w: (0, 0)),   # constant: never re-fetched
        ],
        out_specs=pl.BlockSpec((2 * TR, 2 * TW), lambda r, w: (r, w)),
    )

    out2 = pl.pallas_call(
        kernel,
        out_shape=jax.ShapeDtypeStruct((2 * M, 2 * W), x.dtype),
        grid_spec=grid_spec,
        compiler_params=pltpu.CompilerParams(
            dimension_semantics=("parallel", "parallel")),
        cost_estimate=cost,
    )(x2, dup_h, dup_w)

    # (2M, 2W) == (lead*2H, 2W): leading-dim reshape back to the final layout (no copy).
    return out2.reshape(out_final)


if __name__ == "__main__":
    key = jax.random.PRNGKey(0)
    k1, k2, k3 = jax.random.split(key, 3)

    # dims=2 (default) branch: NCHW input, both spatial dims doubled.
    x = jax.random.normal(k1, (2, 4, 16, 16), jnp.float32)
    out = jax.block_until_ready(upsample_nearest2x(x))
    ref = jnp.repeat(jnp.repeat(x, 2, axis=2), 2, axis=3)
    assert out.shape == (2, 4, 32, 32)
    err = float(jnp.max(jnp.abs(out - ref)))
    assert err <= 1e-5, f"mismatch vs nearest-neighbour reference: {err}"

    # dims=3 branch: NCDHW input, only the inner two dims doubled (depth untouched).
    x5 = jax.random.normal(k2, (1, 2, 3, 8, 8), jnp.float32)
    out5 = jax.block_until_ready(upsample_nearest2x(x5))
    ref5 = jnp.repeat(jnp.repeat(x5, 2, axis=3), 2, axis=4)
    assert out5.shape == (1, 2, 3, 16, 16)
    err5 = float(jnp.max(jnp.abs(out5 - ref5)))
    assert err5 <= 1e-5, f"mismatch (dims=3 branch): {err5}"

    # bf16 pass-through path (single-pass MXU, exact replication).
    xb = jax.random.normal(k3, (2, 4, 16, 16), jnp.float32).astype(jnp.bfloat16)
    outb = jax.block_until_ready(upsample_nearest2x(xb))
    refb = jnp.repeat(jnp.repeat(xb, 2, axis=2), 2, axis=3)
    errb = float(jnp.max(jnp.abs(outb.astype(jnp.float32) - refb.astype(jnp.float32))))
    assert outb.dtype == jnp.bfloat16 and errb == 0.0, f"bf16 mismatch: {errb}"

    print("KERNEL_OK")
</pallas_src>

<mosaic_0001>
module attributes {stable_mosaic.version = 11 : i64} {
  func.func @_upsample2x_kernel(%arg0: i32, %arg1: i32, %arg2: memref<128x16xf32, #tpu.memory_space<vmem>>, %arg3: memref<256x128xf32, #tpu.memory_space<vmem>>, %arg4: memref<16x32xf32, #tpu.memory_space<vmem>>, %arg5: memref<256x32xf32, #tpu.memory_space<vmem>>) attributes {dimension_semantics = [#tpu.dimension_semantics<parallel>, #tpu.dimension_semantics<parallel>], iteration_bounds = array<i64: 1, 1>, scalar_prefetch = 0 : i64, scratch_operands = 0 : i64, tpu.core_type = #tpu.core_type<tc>, window_params = [{transform_indices = @transform_0, window_bounds = array<i64: 128, 16>}, {pipeline_mode = #tpu.pipeline_mode<synchronous>, transform_indices = @transform_1, window_bounds = array<i64: 256, 128>}, {pipeline_mode = #tpu.pipeline_mode<synchronous>, transform_indices = @transform_2, window_bounds = array<i64: 16, 32>}, {transform_indices = @transform_3, window_bounds = array<i64: 256, 32>}]} {
    %c0 = arith.constant 0 : index
    %c0_0 = arith.constant 0 : index
    %0 = vector.load %arg3[%c0, %c0_0] : memref<256x128xf32, #tpu.memory_space<vmem>>, vector<256x128xf32>
    %c0_1 = arith.constant 0 : index
    %c0_2 = arith.constant 0 : index
    %1 = vector.load %arg4[%c0_1, %c0_2] : memref<16x32xf32, #tpu.memory_space<vmem>>, vector<16x32xf32>
    %c0_3 = arith.constant 0 : index
    %c0_4 = arith.constant 0 : index
    %2 = vector.load %arg2[%c0_3, %c0_4] : memref<128x16xf32, #tpu.memory_space<vmem>>, vector<128x16xf32>
    %cst = arith.constant dense<0.000000e+00> : vector<256x16xf32>
    %3 = tpu.matmul %0, %2, %cst {dimension_numbers = #tpu.dot_dimension_numbers<[1], [0], [0], [1], [0, 0, 1, 1], [], []>, precision = #tpu.contract_precision<fp32>} : vector<256x128xf32>, vector<128x16xf32>, vector<256x16xf32> -> vector<256x16xf32>
    %cst_5 = arith.constant dense<0.000000e+00> : vector<256x32xf32>
    %4 = tpu.matmul %3, %1, %cst_5 {dimension_numbers = #tpu.dot_dimension_numbers<[1], [0], [0], [1], [0, 0, 1, 1], [], []>, precision = #tpu.contract_precision<fp32>} : vector<256x16xf32>, vector<16x32xf32>, vector<256x32xf32> -> vector<256x32xf32>
    %c0_6 = arith.constant 0 : index
    %c0_7 = arith.constant 0 : index
    %5 = vector.load %arg5[%c0_6, %c0_7] : memref<256x32xf32, #tpu.memory_space<vmem>>, vector<256x32xf32>
    tpu.vector_store %arg5[%c0_6, %c0_7], %4 {strides = array<i32>} : memref<256x32xf32, #tpu.memory_space<vmem>>, vector<256x32xf32>,
    return
  }
  func.func @transform_0(%arg0: i32, %arg1: i32) -> (i32, i32) {
    %c0_i32 = arith.constant 0 : i32
    return %arg0, %arg1 : i32, i32
  }
  func.func @transform_1(%arg0: i32, %arg1: i32) -> (i32, i32) {
    %c0_i32 = arith.constant 0 : i32
    %c0_i32_0 = arith.constant 0 : i32
    %c0_i32_1 = arith.constant 0 : i32
    return %c0_i32, %c0_i32_0 : i32, i32
  }
  func.func @transform_2(%arg0: i32, %arg1: i32) -> (i32, i32) {
    %c0_i32 = arith.constant 0 : i32
    %c0_i32_0 = arith.constant 0 : i32
    %c0_i32_1 = arith.constant 0 : i32
    return %c0_i32, %c0_i32_0 : i32, i32
  }
  func.func @transform_3(%arg0: i32, %arg1: i32) -> (i32, i32) {
    %c0_i32 = arith.constant 0 : i32
    return %arg0, %arg1 : i32, i32
  }
}

</mosaic_0001>

<bundles_post_ra>
// kernel: tpu_custom_call.1
= control target key start
LH: loop header
LB: loop body
LE: loop exit
PB: predicated region body
PF: predicated region fallthrough
CT: control target
= control target key end

     0   :  { %8 = vsyncpa [#allocation3], 0  ;;  %s5288_s12 = smov [#allocation2]   ;;  %s7559_s0 = inlined_call_operand.vmem [shape: f32[128,16], index: 0, kind: input, shape index: {}]   ;;  %s7560_s1 = inlined_call_operand.hbm [shape: f32[256,128], index: 1, kind: input, shape index: {}]   ;;  %s7561_s2 = inlined_call_operand.vmem [shape: f32[16,32], index: 2, kind: input, shape index: {}]   ;;  %s7562_s3 = inlined_call_operand.vmem [shape: f32[256,32], index: 3, kind: output, shape index: {}]  }
   0x1   :  { %s16_s13 = sshll.u32 %s5288_s12, 4  ;;  %s17_s13 = int_to_ptr.vmem [resolvable:$true] %s16_s13 }
   0x2   :  { %s5274_s14 = scalar_lea.vmem %s17_s13, 4096  ;;  %p5279_p1 = scmp.lt.s32.totalorder %s17_s13, %s17_s13 }
   0x3   :  { %p5275_p0 = scmp.ne.s32.totalorder %s17_s13, %s5274_s14  ;;  %p5280_p2 = scmp.lt.s32.totalorder %s5274_s14, %s5274_s14 }
   0x5   :  { %p5281_p3 = por %p5280_p2, %p5279_p1 }
   0x7   :  { %p5282_p4 = pnand %p5281_p3, %p5275_p0 }
   0x9   :  { %5285 = shalt.err (!%p5282_p4)
}
   0xa   :  { %s5289_s15 = smov 128   ;;  %s5290_s16 = smov 8  }
   0xb   :  { %22 = dma.hbm_to_vmem [thread:$0]  %s7560_s1, 4096, %s17_s13, [#allocation3], %s5289_s15, %s5289_s15, %s5290_s16  }
   0xc   :  { %5286 = dma.done.wait [#allocation3], 4096  }
   0xd   :  { %5287 = vsyncadd [#allocation3], 4294963200  ;;  %v77_v0 = vld [vmem:[%s7559_s0 + $0x78] sm:$0xff]  ;;  %v76_v1 = vld [vmem:[%s7559_s0 + $0x70] sm:$0xff]  ;;  %vm2052_vm0 = vcmask 130048   ;;  %vm3941_vm1 = vcmask 261120  }
   0xe   :  { %v75_v2 = vld [vmem:[%s7559_s0 + $0x68] sm:$0xff]  ;;  %v5323_v3 = vand.u32 4294901760, %v77_v0  ;;  %v5325_v4 = vand.u32 4294901760, %v76_v1  ;;  %v74_v6 = vld [vmem:[%s7559_s0 + $0x60] sm:$0xff]  ;;  %v73_v7 = vld [vmem:[%s7559_s0 + $0x58] sm:$0xff] }
   0xf   :  { %v5327_v5 = vand.u32 4294901760, %v75_v2  ;;  %v72_v8 = vld [vmem:[%s7559_s0 + $0x50] sm:$0xff]  ;;  %v5338_v9 = vand.u32 4294901760, %v74_v6  ;;  %v5340_v10 = vand.u32 4294901760, %v73_v7  ;;  %v71_v12 = vld [vmem:[%s7559_s0 + $0x48] sm:$0xff]  ;;  %v70_v13 = vld [vmem:[%s7559_s0 + $0x40] sm:$0xff] }
  0x10   :  { %v5342_v11 = vand.u32 4294901760, %v72_v8  ;;  %4471 = vmatprep.subr.mxu0 %v5323_v3  ;;  %v5352_v14 = vsub.f32 %v77_v0, %v5323_v3  ;;  %v5355_v15 = vsub.f32 %v76_v1, %v5325_v4  ;;  %v5357_v16 = vand.u32 4294901760, %v71_v12  ;;  %v69_v18 = vld [vmem:[%s7559_s0 + $0x38] sm:$0xff]  ;;  %v68_v25 = vld [vmem:[%s7559_s0 + $0x30] sm:$0xff]  ;;  %v67_v35 = vld [vmem:[%s7559_s0 + $0x28] sm:$0xff] }
  0x11   :  { %v5360_v17 = vsub.f32 %v75_v2, %v5327_v5  ;;  %4472 = vmatpush3.msra.mxu0 %v5323_v3  ;;  %v5367_v19 = vsub.f32 %v74_v6, %v5338_v9  ;;  %v5370_v20 = vsub.f32 %v73_v7, %v5340_v10  ;;  %v5382_v24 = vand.u32 4294901760, %v70_v13  ;;  %v66_v40 = vld [vmem:[%s7559_s0 + $0x20] sm:$0xff]  ;;  %v29_v49 = vld [vmem:[#allocation2 + $0x8] sm:$0xff]  ;;  %v65_v53 = vld [vmem:[%s7559_s0 + $0x18] sm:$0xff] }
  0x12   :  { %4473 = vmatprep.subr.mxu0 %v5325_v4  ;;  %v5374_v21 = vand.u32 4294901760, %v5352_v14  ;;  %v5377_v22 = vand.u32 4294901760, %v5355_v15  ;;  %v5391_v27 = vand.u32 4294901760, %v69_v18  ;;  %v5397_v29 = vsub.f32 %v72_v8, %v5342_v11  ;;  %v28_v47 = vld [vmem:[#allocation2] sm:$0xff]  ;;  %v64_v59 = vld [vmem:[%s7559_s0 + $0x10] sm:$0xff]  ;;  %v63_v6 = vld [vmem:[%s7559_s0 + $0x8] sm:$0xff] }
  0x13   :  { %v5380_v23 = vand.u32 4294901760, %v5360_v17  ;;  %4474 = vmatpush3.msra.mxu0 %v5325_v4  ;;  %v5389_v26 = vand.u32 4294901760, %v5367_v19  ;;  %v5394_v28 = vand.u32 4294901760, %v5370_v20  ;;  %v5407_v33 = vsub.f32 %v71_v12, %v5357_v16  ;;  %v30_v63 = vld [vmem:[#allocation2 + $0x10] sm:$0xff]  ;;  %v31_v8 = vld [vmem:[#allocation2 + $0x18] sm:$0xff] }
  0x14   :  { %7726 = vst [vmem:[#allocation5_spill] sm:$0xff] %v5374_v21  ;;  %7727 = vst [vmem:[#allocation6_spill] sm:$0xff] %v5377_v22  ;;  %4475 = vmatprep.subr.mxu0 %v5327_v5  ;;  %v483_v30 = vsub.f32 %v5352_v14, %v5374_v21  ;;  %v490_v31 = vsub.f32 %v5355_v15, %v5377_v22  ;;  %v5410_v34 = vand.u32 4294901760, %v68_v25  ;;  %v5419_v39 = vand.u32 4294901760, %v5397_v29  ;;  %v37_v21 = vld [vmem:[#allocation2 + $0x48] sm:$0xff] }
  0x15   :  { %7728 = vst [vmem:[#allocation7_spill] sm:$0xff] %v5380_v23  ;;  %7729 = vst [vmem:[#allocation8_spill] sm:$0xff] %v5389_v26  ;;  %v497_v32 = vsub.f32 %v5360_v17, %v5380_v23  ;;  %4476 = vmatpush3.msra.mxu0 %v5327_v5  ;;  %v504_v38 = vsub.f32 %v5367_v19, %v5389_v26  ;;  %v5426_v41 = vand.u32 4294901760, %v5407_v33  ;;  %v5434_v45 = vand.u32 4294901760, %v67_v35 }
  0x16   :  { %7730 = vst [vmem:[#allocation9_spill] sm:$0xff] %v5394_v28  ;;  %4477 = vmatprep.subr.mxu0 %v5338_v9  ;;  %v484_v36 = vand.u32 4294901760, %v483_v30  ;;  %v491_v37 = vand.u32 4294901760, %v490_v31  ;;  %7731 = vst [vmem:[#allocation10_spill] sm:$0xff] %v5419_v39  ;;  %v5429_v42 = vsub.f32 %v70_v13, %v5382_v24  ;;  %v511_v44 = vsub.f32 %v5370_v20, %v5394_v28  ;;  %v62_v31 = vld [vmem:[%s7559_s0] sm:$0xff] }
  0x17   :  { %4478 = vmatpush3.msra.mxu0 %v5338_v9  ;;  %7732 = vst [vmem:[#allocation11_spill] sm:$0xff] %v5426_v41  ;;  %v498_v43 = vand.u32 4294901760, %v497_v32  ;;  %v5437_v46 = vsub.f32 %v69_v18, %v5391_v27  ;;  %v5440_v48 = vand.u32 4294901760, %v66_v40  ;;  %v505_v50 = vand.u32 4294901760, %v504_v38 }
  0x18   :  { %4479 = vmatprep.subr.mxu0 %v5340_v10  ;;  %4551 = vmatprep.subr.mxu1 %v484_v36  ;;  %v518_v51 = vsub.f32 %v5397_v29, %v5419_v39  ;;  %v5446_v52 = vand.u32 4294901760, %v5429_v42  ;;  %v5452_v54 = vsub.f32 %v68_v25, %v5410_v34  ;;  %v525_v55 = vsub.f32 %v5407_v33, %v5426_v41 }
  0x19   :  { %4480 = vmatpush3.msra.mxu0 %v5340_v10  ;;  %4552 = vmatpush3.msra.mxu1 %v484_v36  ;;  %v5457_v56 = vand.u32 4294901760, %v28_v47  ;;  %v512_v57 = vand.u32 4294901760, %v511_v44  ;;  %v5461_v58 = vand.u32 4294901760, %v5437_v46  ;;  %v5467_v60 = vsub.f32 %v67_v35, %v5434_v45 }
  0x1a   :  { %4481 = vmatprep.subr.mxu0 %v5342_v11  ;;  %4553 = vmatprep.subr.mxu1 %v491_v37  ;;  %7733 = vst [vmem:[#allocation12_spill] sm:$0xff] %v5446_v52  ;;  %v5469_v61 = vand.u32 4294901760, %v29_v49  ;;  %v5472_v62 = vand.u32 4294901760, %v65_v53  ;;  %v519_v0 = vand.u32 4294901760, %v518_v51  ;;  %v532_v1 = vsub.f32 %v5429_v42, %v5446_v52 }
  0x1b   :  { %4482 = vmatpush3.msra.mxu0 %v5342_v11  ;;  %4554 = vmatpush3.msra.mxu1 %v491_v37  ;;  %7734 = vst [vmem:[#allocation13_spill] sm:$0xff] %v5457_v56  ;;  %7735 = vst [vmem:[#allocation14_spill] sm:$0xff] %v5461_v58  ;;  %v5478_v2 = vand.u32 4294901760, %v5452_v54  ;;  %v5484_v7 = vsub.f32 %v66_v40, %v5440_v48  ;;  %v526_v12 = vand.u32 4294901760, %v525_v55  ;;  %v5487_v13 = vand.u32 4294901760, %v64_v59  ;;  %v32_v40 = vld [vmem:[#allocation2 + $0x20] sm:$0xff] }
  0x1c   :  { %4483 = vmatprep.subr.mxu0 %v5357_v16  ;;  %4555 = vmatprep.subr.mxu1 %v498_v43  ;;  %7736 = vst [vmem:[#allocation15_spill] sm:$0xff] %v5469_v61  ;;  %7737 = vst [vmem:[#allocation16_spill] sm:$0xff] %v5472_v62  ;;  %v5490_v18 = vsub.f32 %v28_v47, %v5457_v56  ;;  %v539_v25 = vsub.f32 %v5437_v46, %v5461_v58  ;;  %v5496_v30 = vand.u32 4294901760, %v5467_v60 }
  0x1d   :  { %4484 = vmatpush3.msra.mxu0 %v5357_v16  ;;  %4556 = vmatpush3.msra.mxu1 %v498_v43  ;;  %7738 = vst [vmem:[#allocation17_spill] sm:$0xff] %v5478_v2  ;;  %7739 = vst [vmem:[#allocation18_spill] sm:$0xff] %v5487_v13  ;;  %v5502_v32 = vsub.f32 %v29_v49, %v5469_v61  ;;  %v5504_v35 = vand.u32 4294901760, %v30_v63  ;;  %v5507_v36 = vand.u32 4294901760, %v63_v6  ;;  %v5512_v38 = vand.u32 4294901760, %v31_v8 }
  0x1e   :  { %4485 = vmatprep.subr.mxu0 %v5382_v24  ;;  %4557 = vmatprep.subr.mxu1 %v505_v50  ;;  %7740 = vst [vmem:[#allocation19_spill] sm:$0xff] %v5490_v18  ;;  %7741 = vst [vmem:[#allocation20_spill] sm:$0xff] %v5496_v30  ;;  %v5510_v37 = vsub.f32 %v65_v53, %v5472_v62  ;;  %v533_v43 = vand.u32 4294901760, %v532_v1  ;;  %v546_v44 = vsub.f32 %v5452_v54, %v5478_v2  ;;  %v34_v1 = vld [vmem:[#allocation2 + $0x30] sm:$0xff] }
  0x1f   :  { %4486 = vmatpush3.msra.mxu0 %v5382_v24  ;;  %4558 = vmatpush3.msra.mxu1 %v505_v50  ;;  %7742 = vst [vmem:[#allocation21_spill] sm:$0xff] %v5502_v32  ;;  %7743 = vst [vmem:[#allocation22_spill] sm:$0xff] %v5504_v35  ;;  %v5518_v47 = vand.u32 4294901760, %v5484_v7  ;;  %v5521_v49 = vsub.f32 %v30_v63, %v5504_v35  ;;  %v33_v50 = vld [vmem:[#allocation2 + $0x28] sm:$0xff]  ;;  %v5524_v51 = vand.u32 4294901760, %v62_v31  ;;  %v540_v63 = vand.u32 4294901760, %v539_v25 }
  0x20   :  { %4487 = vmatprep.subr.mxu0 %v5391_v27  ;;  %4559 = vmatprep.subr.mxu1 %v512_v57  ;;  %7744 = vst [vmem:[#allocation23_spill] sm:$0xff] %v5507_v36  ;;  %7745 = vst [vmem:[#allocation24_spill] sm:$0xff] %v5512_v38  ;;  %v5528_v55 = vsub.f32 %v64_v59, %v5487_v13  ;;  %v553_v2 = vsub.f32 %v5467_v60, %v5496_v30  ;;  %v5537_v58 = vand.u32 4294901760, %v32_v40  ;;  %v35_v25 = vld [vmem:[#allocation2 + $0x38] sm:$0xff] }
  0x21   :  { %4488 = vmatpush3.msra.mxu0 %v5391_v27  ;;  %4560 = vmatpush3.msra.mxu1 %v512_v57  ;;  %7746 = vst [vmem:[#allocation25_spill] sm:$0xff] %v5518_v47  ;;  %7747 = vst [vmem:[#allocation26_spill] sm:$0xff] %v5521_v49  ;;  %v5531_v57 = vsub.f32 %v31_v8, %v5512_v38  ;;  %v5541_v59 = vand.u32 4294901760, %v5510_v37  ;;  %v5545_v53 = vsub.f32 %v63_v6, %v5507_v36 }
  0x22   :  { %4489 = vmatprep.subr.mxu0 %v5410_v34  ;;  %4561 = vmatprep.subr.mxu1 %v519_v0  ;;  %7748 = vst [vmem:[#allocation27_spill] sm:$0xff] %v5524_v51  ;;  %7749 = vst [vmem:[#allocation28_spill] sm:$0xff] %v5528_v55  ;;  %v5547_v52 = vand.u32 4294901760, %v33_v50  ;;  %v560_v30 = vsub.f32 %v5484_v7, %v5518_v47  ;;  %v5555_v41 = vand.u32 4294901760, %v34_v1  ;;  %v7757_v6 = vand.u32 4294901760, %v5490_v18  ;;  %v36_v47 = vld [vmem:[#allocation2 + $0x40] sm:$0xff] }
  0x23   :  { %4490 = vmatpush3.msra.mxu0 %v5410_v34  ;;  %4562 = vmatpush3.msra.mxu1 %v519_v0  ;;  %7750 = vst [vmem:[#allocation29_spill] sm:$0xff] %v5531_v57  ;;  %7751 = vst [vmem:[#allocation30_spill] sm:$0xff] %v5537_v58  ;;  %v547_v0 = vand.u32 4294901760, %v546_v44  ;;  %v5562_v39 = vand.u32 4294901760, %v5528_v55  ;;  %v5566_v28 = vsub.f32 %v62_v31, %v5524_v51  ;;  %v7759_v26 = vand.u32 4294901760, %v5502_v32 }
  0x24   :  { %4491 = vmatprep.subr.mxu0 %v5434_v45  ;;  %4563 = vmatprep.subr.mxu1 %v526_v12  ;;  %7752 = vst [vmem:[#allocation31_spill] sm:$0xff] %v5541_v59  ;;  %7753 = vst [vmem:[#allocation32_spill] sm:$0xff] %v5545_v53  ;;  %v162_v8 = vsub.f32 %v5490_v18, %v7757_v6  ;;  %v5573_v23 = vsub.f32 %v33_v50, %v5547_v52  ;;  %v5575_v6 = vand.u32 4294901760, %v35_v25 }
  0x25   :  { %4492 = vmatpush3.msra.mxu0 %v5434_v45  ;;  %4564 = vmatpush3.msra.mxu1 %v526_v12  ;;  %7754 = vst [vmem:[#allocation33_spill] sm:$0xff] %v5547_v52  ;;  %v5553_v12 = vsub.f32 %v32_v40, %v5537_v58  ;;  %7756 = vst [vmem:[#allocation35_spill] sm:$0xff] %v5555_v41  ;;  %v554_v40 = vand.u32 4294901760, %v553_v2  ;;  %v567_v31 = vsub.f32 %v5510_v37, %v5541_v59 }
  0x26   :  { %4493 = vmatprep.subr.mxu0 %v5440_v48  ;;  %4565 = vmatprep.subr.mxu1 %v533_v43  ;;  %7758 = vst [vmem:[#allocation36_spill] sm:$0xff] %v5562_v39  ;;  %7760 = vst [vmem:[#allocation37_spill] sm:$0xff] %v5575_v6  ;;  %v7761_v44 = vand.u32 4294901760, %v5521_v49  ;;  %v5584_v2 = vand.u32 4294901760, %v5545_v53  ;;  %v561_v50 = vand.u32 4294901760, %v560_v30  ;;  %v163_v59 = vand.u32 4294901760, %v162_v8 }
  0x27   :  { %7755 = vst [vmem:[#allocation34_spill] sm:$0xff] %v5553_v12  ;;  %4494 = vmatpush3.msra.mxu0 %v5440_v48  ;;  %4566 = vmatpush3.msra.mxu1 %v533_v43  ;;  %v172_v43 = vsub.f32 %v5502_v32, %v7759_v26  ;;  %v5589_v32 = vsub.f32 %v34_v1, %v5555_v41  ;;  %v5600_v18 = vand.u32 4294901760, %v5566_v28  ;;  %v38_v30 = vld [vmem:[#allocation2 + $0x50] sm:$0xff]  ;;  %v5607_v8 = vand.u32 4294901760, %v37_v21 }
  0x28   :  { %4495 = vmatprep.subr.mxu0 %v5472_v62  ;;  %4567 = vmatprep.subr.mxu1 %v540_v63  ;;  %v182_v22 = vsub.f32 %v5521_v49, %v7761_v44  ;;  %7762 = vst [vmem:[#allocation38_spill] sm:$0xff] %v5584_v2  ;;  %v574_v44 = vsub.f32 %v5528_v55, %v5562_v39  ;;  %v7764_v49 = vand.u32 4294901760, %v5531_v57  ;;  %v568_v39 = vand.u32 4294901760, %v567_v31 }
  0x29   :  { %4496 = vmatpush3.msra.mxu0 %v5472_v62  ;;  %4568 = vmatpush3.msra.mxu1 %v540_v63  ;;  %v5591_v63 = vand.u32 4294901760, %v36_v47  ;;  %7765 = vst [vmem:[#allocation40_spill] sm:$0xff] %v5600_v18  ;;  %v173_v1 = vand.u32 4294901760, %v172_v43  ;;  %7766 = vst [vmem:[#allocation41_spill] sm:$0xff] %v5607_v8  ;;  %v39_v43 = vld [vmem:[#allocation2 + $0x58] sm:$0xff] }
  0x2a   :  { %4497 = vmatprep.subr.mxu0 %v5487_v13  ;;  %4569 = vmatprep.subr.mxu1 %v547_v0  ;;  %v192_v26 = vsub.f32 %v5531_v57, %v7764_v49  ;;  %v183_v49 = vand.u32 4294901760, %v182_v22  ;;  %v581_v57 = vsub.f32 %v5545_v53, %v5584_v2  ;;  %v575_v22 = vand.u32 4294901760, %v574_v44 }
  0x2b   :  { %7763 = vst [vmem:[#allocation39_spill] sm:$0xff] %v5591_v63  ;;  %4498 = vmatpush3.msra.mxu0 %v5487_v13  ;;  %4570 = vmatpush3.msra.mxu1 %v547_v0  ;;  %v5605_v0 = vsub.f32 %v35_v25, %v5575_v6  ;;  %v7767_v13 = vand.u32 4294901760, %v5553_v12  ;;  %v5618_v62 = vsub.f32 %v36_v47, %v5591_v63  ;;  %v7769_v2 = vand.u32 4294901760, %v5573_v23 }
  0x2c   :  { %4499 = vmatprep.subr.mxu0 %v5507_v36  ;;  %4571 = vmatprep.subr.mxu1 %v554_v40  ;;  %v193_v31 = vand.u32 4294901760, %v192_v26  ;;  %v5632_v53 = vand.u32 4294901760, %v39_v43 }
  0x2d   :  { %4500 = vmatpush3.msra.mxu0 %v5507_v36  ;;  %4572 = vmatpush3.msra.mxu1 %v554_v40  ;;  %v202_v55 = vsub.f32 %v5553_v12, %v7767_v13  ;;  %v5620_v36 = vand.u32 4294901760, %v38_v30  ;;  %v40_v40 = vld [vmem:[#allocation2 + $0x60] sm:$0xff]  ;;  %v588_v13 = vsub.f32 %v5566_v28, %v5600_v18  ;;  %v212_v25 = vsub.f32 %v5573_v23, %v7769_v2 }
  0x2e   :  { %4501 = vmatprep.subr.mxu0 %v5524_v51  ;;  %4573 = vmatprep.subr.mxu1 %v561_v50  ;;  %v5630_v12 = vsub.f32 %v37_v21, %v5607_v8  ;;  %7770 = vst [vmem:[#allocation43_spill] sm:$0xff] %v5632_v53  ;;  %v5634_v44 = vand.u32 4294901760, %v40_v40 }
  0x2f   :  { %7768 = vst [vmem:[#allocation42_spill] sm:$0xff] %v5620_v36  ;;  %4502 = vmatpush3.msra.mxu0 %v5524_v51  ;;  %4503 = vmatprep.mubr.f32.mxu0 %v163_v59  ;;  %v41_v51 = vld [vmem:[#allocation2 + $0x68] sm:$0xff]  ;;  %v582_v59 = vand.u32 4294901760, %v581_v57  ;;  %v203_v26 = vand.u32 4294901760, %v202_v55  ;;  %v5642_v21 = vsub.f32 %v38_v30, %v5620_v36  ;;  %v589_v47 = vand.u32 4294901760, %v588_v13  ;;  %v42_v55 = vld [vmem:[#allocation2 + $0x70] sm:$0xff] }
  0x30   :  { %4574 = vmatpush3.msra.mxu1 %v561_v50  ;;  %4504 = vmatmul.mubr.f32.vlgmr.msra.gmra.mxu0 %v173_v1  ;;  %7771 = vst [vmem:[#allocation44_spill] sm:$0xff] %v5634_v44  ;;  %v7772_v50 = vand.u32 4294901760, %v5589_v32  ;;  %v5645_v57 = vand.u32 4294901760, %v41_v51  ;;  %v5652_v1 = vsub.f32 %v39_v43, %v5632_v53  ;;  %v5655_v30 = vsub.f32 %v40_v40, %v5634_v44  ;;  %v43_v13 = vld [vmem:[#allocation2 + $0x78] sm:$0xff]  ;;  %v44_v40 = vld [vmem:[#allocation2 + $0x80] sm:$0xff] }
  0x31   :  { %4575 = vmatprep.subr.mxu1 %v568_v39  ;;  %4506 = vmatprep.mubr.f32.mxu0 %v183_v49  ;;  %v7774_v49 = vand.u32 4294901760, %v5605_v0 }
  0x32   :  { %4576 = vmatpush3.msra.mxu1 %v568_v39  ;;  %4631 = vmatprep.subr.mxu0 %v5352_v14  ;;  %v222_v2 = vsub.f32 %v5589_v32, %v7772_v50  ;;  %7773 = vst [vmem:[#allocation45_spill] sm:$0xff] %v5645_v57  ;;  %v213_v39 = vand.u32 4294901760, %v212_v25  ;;  %7775 = vst [vmem:[#allocation46_spill] sm:$0xff] %v5655_v30  ;;  %v7776_v25 = vand.u32 4294901760, %v5618_v62  ;;  %v5662_v50 = vand.u32 4294901760, %v42_v55 }
  0x33   :  { %4577 = vmatprep.subr.mxu1 %v575_v22  ;;  %4583 = vmatprep.mubr.f32.mxu1 %v5457_v56  ;;  %v232_v18 = vsub.f32 %v5605_v0, %v7774_v49  ;;  %v5666_v43 = vsub.f32 %v41_v51, %v5645_v57  ;;  %v45_v51 = vld [vmem:[#allocation2 + $0x88] sm:$0xff]  ;;  %v47_v49 = vld [vmem:[#allocation2 + $0x98] sm:$0xff] }
  0x34   :  { %4578 = vmatpush3.msra.mxu1 %v575_v22  ;;  %4507 = vmatmul.mubr.f32.gmra.mxu0 %v193_v31  ;;  %v223_v22 = vand.u32 4294901760, %v222_v2  ;;  %v242_v31 = vsub.f32 %v5618_v62, %v7776_v25  ;;  %7777 = vst [vmem:[#allocation47_spill] sm:$0xff] %v5662_v50  ;;  %v5672_v25 = vand.u32 4294901760, %v43_v13  ;;  %v5684_v2 = vand.u32 4294901760, %v44_v40 }
  0x35   :  { %4579 = vmatprep.subr.mxu1 %v582_v59  ;;  %4509 = vmatprep.mubr.f32.mxu0 %v203_v26  ;;  %7778 = vst [vmem:[#allocation48_spill] sm:$0xff] %v5666_v43  ;;  %v5696_v56 = vand.u32 4294901760, %v45_v51 }
  0x36   :  { %4580 = vmatpush3.msra.mxu1 %v582_v59  ;;  %4632 = vmatpush3.msra.mxu0 %v5352_v14  ;;  %v233_v59 = vand.u32 4294901760, %v232_v18  ;;  %v7779_v14 = vand.u32 4294901760, %v5630_v12  ;;  %7780 = vst [vmem:[#allocation49_spill] sm:$0xff] %v5672_v25  ;;  %v7781_v18 = vand.u32 4294901760, %v5642_v21 }
  0x37   :  { %4581 = vmatprep.subr.mxu1 %v589_v47  ;;  %4633 = vmatprep.subr.mxu0 %v5355_v15  ;;  %7784 = vst [vmem:[#allocation51_spill] sm:$0xff] %v5696_v56 }
  0x38   :  { %4582 = vmatpush3.msra.mxu1 %v589_v47  ;;  %4510 = vmatmul.mubr.f32.gmra.mxu0 %v213_v39  ;;  %v252_v26 = vsub.f32 %v5630_v12, %v7779_v14  ;;  %v243_v47 = vand.u32 4294901760, %v242_v31  ;;  %v262_v39 = vsub.f32 %v5642_v21, %v7781_v18  ;;  %v5682_v14 = vsub.f32 %v42_v55, %v5662_v50 }
  0x39   :  { %4584 = vmatmul.mubr.f32.vlgmr.msra.gmra.mxu1 %v5469_v61  ;;  %4711 = vmatprep.subr.mxu1 %v5323_v3  ;;  %v46_v61 = vld [vmem:[#allocation2 + $0x90] sm:$0xff]  ;;  %v7783_v31 = vand.u32 4294901760, %v5652_v1  ;;  %v5694_v55 = vsub.f32 %v43_v13, %v5672_v25  ;;  %v5706_v13 = vsub.f32 %v44_v40, %v5684_v2  ;;  %v5718_v40 = vsub.f32 %v45_v51, %v5696_v56 }
  0x3a   :  { %4712 = vmatpush3.msra.mxu1 %v5323_v3  ;;  %4512 = vmatprep.mubr.f32.mxu0 %v223_v22  ;;  %7782 = vst [vmem:[#allocation50_spill] sm:$0xff] %v5682_v14  ;;  %v253_v22 = vand.u32 4294901760, %v252_v26  ;;  %v263_v26 = vand.u32 4294901760, %v262_v39 }
  0x3b   :  { %4586 = vmatprep.mubr.f32.mxu1 %v5504_v35  ;;  %4634 = vmatpush3.msra.mxu0 %v5355_v15  ;;  %v272_v18 = vsub.f32 %v5652_v1, %v7783_v31  ;;  %v7785_v15 = vand.u32 4294901760, %v5655_v30  ;;  %v5708_v35 = vand.u32 4294901760, %v46_v61  ;;  %v5720_v31 = vand.u32 4294901760, %v47_v49 }
  0x3c   :  { %4513 = vmatmul.mubr.f32.gmra.mxu0 %v233_v59  ;;  %4713 = vmatprep.subr.mxu1 %v5325_v4 }
  0x3d   :  { %4587 = vmatmul.mubr.f32.gmra.mxu1 %v5512_v38  ;;  %4635 = vmatprep.subr.mxu0 %v5360_v17  ;;  %v282_v59 = vsub.f32 %v5655_v30, %v7785_v15  ;;  %v7786_v38 = vand.u32 4294901760, %v5666_v43  ;;  %v48_v30 = vld [vmem:[#allocation2 + $0xa0] sm:$0xff]  ;;  %v5730_v51 = vsub.f32 %v46_v61, %v5708_v35  ;;  %v5742_v61 = vsub.f32 %v47_v49, %v5720_v31 }
  0x3e   :  { %4714 = vmatpush3.msra.mxu1 %v5325_v4  ;;  %4515 = vmatprep.mubr.f32.mxu0 %v243_v47  ;;  %v273_v47 = vand.u32 4294901760, %v272_v18  ;;  %v5732_v39 = vand.u32 4294901760, %v48_v30 }
  0x3f   :  { %4589 = vmatprep.mubr.f32.mxu1 %v5537_v58  ;;  %4636 = vmatpush3.msra.mxu0 %v5360_v17  ;;  %v292_v15 = vsub.f32 %v5666_v43, %v7786_v38  ;;  %v283_v17 = vand.u32 4294901760, %v282_v59  ;;  %v49_v58 = vld [vmem:[#allocation2 + $0xa8] sm:$0xff]  ;;  %v7787_v38 = vand.u32 4294901760, %v5682_v14  ;;  %7788 = vst [vmem:[#allocation52_spill] sm:$0xff] %v5730_v51  ;;  %v50_v43 = vld [vmem:[#allocation2 + $0xb0] sm:$0xff] }
  0x40   :  { %4516 = vmatmul.mubr.f32.gmra.mxu0 %v253_v22  ;;  %4715 = vmatprep.subr.mxu1 %v5327_v5  ;;  %v5756_v18 = vsub.f32 %v48_v30, %v5732_v39 }
  0x41   :  { %4590 = vmatmul.mubr.f32.gmra.mxu1 %v5547_v52  ;;  %4637 = vmatprep.subr.mxu0 %v5367_v19  ;;  %v302_v22 = vsub.f32 %v5682_v14, %v7787_v38  ;;  %v293_v59 = vand.u32 4294901760, %v292_v15  ;;  %v5744_v52 = vand.u32 4294901760, %v49_v58  ;;  %v51_v14 = vld [vmem:[#allocation2 + $0xb8] sm:$0xff] }
  0x42   :  { %4716 = vmatpush3.msra.mxu1 %v5327_v5  ;;  %4518 = vmatprep.mubr.f32.mxu0 %v263_v26  ;;  %v7789_v26 = vand.u32 4294901760, %v5694_v55  ;;  %7791 = vst [vmem:[#allocation53_spill] sm:$0xff] %v5756_v18 }
  0x43   :  { %4592 = vmatprep.mubr.f32.mxu1 %v5555_v41  ;;  %4638 = vmatpush3.msra.mxu0 %v5367_v19  ;;  %v5748_v19 = vand.u32 4294901760, %v50_v43  ;;  %v303_v15 = vand.u32 4294901760, %v302_v22  ;;  %v52_v41 = vld [vmem:[#allocation2 + $0xc0] sm:$0xff]  ;;  %v7792_v22 = vand.u32 4294901760, %v5718_v40  ;;  %v5768_v30 = vsub.f32 %v49_v58, %v5744_v52 }
  0x44   :  { %4519 = vmatmul.mubr.f32.gmra.mxu0 %v273_v47  ;;  %4717 = vmatprep.subr.mxu1 %v5338_v9  ;;  %v312_v38 = vsub.f32 %v5694_v55, %v7789_v26  ;;  %v7790_v47 = vand.u32 4294901760, %v5706_v13  ;;  %v5780_v58 = vand.u32 4294901760, %v52_v41 }
  0x45   :  { %4593 = vmatmul.mubr.f32.gmra.mxu1 %v5575_v6  ;;  %4639 = vmatprep.subr.mxu0 %v5370_v20  ;;  %v5760_v6 = vand.u32 4294901760, %v51_v14 }
  0x46   :  { %4718 = vmatpush3.msra.mxu1 %v5338_v9  ;;  %4521 = vmatprep.mubr.f32.mxu0 %v283_v17  ;;  %v322_v26 = vsub.f32 %v5706_v13, %v7790_v47  ;;  %v313_v17 = vand.u32 4294901760, %v312_v38  ;;  %v332_v47 = vsub.f32 %v5718_v40, %v7792_v22 }
  0x47   :  { %4595 = vmatprep.mubr.f32.mxu1 %v5591_v63  ;;  %4640 = vmatpush3.msra.mxu0 %v5370_v20  ;;  %v5773_v20 = vsub.f32 %v50_v43, %v5748_v19  ;;  %v7794_v63 = vand.u32 4294901760, %v5730_v51  ;;  %v5785_v43 = vsub.f32 %v51_v14, %v5760_v6  ;;  %v55_v14 = vld [vmem:[#allocation2 + $0xd8] sm:$0xff] }
  0x48   :  { %4522 = vmatmul.mubr.f32.gmra.mxu0 %v293_v59  ;;  %4719 = vmatprep.subr.mxu1 %v5340_v10  ;;  %v53_v59 = vld [vmem:[#allocation2 + $0xc8] sm:$0xff]  ;;  %v323_v38 = vand.u32 4294901760, %v322_v26  ;;  %v7795_v26 = vand.u32 4294901760, %v5742_v61 }
  0x49   :  { %4596 = vmatmul.mubr.f32.gmra.mxu1 %v5607_v8  ;;  %4641 = vmatprep.subr.mxu0 %v5397_v29  ;;  %7793 = vst [vmem:[#allocation54_spill] sm:$0xff] %v5773_v20  ;;  %v342_v22 = vsub.f32 %v5730_v51, %v7794_v63  ;;  %v54_v8 = vld [vmem:[#allocation2 + $0xd0] sm:$0xff]  ;;  %v5792_v51 = vand.u32 4294901760, %v53_v59 }
  0x4a   :  { %4720 = vmatpush3.msra.mxu1 %v5340_v10  ;;  %4524 = vmatprep.mubr.f32.mxu0 %v303_v15  ;;  %v333_v15 = vand.u32 4294901760, %v332_v47  ;;  %v352_v63 = vsub.f32 %v5742_v61, %v7795_v26  ;;  %v7796_v47 = vand.u32 4294901760, %v5756_v18  ;;  %v5802_v26 = vsub.f32 %v52_v41, %v5780_v58 }
  0x4b   :  { %4598 = vmatprep.mubr.f32.mxu1 %v5620_v36  ;;  %4642 = vmatpush3.msra.mxu0 %v5397_v29  ;;  %v5804_v49 = vand.u32 4294901760, %v54_v8  ;;  %v5814_v41 = vsub.f32 %v53_v59, %v5792_v51  ;;  %v57_v29 = vld [vmem:[#allocation2 + $0xe8] sm:$0xff] }
  0x4c   :  { %4525 = vmatmul.mubr.f32.gmra.mxu0 %v313_v17  ;;  %4721 = vmatprep.subr.mxu1 %v5342_v11  ;;  %v343_v17 = vand.u32 4294901760, %v342_v22  ;;  %v362_v36 = vsub.f32 %v5756_v18, %v7796_v47  ;;  %v7797_v22 = vand.u32 4294901760, %v5768_v30  ;;  %v5816_v18 = vand.u32 4294901760, %v55_v14 }
  0x4d   :  { %4599 = vmatmul.mubr.f32.gmra.mxu1 %v5632_v53  ;;  %4643 = vmatprep.subr.mxu0 %v5407_v33  ;;  %v56_v53 = vld [vmem:[#allocation2 + $0xe0] sm:$0xff]  ;;  %v5826_v59 = vsub.f32 %v54_v8, %v5804_v49 }
  0x4e   :  { %4722 = vmatpush3.msra.mxu1 %v5342_v11  ;;  %4527 = vmatprep.mubr.f32.mxu0 %v323_v38  ;;  %v353_v38 = vand.u32 4294901760, %v352_v63  ;;  %v372_v47 = vsub.f32 %v5768_v30, %v7797_v22  ;;  %v363_v63 = vand.u32 4294901760, %v362_v36  ;;  %v5838_v8 = vsub.f32 %v55_v14, %v5816_v18 }
  0x4f   :  { %4601 = vmatprep.mubr.f32.mxu1 %v5634_v44  ;;  %4644 = vmatpush3.msra.mxu0 %v5407_v33  ;;  %v7798_v33 = vand.u32 4294901760, %v5773_v20  ;;  %v5828_v44 = vand.u32 4294901760, %v56_v53  ;;  %v5840_v22 = vand.u32 4294901760, %v57_v29 }
  0x50   :  { %4528 = vmatmul.mubr.f32.gmra.mxu0 %v333_v15  ;;  %4723 = vmatprep.subr.mxu1 %v5357_v16  ;;  %v373_v36 = vand.u32 4294901760, %v372_v47 }
  0x51   :  { %4602 = vmatmul.mubr.f32.gmra.mxu1 %v5645_v57  ;;  %4645 = vmatprep.subr.mxu0 %v5429_v42  ;;  %v382_v15 = vsub.f32 %v5773_v20, %v7798_v33  ;;  %v7799_v57 = vand.u32 4294901760, %v5785_v43  ;;  %v58_v20 = vld [vmem:[#allocation2 + $0xf0] sm:$0xff]  ;;  %v5850_v14 = vsub.f32 %v56_v53, %v5828_v44  ;;  %v5862_v47 = vsub.f32 %v57_v29, %v5840_v22 }
  0x52   :  { %4724 = vmatpush3.msra.mxu1 %v5357_v16  ;;  %4530 = vmatprep.mubr.f32.mxu0 %v343_v17  ;;  %v5852_v17 = vand.u32 4294901760, %v58_v20 }
  0x53   :  { %4604 = vmatprep.mubr.f32.mxu1 %v5662_v50  ;;  %4646 = vmatpush3.msra.mxu0 %v5429_v42  ;;  %v392_v33 = vsub.f32 %v5785_v43, %v7799_v57  ;;  %v383_v42 = vand.u32 4294901760, %v382_v15  ;;  %v59_v50 = vld [vmem:[#allocation2 + $0xf8] sm:$0xff]  ;;  %v7800_v57 = vand.u32 4294901760, %v5802_v26 }
  0x54   :  { %4531 = vmatmul.mubr.f32.gmra.mxu0 %v353_v38  ;;  %4725 = vmatprep.subr.mxu1 %v5382_v24  ;;  %v5864_v53 = vand.u32 4294901760, %v59_v50 }
  0x55   :  { %4605 = vmatmul.mubr.f32.gmra.mxu1 %v5672_v25  ;;  %4647 = vmatprep.subr.mxu0 %v5437_v46  ;;  %v402_v38 = vsub.f32 %v5802_v26, %v7800_v57  ;;  %v393_v15 = vand.u32 4294901760, %v392_v33  ;;  %v7802_v33 = vand.u32 4294901760, %v5826_v59  ;;  %v5874_v57 = vsub.f32 %v58_v20, %v5852_v17 }
  0x56   :  { %4726 = vmatpush3.msra.mxu1 %v5382_v24  ;;  %4533 = vmatprep.mubr.f32.mxu0 %v363_v63  ;;  %v7801_v63 = vand.u32 4294901760, %v5814_v41 }
  0x57   :  { %4607 = vmatprep.mubr.f32.mxu1 %v5684_v2  ;;  %4648 = vmatpush3.msra.mxu0 %v5437_v46  ;;  %v403_v46 = vand.u32 4294901760, %v402_v38  ;;  %v7664_v20 = vand.u32 4294901760, %v5874_v57 }
  0x58   :  { %4534 = vmatmul.mubr.f32.gmra.mxu0 %v373_v36  ;;  %4727 = vmatprep.subr.mxu1 %v5391_v27  ;;  %v412_v25 = vsub.f32 %v5814_v41, %v7801_v63  ;;  %v422_v36 = vsub.f32 %v5826_v59, %v7802_v33  ;;  %v441_v63 = vand.u32 4294901760, %v5850_v14  ;;  %v5884_v33 = vsub.f32 %v59_v50, %v5864_v53 }
  0x59   :  { %4608 = vmatmul.mubr.f32.gmra.mxu1 %v5696_v56  ;;  %4649 = vmatprep.subr.mxu0 %v5452_v54  ;;  %v451_v56 = vand.u32 4294901760, %v5862_v47 }
  0x5a   :  { %4728 = vmatpush3.msra.mxu1 %v5391_v27  ;;  %4536 = vmatprep.mubr.f32.mxu0 %v383_v42  ;;  %v413_v29 = vand.u32 4294901760, %v412_v25  ;;  %v7803_v42 = vand.u32 4294901760, %v5838_v8  ;;  %v442_v25 = vsub.f32 %v5850_v14, %v441_v63 }
  0x5b   :  { %4610 = vmatprep.mubr.f32.mxu1 %v5708_v35  ;;  %4650 = vmatpush3.msra.mxu0 %v5452_v54  ;;  %v423_v54 = vand.u32 4294901760, %v422_v36 }
  0x5c   :  { %4537 = vmatmul.mubr.f32.gmra.mxu0 %v393_v15  ;;  %4729 = vmatprep.subr.mxu1 %v5410_v34  ;;  %v432_v38 = vsub.f32 %v5838_v8, %v7803_v42  ;;  %v452_v15 = vsub.f32 %v5862_v47, %v451_v56  ;;  %v443_v36 = vand.u32 4294901760, %v442_v25  ;;  %v7805_v25 = vld [vmem:[#allocation28_spill] sm:$0xff] }
  0x5d   :  { %4611 = vmatmul.mubr.f32.gmra.mxu1 %v5720_v31  ;;  %4651 = vmatprep.subr.mxu0 %v5467_v60 }
  0x5e   :  { %4730 = vmatpush3.msra.mxu1 %v5410_v34  ;;  %4539 = vmatprep.mubr.f32.mxu0 %v403_v46  ;;  %v433_v50 = vand.u32 4294901760, %v432_v38  ;;  %v7663_v46 = vand.u32 4294901760, %v5884_v33 }
  0x5f   :  { %4613 = vmatprep.mubr.f32.mxu1 %v5732_v39  ;;  %4652 = vmatpush3.msra.mxu0 %v5467_v60  ;;  %v462_v60 = vsub.f32 %v5874_v57, %v7664_v20 }
  0x60   :  { %4540 = vmatmul.mubr.f32.gmra.mxu0 %v413_v29  ;;  %4731 = vmatprep.subr.mxu1 %v5434_v45  ;;  %v453_v29 = vand.u32 4294901760, %v452_v15  ;;  %v472_v42 = vsub.f32 %v5884_v33, %v7663_v46  ;;  %v7808_v15 = vld [vmem:[#allocation19_spill] sm:$0xff] }
  0x61   :  { %4614 = vmatmul.mubr.f32.gmra.mxu1 %v5744_v52  ;;  %4653 = vmatprep.subr.mxu0 %v5484_v7  ;;  %v463_v38 = vand.u32 4294901760, %v462_v60  ;;  %v7810_v60 = vld [vmem:[#allocation23_spill] sm:$0xff] }
  0x62   :  { %4732 = vmatpush3.msra.mxu1 %v5434_v45  ;;  %4542 = vmatprep.mubr.f32.mxu0 %v423_v54  ;;  %v473_v54 = vand.u32 4294901760, %v472_v42  ;;  %v7812_v42 = vld [vmem:[#allocation27_spill] sm:$0xff] }
  0x63   :  { %4616 = vmatprep.mubr.f32.mxu1 %v5748_v19  ;;  %4654 = vmatpush3.msra.mxu0 %v5484_v7  ;;  %v7804_v7 = vld [vmem:[#allocation16_spill] sm:$0xff] }
  0x64   :  { %4543 = vmatmul.mubr.f32.gmra.mxu0 %v433_v50  ;;  %4733 = vmatprep.subr.mxu1 %v5440_v48  ;;  %v7806_v50 = vld [vmem:[#allocation32_spill] sm:$0xff] }
  0x65   :  { %4617 = vmatmul.mubr.f32.gmra.mxu1 %v5760_v6  ;;  %4655 = vmatprep.subr.mxu0 %v5510_v37 }
  0x66   :  { %4734 = vmatpush3.msra.mxu1 %v5440_v48  ;;  %4545 = vmatprep.mubr.f32.mxu0 %v443_v36  ;;  %v7809_v36 = vld [vmem:[#allocation21_spill] sm:$0xff] }
  0x67   :  { %4619 = vmatprep.mubr.f32.mxu1 %v5780_v58  ;;  %4656 = vmatpush3.msra.mxu0 %v5510_v37  ;;  %v7807_v37 = vld [vmem:[#allocation18_spill] sm:$0xff]  ;;  %v7818_v46 = vand.u32 4294901760, %v7809_v36 }
  0x68   :  { %4546 = vmatmul.mubr.f32.gmra.mxu0 %v453_v29  ;;  %4735 = vmatprep.subr.mxu1 %v7804_v7  ;;  %v7811_v29 = vld [vmem:[#allocation26_spill] sm:$0xff] }
  0x69   :  { %4620 = vmatmul.mubr.f32.gmra.mxu1 %v5792_v51  ;;  %4657 = vmatprep.subr.mxu0 %v7805_v25  ;;  %v7819_v20 = vand.u32 4294901760, %v7811_v29 }
  0x6a   :  { %4736 = vmatpush3.msra.mxu1 %v7804_v7  ;;  %4548 = vmatprep.mubr.f32.mxu0 %v463_v38  ;;  %v7813_v38 = vld [vmem:[#allocation5_spill] sm:$0xff] }
  0x6b   :  { %4622 = vmatprep.mubr.f32.mxu1 %v5804_v49  ;;  %4658 = vmatpush3.msra.mxu0 %v7805_v25  ;;  %v7816_v25 = vand.u32 4294901760, %v7808_v15 }
  0x6c   :  { %4549 = vmatmul.mubr.f32.gmra.mxu0 %v473_v54  ;;  %4659 = vmatprep.subr.mxu0 %v7806_v50  ;;  %v7815_v54 = vld [vmem:[#allocation34_spill] sm:$0xff] }
  0x6d   :  { %4623 = vmatmul.mubr.f32.gmra.mxu1 %v5816_v18  ;;  %4737 = vmatprep.subr.mxu1 %v7807_v37 }
  0x6e   :  { %4660 = vmatpush3.msra.mxu0 %v7806_v50  ;;  %4738 = vmatpush3.msra.mxu1 %v7807_v37  ;;  %v7817_v50 = vld [vmem:[#allocation6_spill] sm:$0xff] }
  0x6f   :  { %4661 = vmatprep.subr.mxu0 %v5566_v28  ;;  %4625 = vmatprep.mubr.f32.mxu1 %v5828_v44 }
  0x70   :  { %4662 = vmatpush3.msra.mxu0 %v5566_v28  ;;  %4663 = vmatprep.mubr.f32.mxu0 %v7808_v15  ;;  %v7814_v28 = vld [vmem:[#allocation29_spill] sm:$0xff]  ;;  %v7820_v15 = vld [vmem:[#allocation7_spill] sm:$0xff] }
  0x71   :  { %4626 = vmatmul.mubr.f32.gmra.mxu1 %v5840_v22  ;;  %4664 = vmatmul.mubr.f32.vlgmr.msra.gmra.mxu0 %v7809_v36  ;;  %v7826_v36 = vld [vmem:[#allocation9_spill] sm:$0xff] }
  0x72   :  { %4739 = vmatprep.subr.mxu1 %v7810_v60  ;;  %4628 = vmatprep.mubr.f32.mxu1 %v5852_v17 }
  0x73   :  { %4740 = vmatpush3.msra.mxu1 %v7810_v60  ;;  %4666 = vmatprep.mubr.f32.mxu0 %v7811_v29  ;;  %v7827_v29 = vand.u32 4294901760, %v5605_v0 }
  0x74   :  { %4741 = vmatprep.subr.mxu1 %v7812_v42  ;;  %4791 = vmatprep.subr.mxu0 %v7813_v38 }
  0x75   :  { %4629 = vmatmul.mubr.f32.gmra.mxu1 %v5864_v53  ;;  %4667 = vmatmul.mubr.f32.gmra.mxu0 %v7814_v28 }
  0x76   :  { %4742 = vmatpush3.msra.mxu1 %v7812_v42  ;;  %4669 = vmatprep.mubr.f32.mxu0 %v7815_v54 }
  0x77   :  { %4743 = vmatprep.mubr.f32.mxu1 %v7816_v25  ;;  %4792 = vmatpush3.msra.mxu0 %v7813_v38  ;;  %v7821_v38 = vand.u32 4294901760, %v7814_v28  ;;  %v7831_v28 = vld [vmem:[#allocation48_spill] sm:$0xff]  ;;  %v7836_v25 = vand.u32 4294901760, %v5652_v1 }
  0x78   :  { %4871 = vmatprep.subr.mxu1 %v5323_v3  ;;  %4793 = vmatprep.subr.mxu0 %v7817_v50 }
  0x79   :  { %4670 = vmatmul.mubr.f32.gmra.mxu0 %v5573_v23  ;;  %4744 = vmatmul.mubr.f32.vlgmr.msra.gmra.mxu1 %v7818_v46  ;;  %v7824_v46 = vand.u32 4294901760, %v5573_v23  ;;  %v7828_v23 = vld [vmem:[#allocation46_spill] sm:$0xff] }
  0x7a   :  { %4872 = vmatpush3.msra.mxu1 %v5323_v3  ;;  %4672 = vmatprep.mubr.f32.mxu0 %v5589_v32  ;;  %v7822_v3 = vand.u32 4294901760, %v7815_v54  ;;  %v7832_v54 = vand.u32 4294901760, %v5630_v12 }
  0x7b   :  { %4746 = vmatprep.mubr.f32.mxu1 %v7819_v20  ;;  %4794 = vmatpush3.msra.mxu0 %v7817_v50  ;;  %v7823_v20 = vld [vmem:[#allocation8_spill] sm:$0xff]  ;;  %v7842_v50 = vld [vmem:[#allocation14_spill] sm:$0xff] }
  0x7c   :  { %4873 = vmatprep.subr.mxu1 %v5325_v4  ;;  %4795 = vmatprep.subr.mxu0 %v7820_v15 }
  0x7d   :  { %4673 = vmatmul.mubr.f32.gmra.mxu0 %v5605_v0  ;;  %4747 = vmatmul.mubr.f32.gmra.mxu1 %v7821_v38  ;;  %v7833_v0 = vld [vmem:[#allocation50_spill] sm:$0xff]  ;;  %v7844_v38 = vld [vmem:[#allocation53_spill] sm:$0xff] }
  0x7e   :  { %4874 = vmatpush3.msra.mxu1 %v5325_v4  ;;  %4675 = vmatprep.mubr.f32.mxu0 %v5618_v62  ;;  %v7825_v4 = vand.u32 4294901760, %v5589_v32  ;;  %v7830_v32 = vld [vmem:[#allocation10_spill] sm:$0xff] }
  0x7f   :  { %4749 = vmatprep.mubr.f32.mxu1 %v7822_v3  ;;  %4796 = vmatpush3.msra.mxu0 %v7820_v15  ;;  %v7843_v15 = vand.u32 4294901760, %v5694_v55  ;;  %v7846_v3 = vld [vmem:[#allocation17_spill] sm:$0xff] }
  0x80   :  { %4875 = vmatprep.subr.mxu1 %v5327_v5  ;;  %4797 = vmatprep.subr.mxu0 %v7823_v20 }
  0x81   :  { %4676 = vmatmul.mubr.f32.gmra.mxu0 %v5630_v12  ;;  %4750 = vmatmul.mubr.f32.gmra.mxu1 %v7824_v46  ;;  %v7838_v12 = vld [vmem:[#allocation12_spill] sm:$0xff]  ;;  %v7851_v46 = vand.u32 4294901760, %v5742_v61 }
  0x82   :  { %4876 = vmatpush3.msra.mxu1 %v5327_v5  ;;  %4678 = vmatprep.mubr.f32.mxu0 %v5642_v21  ;;  %v7829_v5 = vand.u32 4294901760, %v5618_v62  ;;  %v7835_v62 = vld [vmem:[#allocation11_spill] sm:$0xff] }
  0x83   :  { %4752 = vmatprep.mubr.f32.mxu1 %v7825_v4  ;;  %4798 = vmatpush3.msra.mxu0 %v7823_v20  ;;  %v7847_v20 = vand.u32 4294901760, %v5718_v40  ;;  %v7854_v4 = vand.u32 4294901760, %v5768_v30 }
  0x84   :  { %4877 = vmatprep.subr.mxu1 %v5338_v9  ;;  %4799 = vmatprep.subr.mxu0 %v7826_v36 }
  0x85   :  { %4679 = vmatmul.mubr.f32.gmra.mxu0 %v5652_v1  ;;  %4753 = vmatmul.mubr.f32.gmra.mxu1 %v7827_v29  ;;  %v7840_v1 = vld [vmem:[#allocation52_spill] sm:$0xff]  ;;  %v7860_v29 = vand.u32 4294901760, %v5814_v41 }
  0x86   :  { %4878 = vmatpush3.msra.mxu1 %v5338_v9  ;;  %4681 = vmatprep.mubr.f32.mxu0 %v7828_v23  ;;  %v7834_v9 = vand.u32 4294901760, %v5642_v21  ;;  %v7839_v21 = vand.u32 4294901760, %v7831_v28 }
  0x87   :  { %4755 = vmatprep.mubr.f32.mxu1 %v7829_v5  ;;  %4800 = vmatpush3.msra.mxu0 %v7826_v36  ;;  %v7857_v36 = vand.u32 4294901760, %v5785_v43  ;;  %v7878_v5 = vld [vmem:[#allocation43_spill] sm:$0xff] }
  0x88   :  { %4879 = vmatprep.subr.mxu1 %v5340_v10  ;;  %4801 = vmatprep.subr.mxu0 %v7830_v32 }
  0x89   :  { %4682 = vmatmul.mubr.f32.gmra.mxu0 %v7831_v28  ;;  %4756 = vmatmul.mubr.f32.gmra.mxu1 %v7832_v54  ;;  %v7880_v28 = vld [vmem:[#allocation45_spill] sm:$0xff]  ;;  %v7881_v54 = vld [vmem:[#allocation47_spill] sm:$0xff] }
  0x8a   :  { %4880 = vmatpush3.msra.mxu1 %v5340_v10  ;;  %4684 = vmatprep.mubr.f32.mxu0 %v7833_v0  ;;  %v7837_v10 = vand.u32 4294901760, %v7828_v23  ;;  %v7877_v23 = vld [vmem:[#allocation42_spill] sm:$0xff] }
  0x8b   :  { %4758 = vmatprep.mubr.f32.mxu1 %v7834_v9  ;;  %4802 = vmatpush3.msra.mxu0 %v7830_v32  ;;  %v7879_v32 = vld [vmem:[#allocation44_spill] sm:$0xff] }
  0x8c   :  { %4881 = vmatprep.subr.mxu1 %v5342_v11  ;;  %4803 = vmatprep.subr.mxu0 %v7835_v62 }
  0x8d   :  { %4685 = vmatmul.mubr.f32.gmra.mxu0 %v5694_v55  ;;  %4759 = vmatmul.mubr.f32.gmra.mxu1 %v7836_v25  ;;  %v7848_v55 = vld [vmem:[#allocation54_spill] sm:$0xff] }
  0x8e   :  { %4882 = vmatpush3.msra.mxu1 %v5342_v11  ;;  %4687 = vmatprep.mubr.f32.mxu0 %v5706_v13  ;;  %v7841_v11 = vand.u32 4294901760, %v7833_v0  ;;  %v61_v0 = vld [vmem:[%s7561_s2 + $0x8] sm:$0xff] }
  0x8f   :  { %4761 = vmatprep.mubr.f32.mxu1 %v7837_v10  ;;  %4804 = vmatpush3.msra.mxu0 %v7835_v62  ;;  %v6127_v9 = vand.u32 4294901760, %v61_v0  ;;  %v7883_v62 = vld [vmem:[#allocation49_spill] sm:$0xff] }
  0x90   :  { %4883 = vmatprep.subr.mxu1 %v5357_v16  ;;  %4805 = vmatprep.subr.mxu0 %v7838_v12 }
  0x91   :  { %4688 = vmatmul.mubr.f32.gmra.mxu0 %v5718_v40  ;;  %4762 = vmatmul.mubr.f32.gmra.mxu1 %v7839_v21  ;;  %v7853_v40 = vld [vmem:[#allocation25_spill] sm:$0xff]  ;;  %7882 = vst [vmem:[#allocation16_spill] sm:$0xff] %v6127_v9  ;;  %v6132_v25 = vsub.f32 %v61_v0, %v6127_v9 }
  0x92   :  { %4884 = vmatpush3.msra.mxu1 %v5357_v16  ;;  %4690 = vmatprep.mubr.f32.mxu0 %v7840_v1  ;;  %v7845_v16 = vand.u32 4294901760, %v5706_v13  ;;  %v7850_v13 = vld [vmem:[#allocation20_spill] sm:$0xff] }
  0x93   :  { %4764 = vmatprep.mubr.f32.mxu1 %v7841_v11  ;;  %4806 = vmatpush3.msra.mxu0 %v7838_v12  ;;  %7884 = vst [vmem:[#allocation28_spill] sm:$0xff] %v6132_v25  ;;  %v6138_v10 = vand.u32 4294901760, %v6132_v25  ;;  %v7886_v12 = vld [vmem:[#allocation51_spill] sm:$0xff] }
  0x94   :  { %4885 = vmatprep.subr.mxu1 %v5382_v24  ;;  %4807 = vmatprep.subr.mxu0 %v7842_v50 }
  0x95   :  { %4691 = vmatmul.mubr.f32.gmra.mxu0 %v5742_v61  ;;  %4765 = vmatmul.mubr.f32.gmra.mxu1 %v7843_v15  ;;  %v7856_v61 = vld [vmem:[#allocation31_spill] sm:$0xff]  ;;  %7885 = vst [vmem:[#allocation32_spill] sm:$0xff] %v6138_v10  ;;  %v2568_v21 = vsub.f32 %v6132_v25, %v6138_v10 }
  0x96   :  { %4886 = vmatpush3.msra.mxu1 %v5382_v24  ;;  %4693 = vmatprep.mubr.f32.mxu0 %v7844_v38  ;;  %v7849_v24 = vand.u32 4294901760, %v7840_v1 }
  0x97   :  { %4767 = vmatprep.mubr.f32.mxu1 %v7845_v16  ;;  %4808 = vmatpush3.msra.mxu0 %v7842_v50  ;;  %v2569_v1 = vand.u32 4294901760, %v2568_v21 }
  0x98   :  { %4887 = vmatprep.subr.mxu1 %v5391_v27  ;;  %4809 = vmatprep.subr.mxu0 %v7846_v3 }
  0x99   :  { %4694 = vmatmul.mubr.f32.gmra.mxu0 %v5768_v30  ;;  %4768 = vmatmul.mubr.f32.gmra.mxu1 %v7847_v20  ;;  %v7859_v30 = vld [vmem:[#allocation36_spill] sm:$0xff] }
  0x9a   :  { %4888 = vmatpush3.msra.mxu1 %v5391_v27  ;;  %4696 = vmatprep.mubr.f32.mxu0 %v7848_v55  ;;  %v7852_v27 = vand.u32 4294901760, %v7844_v38 }
  0x9b   :  { %4770 = vmatprep.mubr.f32.mxu1 %v7849_v24  ;;  %4810 = vmatpush3.msra.mxu0 %v7846_v3 }
  0x9c   :  { %4889 = vmatprep.subr.mxu1 %v5410_v34  ;;  %4811 = vmatprep.subr.mxu0 %v7850_v13 }
  0x9d   :  { %4697 = vmatmul.mubr.f32.gmra.mxu0 %v5785_v43  ;;  %4771 = vmatmul.mubr.f32.gmra.mxu1 %v7851_v46  ;;  %v7862_v43 = vld [vmem:[#allocation38_spill] sm:$0xff] }
  0x9e   :  { %4890 = vmatpush3.msra.mxu1 %v5410_v34  ;;  %4699 = vmatprep.mubr.f32.mxu0 %v5802_v26  ;;  %v7855_v34 = vand.u32 4294901760, %v7848_v55 }
  0x9f   :  { %4773 = vmatprep.mubr.f32.mxu1 %v7852_v27  ;;  %4812 = vmatpush3.msra.mxu0 %v7850_v13 }
  0xa0   :  { %4891 = vmatprep.subr.mxu1 %v5434_v45  ;;  %4813 = vmatprep.subr.mxu0 %v7853_v40 }
  0xa1   :  { %4700 = vmatmul.mubr.f32.gmra.mxu0 %v5814_v41  ;;  %4774 = vmatmul.mubr.f32.gmra.mxu1 %v7854_v4  ;;  %v7864_v41 = vld [vmem:[#allocation40_spill] sm:$0xff] }
  0xa2   :  { %4892 = vmatpush3.msra.mxu1 %v5434_v45  ;;  %4702 = vmatprep.mubr.f32.mxu0 %v5826_v59  ;;  %v7858_v45 = vand.u32 4294901760, %v5802_v26  ;;  %v7863_v26 = vand.u32 4294901760, %v5838_v8 }
  0xa3   :  { %4776 = vmatprep.mubr.f32.mxu1 %v7855_v34  ;;  %4814 = vmatpush3.msra.mxu0 %v7853_v40 }
  0xa4   :  { %4893 = vmatprep.subr.mxu1 %v5440_v48  ;;  %4815 = vmatprep.subr.mxu0 %v7856_v61 }
  0xa5   :  { %4703 = vmatmul.mubr.f32.gmra.mxu0 %v5838_v8  ;;  %4777 = vmatmul.mubr.f32.gmra.mxu1 %v7857_v36  ;;  %v7867_v8 = vand.u32 4294901760, %v5874_v57 }
  0xa6   :  { %4894 = vmatpush3.msra.mxu1 %v5440_v48  ;;  %4705 = vmatprep.mubr.f32.mxu0 %v5850_v14  ;;  %v7861_v48 = vand.u32 4294901760, %v5826_v59  ;;  %v7865_v59 = vld [vmem:[#allocation13_spill] sm:$0xff]  ;;  %v7869_v14 = vand.u32 4294901760, %v5884_v33 }
  0xa7   :  { %4779 = vmatprep.mubr.f32.mxu1 %v7858_v45  ;;  %4816 = vmatpush3.msra.mxu0 %v7856_v61 }
  0xa8   :  { %4895 = vmatprep.subr.mxu1 %v7804_v7  ;;  %4817 = vmatprep.subr.mxu0 %v7859_v30 }
  0xa9   :  { %4706 = vmatmul.mubr.f32.gmra.mxu0 %v5862_v47  ;;  %4780 = vmatmul.mubr.f32.gmra.mxu1 %v7860_v29  ;;  %v7872_v47 = vld [vmem:[#allocation33_spill] sm:$0xff] }
  0xaa   :  { %4896 = vmatpush3.msra.mxu1 %v7804_v7  ;;  %4708 = vmatprep.mubr.f32.mxu0 %v5874_v57  ;;  %v7866_v7 = vld [vmem:[#allocation15_spill] sm:$0xff] }
  0xab   :  { %4782 = vmatprep.mubr.f32.mxu1 %v7861_v48  ;;  %4818 = vmatpush3.msra.mxu0 %v7859_v30  ;;  %v7873_v57 = vld [vmem:[#allocation35_spill] sm:$0xff] }
  0xac   :  { %4819 = vmatprep.subr.mxu0 %v7862_v43  ;;  %4897 = vmatprep.subr.mxu1 %v7807_v37 }
  0xad   :  { %4709 = vmatmul.mubr.f32.gmra.mxu0 %v5884_v33  ;;  %4783 = vmatmul.mubr.f32.gmra.mxu1 %v7863_v26  ;;  %v7875_v33 = vld [vmem:[#allocation39_spill] sm:$0xff] }
  0xae   :  { %4820 = vmatpush3.msra.mxu0 %v7862_v43  ;;  %4898 = vmatpush3.msra.mxu1 %v7807_v37  ;;  %v7868_v37 = vld [vmem:[#allocation22_spill] sm:$0xff] }
  0xaf   :  { %4821 = vmatprep.subr.mxu0 %v7864_v41  ;;  %4785 = vmatprep.mubr.f32.mxu1 %v441_v63  ;;  %v7870_v63 = vld [vmem:[#allocation24_spill] sm:$0xff] }
  0xb0   :  { %4822 = vmatpush3.msra.mxu0 %v7864_v41  ;;  %4823 = vmatprep.mubr.f32.mxu0 %v7865_v59 }
  0xb1   :  { %4786 = vmatmul.mubr.f32.gmra.mxu1 %v451_v56  ;;  %4824 = vmatmul.mubr.f32.vlgmr.msra.gmra.mxu0 %v7866_v7  ;;  %v7871_v56 = vld [vmem:[#allocation30_spill] sm:$0xff] }
  0xb2   :  { %4899 = vmatprep.subr.mxu1 %v7810_v60  ;;  %4788 = vmatprep.mubr.f32.mxu1 %v7867_v8 }
  0xb3   :  { %4900 = vmatpush3.msra.mxu1 %v7810_v60  ;;  %4826 = vmatprep.mubr.f32.mxu0 %v7868_v37  ;;  %v7874_v60 = vld [vmem:[#allocation37_spill] sm:$0xff] }
  0xb4   :  { %4901 = vmatprep.subr.mxu1 %v7812_v42  ;;  %4951 = vmatprep.subr.mxu0 %v6127_v9 }
  0xb5   :  { %4789 = vmatmul.mubr.f32.gmra.mxu1 %v7869_v14  ;;  %4827 = vmatmul.mubr.f32.gmra.mxu0 %v7870_v63 }
  0xb6   :  { %4902 = vmatpush3.msra.mxu1 %v7812_v42  ;;  %4829 = vmatprep.mubr.f32.mxu0 %v7871_v56  ;;  %v7876_v42 = vld [vmem:[#allocation41_spill] sm:$0xff] }
  0xb7   :  { %4903 = vmatprep.mubr.f32.mxu1 %v7865_v59  ;;  %4952 = vmatpush3.msra.mxu0 %v6127_v9 }
  0xb8   :  { %5003 = vmatprep.subr.mxu1 %v2569_v1 }
  0xb9   :  { %4830 = vmatmul.mubr.f32.gmra.mxu0 %v7872_v47  ;;  %4904 = vmatmul.mubr.f32.vlgmr.msra.gmra.mxu1 %v7866_v7 }
  0xba   :  { %4832 = vmatprep.mubr.f32.mxu0 %v7873_v57  ;;  %4906 = vmatprep.mubr.f32.mxu1 %v7868_v37 }
  0xbb   :  { %5004 = vmatpush3.msra.mxu1 %v2569_v1 }
  0xbd   :  { %4833 = vmatmul.mubr.f32.gmra.mxu0 %v7874_v60  ;;  %4907 = vmatmul.mubr.f32.gmra.mxu1 %v7870_v63 }
  0xbe   :  { %4835 = vmatprep.mubr.f32.mxu0 %v7875_v33  ;;  %4909 = vmatprep.mubr.f32.mxu1 %v7871_v56 }
  0xc1   :  { %4836 = vmatmul.mubr.f32.gmra.mxu0 %v7876_v42  ;;  %4910 = vmatmul.mubr.f32.gmra.mxu1 %v7872_v47 }
  0xc2   :  { %4838 = vmatprep.mubr.f32.mxu0 %v7877_v23  ;;  %4912 = vmatprep.mubr.f32.mxu1 %v7873_v57 }
  0xc5   :  { %4839 = vmatmul.mubr.f32.gmra.mxu0 %v7878_v5  ;;  %4913 = vmatmul.mubr.f32.gmra.mxu1 %v7874_v60 }
  0xc6   :  { %4841 = vmatprep.mubr.f32.mxu0 %v7879_v32  ;;  %4915 = vmatprep.mubr.f32.mxu1 %v7875_v33 }
  0xc9   :  { %4842 = vmatmul.mubr.f32.gmra.mxu0 %v7880_v28  ;;  %4916 = vmatmul.mubr.f32.gmra.mxu1 %v7876_v42 }
  0xca   :  { %4844 = vmatprep.mubr.f32.mxu0 %v7881_v54  ;;  %4918 = vmatprep.mubr.f32.mxu1 %v7877_v23 }
  0xcd   :  { %4845 = vmatmul.mubr.f32.gmra.mxu0 %v7883_v62  ;;  %4919 = vmatmul.mubr.f32.gmra.mxu1 %v7878_v5 }
  0xce   :  { %4847 = vmatprep.mubr.f32.mxu0 %v5684_v2  ;;  %4921 = vmatprep.mubr.f32.mxu1 %v7879_v32 }
  0xd1   :  { %4848 = vmatmul.mubr.f32.gmra.mxu0 %v7886_v12  ;;  %4922 = vmatmul.mubr.f32.gmra.mxu1 %v7880_v28 }
  0xd2   :  { %4850 = vmatprep.mubr.f32.mxu0 %v5708_v35  ;;  %4924 = vmatprep.mubr.f32.mxu1 %v7881_v54 }
  0xd5   :  { %4851 = vmatmul.mubr.f32.gmra.mxu0 %v5720_v31  ;;  %4925 = vmatmul.mubr.f32.gmra.mxu1 %v7883_v62 }
  0xd6   :  { %4853 = vmatprep.mubr.f32.mxu0 %v5732_v39  ;;  %4927 = vmatprep.mubr.f32.mxu1 %v5684_v2 }
  0xd9   :  { %4854 = vmatmul.mubr.f32.gmra.mxu0 %v5744_v52  ;;  %4928 = vmatmul.mubr.f32.gmra.mxu1 %v7886_v12 }
  0xda   :  { %4856 = vmatprep.mubr.f32.mxu0 %v5748_v19  ;;  %4930 = vmatprep.mubr.f32.mxu1 %v5708_v35 }
  0xdd   :  { %4857 = vmatmul.mubr.f32.gmra.mxu0 %v5760_v6  ;;  %4931 = vmatmul.mubr.f32.gmra.mxu1 %v5720_v31 }
  0xde   :  { %4859 = vmatprep.mubr.f32.mxu0 %v5780_v58  ;;  %4933 = vmatprep.mubr.f32.mxu1 %v5732_v39 }
  0xe1   :  { %4860 = vmatmul.mubr.f32.gmra.mxu0 %v5792_v51  ;;  %4934 = vmatmul.mubr.f32.gmra.mxu1 %v5744_v52  ;;  %v60_v52 = vld [vmem:[%s7561_s2] sm:$0xff] }
  0xe2   :  { %4862 = vmatprep.mubr.f32.mxu0 %v5804_v49  ;;  %4936 = vmatprep.mubr.f32.mxu1 %v5748_v19  ;;  %v6174_v35 = vand.u32 4294901760, %v60_v52 }
  0xe4   :  { %7887 = vst [vmem:[#allocation18_spill] sm:$0xff] %v6174_v35  ;;  %4953 = vmatprep.subr.mxu0 %v6174_v35 }
  0xe5   :  { %4863 = vmatmul.mubr.f32.gmra.mxu0 %v5816_v18  ;;  %4937 = vmatmul.mubr.f32.gmra.mxu1 %v5760_v6  ;;  %v6179_v6 = vsub.f32 %v60_v52, %v6174_v35 }
  0xe6   :  { %4865 = vmatprep.mubr.f32.mxu0 %v5828_v44  ;;  %4939 = vmatprep.mubr.f32.mxu1 %v5780_v58 }
  0xe7   :  { %7888 = vst [vmem:[#allocation19_spill] sm:$0xff] %v6179_v6  ;;  %4954 = vmatpush3.msra.mxu0 %v6174_v35  ;;  %v6185_v2 = vand.u32 4294901760, %v6179_v6 }
  0xe8   :  { %5055 = vmatprep.subr.mxu0 %v6132_v25 }
  0xe9   :  { %4866 = vmatmul.mubr.f32.gmra.mxu0 %v5840_v22  ;;  %4940 = vmatmul.mubr.f32.gmra.mxu1 %v5792_v51  ;;  %7889 = vst [vmem:[#allocation21_spill] sm:$0xff] %v6185_v2  ;;  %v2575_v39 = vsub.f32 %v6179_v6, %v6185_v2 }
  0xea   :  { %4868 = vmatprep.mubr.f32.mxu0 %v5852_v17  ;;  %4942 = vmatprep.mubr.f32.mxu1 %v5804_v49 }
  0xed   :  { %4869 = vmatmul.mubr.f32.gmra.mxu0 %v5864_v53  ;;  %4943 = vmatmul.mubr.f32.gmra.mxu1 %v5816_v18 }
  0xee   :  { %4945 = vmatprep.mubr.f32.mxu1 %v5828_v44  ;;  %v2576_v44 = vand.u32 4294901760, %v2575_v39 }
  0xf0   :  { %v4505_v31 = vpop.f32.mrf.mxu0  ;;  %5005 = vmatprep.subr.mxu1 %v2576_v44 }
  0xf1   :  { %4946 = vmatmul.mubr.f32.gmra.mxu1 %v5840_v22 }
  0xf2   :  { %v6191_v18 = vpop.f32.mrf.mxu0  ;;  %4948 = vmatprep.mubr.f32.mxu1 %v5852_v17  ;;  %5006 = vmatpush3.msra.mxu1 %v2576_v44 }
  0xf3   :  { %5107 = vmatprep.subr.mxu1 %v6127_v9 }
  0xf4   :  { %v4508_v51 = vpop.f32.mrf.mxu0 }
  0xf5   :  { %4949 = vmatmul.mubr.f32.gmra.mxu1 %v5864_v53 }
  0xf6   :  { %v6195_v19 = vpop.f32.mrf.mxu0 }
  0xf8   :  { %v4511_v49 = vpop.f32.mrf.mxu0 }
  0xf9   :  { %v4585_v58 = vpop.f32.mrf.mxu1 }
  0xfa   :  { %v6198_v22 = vadd.f32 %v4585_v58, %v4505_v31  ;;  %v6200_v11 = vpop.f32.mrf.mxu0 }
  0xfb   :  { %v6202_v50 = vpop.f32.mrf.mxu1 }
  0xfc   :  { %v4514_v15 = vpop.f32.mrf.mxu0 }
  0xfd   :  { %v4588_v17 = vpop.f32.mrf.mxu1 }
  0xfe   :  { %v6204_v38 = vadd.f32 %v4588_v17, %v4508_v51  ;;  %v6206_v16 = vpop.f32.mrf.mxu0 }
  0xff   :  { %v6208_v53 = vpop.f32.mrf.mxu1 }
 0x100   :  { %v4517_v3 = vpop.f32.mrf.mxu0 }
 0x101   :  { %v4591_v20 = vpop.f32.mrf.mxu1 }
 0x102   :  { %v6210_v55 = vadd.f32 %v4591_v20, %v4511_v49  ;;  %v6212_v24 = vpop.f32.mrf.mxu0 }
 0x103   :  { %v6214_v13 = vpop.f32.mrf.mxu1 }
 0x104   :  { %v4520_v46 = vpop.f32.mrf.mxu0 }
 0x105   :  { %v4594_v27 = vpop.f32.mrf.mxu1 }
 0x106   :  { %v6216_v40 = vadd.f32 %v4594_v27, %v4514_v15  ;;  %v6218_v4 = vpop.f32.mrf.mxu0 }
 0x107   :  { %v6220_v34 = vpop.f32.mrf.mxu1 }
 0x108   :  { %v4523_v61 = vpop.f32.mrf.mxu0 }
 0x109   :  { %v4597_v36 = vpop.f32.mrf.mxu1 }
 0x10a   :  { %v6222_v45 = vadd.f32 %v4597_v36, %v4517_v3  ;;  %v6224_v30 = vpop.f32.mrf.mxu0 }
 0x10b   :  { %v6226_v29 = vpop.f32.mrf.mxu1 }
 0x10c   :  { %v4526_v48 = vpop.f32.mrf.mxu0 }
 0x10d   :  { %v4600_v43 = vpop.f32.mrf.mxu1 }
 0x10e   :  { %v6228_v26 = vadd.f32 %v4600_v43, %v4520_v46  ;;  %v6230_v41 = vpop.f32.mrf.mxu0 }
 0x10f   :  { %v6232_v59 = vpop.f32.mrf.mxu1 }
 0x110   :  { %7890 = vst [vmem:[#allocation23_spill] sm:$0xff] %v6228_v26  ;;  %v4529_v7 = vpop.f32.mrf.mxu0 }
 0x111   :  { %v4603_v8 = vpop.f32.mrf.mxu1 }
 0x112   :  { %v6234_v37 = vadd.f32 %v4603_v8, %v4523_v61  ;;  %v6236_v14 = vpop.f32.mrf.mxu0 }
 0x113   :  { %v6238_v63 = vpop.f32.mrf.mxu1 }
 0x114   :  { %7891 = vst [vmem:[#allocation26_spill] sm:$0xff] %v6234_v37  ;;  %v4532_v56 = vpop.f32.mrf.mxu0 }
 0x115   :  { %v4606_v47 = vpop.f32.mrf.mxu1 }
 0x116   :  { %v6240_v57 = vadd.f32 %v4606_v47, %v4526_v48  ;;  %v6242_v60 = vpop.f32.mrf.mxu0 }
 0x117   :  { %v6244_v33 = vpop.f32.mrf.mxu1 }
 0x118   :  { %7892 = vst [vmem:[#allocation27_spill] sm:$0xff] %v6240_v57  ;;  %v4535_v42 = vpop.f32.mrf.mxu0 }
 0x119   :  { %v4609_v23 = vpop.f32.mrf.mxu1 }
 0x11a   :  { %v6246_v5 = vadd.f32 %v4609_v23, %v4529_v7  ;;  %v6248_v32 = vpop.f32.mrf.mxu0 }
 0x11b   :  { %v6250_v28 = vpop.f32.mrf.mxu1 }
 0x11c   :  { %7893 = vst [vmem:[#allocation5_spill] sm:$0xff] %v6246_v5  ;;  %v4538_v54 = vpop.f32.mrf.mxu0 }
 0x11d   :  { %v4612_v0 = vpop.f32.mrf.mxu1 }
 0x11e   :  { %v6252_v62 = vadd.f32 %v4612_v0, %v4532_v56  ;;  %v6254_v12 = vpop.f32.mrf.mxu0 }
 0x11f   :  { %v6256_v21 = vpop.f32.mrf.mxu1 }
 0x120   :  { %7894 = vst [vmem:[#allocation29_spill] sm:$0xff] %v6252_v62  ;;  %v4541_v1 = vpop.f32.mrf.mxu0 }
 0x121   :  { %v4615_v52 = vpop.f32.mrf.mxu1 }
 0x122   :  { %v6258_v31 = vadd.f32 %v4615_v52, %v4535_v42  ;;  %v6260_v39 = vpop.f32.mrf.mxu0 }
 0x123   :  { %v6262_v44 = vpop.f32.mrf.mxu1 }
 0x124   :  { %7895 = vst [vmem:[#allocation34_spill] sm:$0xff] %v6258_v31  ;;  %v4544_v51 = vpop.f32.mrf.mxu0 }
 0x125   :  { %v4618_v49 = vpop.f32.mrf.mxu1 }
 0x126   :  { %v6264_v58 = vadd.f32 %v4618_v49, %v4538_v54  ;;  %v6266_v15 = vpop.f32.mrf.mxu0 }
 0x127   :  { %v6268_v17 = vpop.f32.mrf.mxu1 }
 0x128   :  { %7896 = vst [vmem:[#allocation6_spill] sm:$0xff] %v6264_v58  ;;  %v4547_v3 = vpop.f32.mrf.mxu0 }
 0x129   :  { %v4621_v20 = vpop.f32.mrf.mxu1 }
 0x12a   :  { %v6270_v46 = vadd.f32 %v4621_v20, %v4541_v1  ;;  %v6272_v27 = vpop.f32.mrf.mxu0 }
 0x12b   :  { %v6274_v61 = vpop.f32.mrf.mxu1 }
 0x12c   :  { %7897 = vst [vmem:[#allocation7_spill] sm:$0xff] %v6270_v46  ;;  %v4550_v36 = vpop.f32.mrf.mxu0 }
 0x12d   :  { %v4624_v48 = vpop.f32.mrf.mxu1 }
 0x12e   :  { %v6276_v43 = vadd.f32 %v4624_v48, %v4544_v51  ;;  %v6278_v7 = vpop.f32.mrf.mxu0 }
 0x12f   :  { %v6280_v8 = vpop.f32.mrf.mxu1 }
 0x130   :  { %7898 = vst [vmem:[#allocation8_spill] sm:$0xff] %v6276_v43 }
 0x131   :  { %v4627_v56 = vpop.f32.mrf.mxu1  ;;  %v6282_v47 = vpop.f32.mrf.mxu0 }
 0x132   :  { %v6284_v42 = vadd.f32 %v4627_v56, %v4547_v3 }
 0x133   :  { %v6286_v23 = vpop.f32.mrf.mxu1  ;;  %v6288_v54 = vpop.f32.mrf.mxu0 }
 0x134   :  { %7899 = vst [vmem:[#allocation9_spill] sm:$0xff] %v6284_v42 }
 0x135   :  { %v4630_v0 = vpop.f32.mrf.mxu1  ;;  %v6290_v1 = vpop.f32.mrf.mxu0 }
 0x136   :  { %v6292_v52 = vadd.f32 %v4630_v0, %v4550_v36 }
 0x137   :  { %v6294_v51 = vpop.f32.mrf.mxu1  ;;  %v6296_v49 = vpop.f32.mrf.mxu0 }
 0x138   :  { %7900 = vst [vmem:[#allocation46_spill] sm:$0xff] %v6292_v52 }
 0x139   :  { %v6298_v20 = vpop.f32.mrf.mxu0  ;;  %v6300_v48 = vpop.f32.mrf.mxu1 }
 0x13b   :  { %v6302_v2 = vpop.f32.mrf.mxu0  ;;  %v6304_v3 = vpop.f32.mrf.mxu1 }
 0x13d   :  { %v6306_v56 = vpop.f32.mrf.mxu0  ;;  %v6308_v10 = vpop.f32.mrf.mxu1 }
 0x13f   :  { %v6310_v6 = vpop.f32.mrf.mxu0  ;;  %v6312_v36 = vpop.f32.mrf.mxu1 }
 0x141   :  { %v6314_v0 = vpop.f32.mrf.mxu0  ;;  %v6316_v25 = vpop.f32.mrf.mxu1 }
 0x143   :  { %v6318_v35 = vpop.f32.mrf.mxu0  ;;  %v6320_v9 = vpop.f32.mrf.mxu1 }
 0x145   :  { %v6322_v52 = vpop.f32.mrf.mxu0  ;;  %v6324_v42 = vpop.f32.mrf.mxu1 }
 0x146   :  { %7901 = vst [vmem:[#allocation10_spill] sm:$0xff] %v6322_v52  ;;  %7902 = vst [vmem:[#allocation48_spill] sm:$0xff] %v6324_v42 }
 0x147   :  { %v6326_v43 = vpop.f32.mrf.mxu0  ;;  %v6328_v46 = vpop.f32.mrf.mxu1 }
 0x148   :  { %7903 = vst [vmem:[#allocation50_spill] sm:$0xff] %v6326_v43  ;;  %7904 = vst [vmem:[#allocation11_spill] sm:$0xff] %v6328_v46 }
 0x149   :  { %v6330_v58 = vpop.f32.mrf.mxu0  ;;  %v6332_v31 = vpop.f32.mrf.mxu1 }
 0x14a   :  { %7905 = vst [vmem:[#allocation12_spill] sm:$0xff] %v6330_v58  ;;  %7906 = vst [vmem:[#allocation52_spill] sm:$0xff] %v6332_v31 }
 0x14b   :  { %v6334_v62 = vpop.f32.mrf.mxu0  ;;  %v6336_v5 = vpop.f32.mrf.mxu1 }
 0x14c   :  { %7907 = vst [vmem:[#allocation14_spill] sm:$0xff] %v6334_v62  ;;  %7908 = vst [vmem:[#allocation53_spill] sm:$0xff] %v6336_v5 }
 0x14d   :  { %v6338_v57 = vpop.f32.mrf.mxu0  ;;  %v6340_v37 = vpop.f32.mrf.mxu1 }
 0x14e   :  { %7909 = vst [vmem:[#allocation17_spill] sm:$0xff] %v6338_v57  ;;  %7910 = vst [vmem:[#allocation54_spill] sm:$0xff] %v6340_v37 }
 0x14f   :  { %v6342_v26 = vpop.f32.mrf.mxu0  ;;  %v6344_v52 = vpop.f32.mrf.mxu1 }
 0x150   :  { %7911 = vst [vmem:[#allocation20_spill] sm:$0xff] %v6342_v26  ;;  %7912 = vst [vmem:[#allocation25_spill] sm:$0xff] %v6344_v52 }
 0x151   :  { %v6346_v42 = vpop.f32.mrf.mxu0  ;;  %v6348_v43 = vpop.f32.mrf.mxu1 }
 0x152   :  { %7913 = vst [vmem:[#allocation31_spill] sm:$0xff] %v6346_v42  ;;  %7914 = vst [vmem:[#allocation36_spill] sm:$0xff] %v6348_v43 }
 0x153   :  { %v6350_v46 = vpop.f32.mrf.mxu0  ;;  %v6352_v58 = vpop.f32.mrf.mxu1 }
 0x154   :  { %7915 = vst [vmem:[#allocation38_spill] sm:$0xff] %v6350_v46  ;;  %7916 = vst [vmem:[#allocation40_spill] sm:$0xff] %v6352_v58 }
 0x155   :  { %v6354_v31 = vpop.f32.mrf.mxu0  ;;  %v6356_v62 = vpop.f32.mrf.mxu1 }
 0x156   :  { %7917 = vst [vmem:[#allocation13_spill] sm:$0xff] %v6354_v31  ;;  %7918 = vst [vmem:[#allocation15_spill] sm:$0xff] %v6356_v62 }
 0x157   :  { %v6358_v5 = vpop.f32.mrf.mxu0  ;;  %v6360_v57 = vpop.f32.mrf.mxu1 }
 0x158   :  { %7919 = vst [vmem:[#allocation22_spill] sm:$0xff] %v6358_v5  ;;  %7920 = vst [vmem:[#allocation24_spill] sm:$0xff] %v6360_v57 }
 0x159   :  { %v6362_v37 = vpop.f32.mrf.mxu0  ;;  %v6364_v26 = vpop.f32.mrf.mxu1 }
 0x15a   :  { %7921 = vst [vmem:[#allocation30_spill] sm:$0xff] %v6362_v37  ;;  %7922 = vst [vmem:[#allocation33_spill] sm:$0xff] %v6364_v26 }
 0x15b   :  { %v6366_v52 = vpop.f32.mrf.mxu0  ;;  %v6368_v42 = vpop.f32.mrf.mxu1 }
 0x15c   :  { %7923 = vst [vmem:[#allocation35_spill] sm:$0xff] %v6366_v52  ;;  %7924 = vst [vmem:[#allocation37_spill] sm:$0xff] %v6368_v42 }
 0x15d   :  { %v6370_v43 = vpop.f32.mrf.mxu0  ;;  %v6372_v46 = vpop.f32.mrf.mxu1 }
 0x15e   :  { %7925 = vst [vmem:[#allocation39_spill] sm:$0xff] %v6370_v43  ;;  %7926 = vst [vmem:[#allocation41_spill] sm:$0xff] %v6372_v46 }
 0x15f   :  { %v6374_v58 = vpop.f32.mrf.mxu0  ;;  %v6376_v31 = vpop.f32.mrf.mxu1 }
 0x160   :  { %7927 = vst [vmem:[#allocation42_spill] sm:$0xff] %v6374_v58 }
 0x161   :  { %v6378_v62 = vpop.f32.mrf.mxu0  ;;  %v6380_v5 = vpop.f32.mrf.mxu1 }
 0x162   :  { %7928 = vst [vmem:[#allocation43_spill] sm:$0xff] %v6378_v62  ;;  %v627_v62 = vadd.f32 %v6202_v50, %v6191_v18  ;;  %v711_v18 = vadd.f32 %v6244_v33, %v6230_v41 }
 0x163   :  { %v6382_v57 = vpop.f32.mrf.mxu0  ;;  %v6384_v37 = vpop.f32.mrf.mxu1 }
 0x164   :  { %7929 = vst [vmem:[#allocation44_spill] sm:$0xff] %v6382_v57  ;;  %7930 = vst [vmem:[#allocation45_spill] sm:$0xff] %v6384_v37  ;;  %v639_v57 = vadd.f32 %v6208_v53, %v6195_v19  ;;  %v651_v37 = vadd.f32 %v6214_v13, %v6200_v11  ;;  %v723_v11 = vadd.f32 %v6250_v28, %v6236_v14 }
 0x165   :  { %v6386_v26 = vpop.f32.mrf.mxu0  ;;  %v6388_v52 = vpop.f32.mrf.mxu1  ;;  %v747_v53 = vadd.f32 %v6262_v44, %v6248_v32  ;;  %v6428_v13 = vadd.f32 %v6274_v61, %v6260_v39  ;;  %v938_v14 = vadd.f32 %v6290_v1, %v6204_v38  ;;  %v966_v38 = vadd.f32 %v6306_v56, %v6216_v40  ;;  %v7947_v56 = vld [vmem:[#allocation54_spill] sm:$0xff] }
 0x166   :  { %7931 = vst [vmem:[#allocation47_spill] sm:$0xff] %v6388_v52  ;;  %v663_v52 = vadd.f32 %v6220_v34, %v6206_v16  ;;  %v735_v16 = vadd.f32 %v6256_v21, %v6242_v60  ;;  %v924_v34 = vadd.f32 %v6282_v47, %v6198_v22  ;;  %v931_v60 = vadd.f32 %v6296_v49, %v639_v57  ;;  %v7940_v47 = vld [vmem:[#allocation26_spill] sm:$0xff] }
 0x167   :  { %v6390_v42 = vpop.f32.mrf.mxu0  ;;  %v6392_v43 = vpop.f32.mrf.mxu1  ;;  %v952_v22 = vadd.f32 %v6298_v20, %v6210_v55  ;;  %v945_v32 = vadd.f32 %v6302_v2, %v651_v37  ;;  %v1247_v21 = vadd.f32 %v6308_v10, %v938_v14  ;;  %v980_v55 = vadd.f32 %v6314_v0, %v6222_v45  ;;  %v7935_v10 = vld [vmem:[#allocation23_spill] sm:$0xff]  ;;  %v7948_v0 = vld [vmem:[#allocation20_spill] sm:$0xff] }
 0x168   :  { %7932 = vst [vmem:[#allocation49_spill] sm:$0xff] %v6390_v42  ;;  %v675_v42 = vadd.f32 %v6226_v29, %v6212_v24  ;;  %v759_v24 = vadd.f32 %v6268_v17, %v6254_v12  ;;  %v1231_v33 = vadd.f32 %v6300_v48, %v924_v34  ;;  %v959_v57 = vadd.f32 %v6310_v6, %v663_v52  ;;  %v7936_v6 = vld [vmem:[#allocation10_spill] sm:$0xff]  ;;  %v7944_v52 = vld [vmem:[#allocation53_spill] sm:$0xff]  ;;  %v7945_v48 = vld [vmem:[#allocation27_spill] sm:$0xff] }
 0x169   :  { %v6394_v46 = vpop.f32.mrf.mxu0  ;;  %v6396_v58 = vpop.f32.mrf.mxu1  ;;  %v6466_v39 = vadd.f32 %v6312_v36, %v931_v60  ;;  %v6471_v2 = vadd.f32 %v6316_v25, %v952_v22  ;;  %v6475_v44 = vadd.f32 %v6320_v9, %v945_v32  ;;  %v994_v17 = vadd.f32 %v7936_v6, %v7935_v10  ;;  %v7942_v9 = vld [vmem:[#allocation52_spill] sm:$0xff]  ;;  %v7950_v60 = vld [vmem:[#allocation5_spill] sm:$0xff]  ;;  %v7951_v22 = vld [vmem:[#allocation31_spill] sm:$0xff] }
 0x16a   :  { %7933 = vst [vmem:[#allocation51_spill] sm:$0xff] %v6394_v46  ;;  %7934 = vst [vmem:[#allocation55_spill] sm:$0xff] %v6396_v58  ;;  %v687_v46 = vadd.f32 %v6232_v59, %v6218_v4  ;;  %v699_v58 = vadd.f32 %v6238_v63, %v6224_v30  ;;  %v6432_v4 = vadd.f32 %v6280_v8, %v6266_v15  ;;  %v7939_v8 = vld [vmem:[#allocation11_spill] sm:$0xff]  ;;  %v7952_v32 = vld [vmem:[#allocation36_spill] sm:$0xff] }
 0x16b   :  { %v6414_v50 = vpop.f32.mrf.mxu0  ;;  %v6416_v19 = vpop.f32.mrf.mxu1  ;;  %v917_v30 = vadd.f32 %v6288_v54, %v627_v62  ;;  %v6443_v59 = vadd.f32 %v6286_v23, %v6272_v27  ;;  %v6449_v63 = vadd.f32 %v6294_v51, %v6278_v7  ;;  %v973_v37 = vadd.f32 %v6318_v35, %v675_v42  ;;  %v7937_v27 = vld [vmem:[#allocation48_spill] sm:$0xff]  ;;  %v7938_v7 = vld [vmem:[#allocation50_spill] sm:$0xff] }
 0x16c   :  { %v6482_v61 = vadd.f32 %v7937_v27, %v966_v38  ;;  %v987_v45 = vadd.f32 %v7938_v7, %v687_v46  ;;  %v6486_v25 = vadd.f32 %v7939_v8, %v959_v57  ;;  %v7941_v35 = vld [vmem:[#allocation12_spill] sm:$0xff]  ;;  %v6491_v23 = vadd.f32 %v7942_v9, %v980_v55  ;;  %v7943_v54 = vld [vmem:[#allocation14_spill] sm:$0xff]  ;;  %v7955_v27 = vld [vmem:[#allocation29_spill] sm:$0xff] }
 0x16d   :  { %v6437_v29 = vpop.f32.mrf.mxu0  ;;  %v6439_v41 = vpop.f32.mrf.mxu1  ;;  %v1223_v28 = vadd.f32 %v6304_v3, %v917_v30  ;;  %v1008_v42 = vadd.f32 %v7941_v35, %v7940_v47  ;;  %v1001_v1 = vadd.f32 %v7943_v54, %v699_v58  ;;  %v6495_v51 = vadd.f32 %v7944_v52, %v973_v37  ;;  %v7946_v3 = vld [vmem:[#allocation17_spill] sm:$0xff]  ;;  %v7953_v57 = vld [vmem:[#allocation38_spill] sm:$0xff]  ;;  %v7954_v37 = vld [vmem:[#allocation40_spill] sm:$0xff] }
 0x16e   :  { %v1022_v46 = vadd.f32 %v7946_v3, %v7945_v48  ;;  %v6502_v36 = vadd.f32 %v7947_v56, %v994_v17  ;;  %v1015_v34 = vadd.f32 %v7948_v0, %v711_v18  ;;  %v7949_v30 = vld [vmem:[#allocation25_spill] sm:$0xff]  ;;  %v1036_v58 = vadd.f32 %v7951_v22, %v7950_v60  ;;  %v7957_v8 = vld [vmem:[#allocation15_spill] sm:$0xff]  ;;  %v7958_v47 = vld [vmem:[#allocation22_spill] sm:$0xff] }
 0x16f   :  { %v6457_v62 = vpop.f32.mrf.mxu0  ;;  %v6459_v12 = vpop.f32.mrf.mxu1  ;;  %v6506_v14 = vadd.f32 %v7949_v30, %v987_v45  ;;  %v6511_v38 = vadd.f32 %v7952_v32, %v1008_v42  ;;  %v1029_v55 = vadd.f32 %v7953_v57, %v723_v11  ;;  %v6515_v10 = vadd.f32 %v7954_v37, %v1001_v1  ;;  %v7956_v7 = vld [vmem:[#allocation13_spill] sm:$0xff]  ;;  %v7959_v9 = vld [vmem:[#allocation24_spill] sm:$0xff]  ;;  %v7960_v42 = vld [vmem:[#allocation34_spill] sm:$0xff] }
 0x170   :  { %v1050_v18 = vadd.f32 %v7956_v7, %v7955_v27  ;;  %v6522_v45 = vadd.f32 %v7957_v8, %v1022_v46  ;;  %v1043_v35 = vadd.f32 %v7958_v47, %v735_v16  ;;  %v6526_v54 = vadd.f32 %v7959_v9, %v1015_v34  ;;  %v7961_v52 = vld [vmem:[#allocation30_spill] sm:$0xff]  ;;  %v7962_v48 = vld [vmem:[#allocation33_spill] sm:$0xff]  ;;  %v7963_v3 = vld [vmem:[#allocation35_spill] sm:$0xff] }
 0x171   :  { %v6477_v15 = vpop.f32.mrf.mxu1  ;;  %v4825_v40 = vpop.f32.mrf.mxu0  ;;  %v1064_v11 = vadd.f32 %v7961_v52, %v7960_v42  ;;  %v6531_v1 = vadd.f32 %v7962_v48, %v1036_v58  ;;  %v1057_v56 = vadd.f32 %v7963_v3, %v747_v53  ;;  %v7964_v0 = vld [vmem:[#allocation37_spill] sm:$0xff]  ;;  %v7965_v46 = vld [vmem:[#allocation6_spill] sm:$0xff]  ;;  %v7966_v32 = vld [vmem:[#allocation39_spill] sm:$0xff] }
 0x172   :  { %v6535_v30 = vadd.f32 %v7964_v0, %v1029_v55  ;;  %v1078_v57 = vadd.f32 %v7966_v32, %v7965_v46  ;;  %v7967_v16 = vld [vmem:[#allocation41_spill] sm:$0xff]  ;;  %v7968_v34 = vld [vmem:[#allocation42_spill] sm:$0xff]  ;;  %v1596_v7 = vadd.f32 %v4825_v40, %v1231_v33  ;;  %v6544_v8 = vadd.f32 %v6376_v31, %v1043_v35  ;;  %v7969_v58 = vld [vmem:[#allocation7_spill] sm:$0xff] }
 0x173   :  { %v6497_v49 = vpop.f32.mrf.mxu1  ;;  %v1589_v20 = vpop.f32.mrf.mxu0  ;;  %v6540_v37 = vadd.f32 %v7967_v16, %v1050_v18  ;;  %v1071_v27 = vadd.f32 %v7968_v34, %v759_v24  ;;  %v7970_v47 = vld [vmem:[#allocation43_spill] sm:$0xff]  ;;  %v6549_v55 = vadd.f32 %v6380_v5, %v1064_v11  ;;  %v7971_v9 = vld [vmem:[#allocation44_spill] sm:$0xff]  ;;  %v7972_v3 = vld [vmem:[#allocation45_spill] sm:$0xff] }
 0x174   :  { %v1092_v53 = vadd.f32 %v7970_v47, %v7969_v58  ;;  %v1085_v42 = vadd.f32 %v7971_v9, %v6428_v13  ;;  %v6554_v18 = vadd.f32 %v7972_v3, %v1057_v56  ;;  %v7973_v0 = vld [vmem:[#allocation8_spill] sm:$0xff]  ;;  %v1590_v33 = vadd.f32 %v1589_v20, %v1223_v28  ;;  %v7974_v40 = vld [vmem:[#allocation47_spill] sm:$0xff]  ;;  %v7975_v46 = vld [vmem:[#allocation49_spill] sm:$0xff] }
 0x175   :  { %v6517_v6 = vpop.f32.mrf.mxu1  ;;  %v4828_v17 = vpop.f32.mrf.mxu0  ;;  %v1106_v24 = vadd.f32 %v6386_v26, %v7973_v0  ;;  %v6559_v35 = vadd.f32 %v7974_v40, %v1078_v57  ;;  %v1099_v5 = vadd.f32 %v7975_v46, %v6432_v4  ;;  %v6564_v11 = vadd.f32 %v6392_v43, %v1071_v27  ;;  %v7976_v13 = vld [vmem:[#allocation9_spill] sm:$0xff]  ;;  %v7977_v32 = vld [vmem:[#allocation51_spill] sm:$0xff]  ;;  %v7979_v43 = vld [vmem:[#allocation46_spill] sm:$0xff] }
 0x176   :  { %v1120_v16 = vadd.f32 %v7977_v32, %v7976_v13  ;;  %v7978_v58 = vld [vmem:[#allocation55_spill] sm:$0xff]  ;;  %v1608_v26 = vadd.f32 %v4828_v17, %v1247_v21  ;;  %v1113_v57 = vadd.f32 %v6414_v50, %v6443_v59  ;;  %v6575_v4 = vadd.f32 %v6416_v19, %v1085_v42 }
 0x177   :  { %v1462_v60 = vpop.f32.mrf.mxu1  ;;  %v1601_v22 = vpop.f32.mrf.mxu0  ;;  %v6569_v47 = vadd.f32 %v7978_v58, %v1092_v53  ;;  %v1134_v27 = vadd.f32 %v6437_v29, %v7979_v43  ;;  %v6582_v53 = vadd.f32 %v6439_v41, %v1106_v24  ;;  %v1127_v50 = vadd.f32 %v6457_v62, %v6449_v63 }
 0x178   :  { %v1602_v21 = vadd.f32 %v1601_v22, %v6466_v39  ;;  %v6589_v19 = vadd.f32 %v6459_v12, %v1099_v5  ;;  %v6597_v41 = vadd.f32 %v6477_v15, %v1120_v16  ;;  %v6602_v63 = vadd.f32 %v6497_v49, %v1113_v57 }
 0x179   :  { %v4831_v52 = vpop.f32.mrf.mxu0  ;;  %v4905_v48 = vpop.f32.mrf.mxu1  ;;  %v6612_v15 = vadd.f32 %v6517_v6, %v1134_v27  ;;  %v6617_v46 = vadd.f32 %v1462_v60, %v1127_v50  ;;  %v7980_v6 = vld [vmem:[#allocation16_spill] sm:$0xff] }
 0x17a   :  { %v1869_v31 = vadd.f32 %v4905_v48, %v1596_v7  ;;  %v1620_v39 = vadd.f32 %v4831_v52, %v6471_v2 }
 0x17b   :  { %v1613_v34 = vpop.f32.mrf.mxu0  ;;  %v1862_v56 = vpop.f32.mrf.mxu1 }
 0x17c   :  { %v2057_v28 = vsel %vm2052_vm0, %v1869_v31, 0  ;;  %v1863_v20 = vadd.f32 %v1862_v56, %v1590_v33  ;;  %v1614_v2 = vadd.f32 %v1613_v34, %v6475_v44 }
 0x17d   :  { %v6579_v7 = vand.u32 4294901760, %v2057_v28  ;;  %v4834_v9 = vpop.f32.mrf.mxu0  ;;  %v4908_v48 = vpop.f32.mrf.mxu1 }
 0x17e   :  { %v2054_v17 = vsel %vm2052_vm0, %v1863_v20, 0  ;;  %v1881_v3 = vadd.f32 %v4908_v48, %v1608_v26  ;;  %v1632_v34 = vadd.f32 %v4834_v9, %v6482_v61  ;;  %v7981_v26 = vld [vmem:[#allocation18_spill] sm:$0xff] }
 0x17f   :  { %v6592_v29 = vsub.f32 %v2057_v28, %v6579_v7  ;;  %v6594_v59 = vand.u32 4294901760, %v2054_v17  ;;  %v1625_v42 = vpop.f32.mrf.mxu0  ;;  %v1874_v0 = vpop.f32.mrf.mxu1 }
 0x180   :  { %v2063_v22 = vsel %vm2052_vm0, %v1881_v3, 0  ;;  %v1875_v24 = vadd.f32 %v1874_v0, %v1602_v21  ;;  %v1626_v28 = vadd.f32 %v1625_v42, %v6486_v25 }
 0x181   :  { %v7680_v62 = vand.u32 4294901760, %v6592_v29  ;;  %v6606_v12 = vsub.f32 %v2054_v17, %v6594_v59  ;;  %v6608_v33 = vand.u32 4294901760, %v2063_v22  ;;  %v4837_v31 = vpop.f32.mrf.mxu0  ;;  %v4911_v40 = vpop.f32.mrf.mxu1  ;;  %5007 = vmatprep.mubr.f32.mxu1 %v6594_v59 }
 0x182   :  { %v2060_v52 = vsel %vm2052_vm0, %v1875_v24, 0  ;;  %v1893_v49 = vadd.f32 %v4911_v40, %v1620_v39  ;;  %5008 = vmatmul.mubr.f32.vlgmr.msra.gmra.mxu1 %v6579_v7  ;;  %v1644_v9 = vadd.f32 %v4837_v31, %v6491_v23 }
 0x183   :  { %v6620_v5 = vsub.f32 %v2063_v22, %v6608_v33  ;;  %v6622_v13 = vand.u32 4294901760, %v2060_v52  ;;  %v1637_v32 = vpop.f32.mrf.mxu0  ;;  %v1886_v16 = vpop.f32.mrf.mxu1  ;;  %v7682_v56 = vand.u32 4294901760, %v6606_v12  ;;  %5108 = vmatpush3.msra.mxu1 %v7980_v6  ;;  %v2229_v44 = vsub.f32 %v6592_v29, %v7680_v62 }
 0x184   :  { %v2069_v60 = vsel %vm2052_vm0, %v1893_v49, 0  ;;  %v1887_v58 = vadd.f32 %v1886_v16, %v1614_v2  ;;  %5109 = vmatprep.subr.mxu1 %v7981_v26 }
 0x185   :  { %v6634_v20 = vsub.f32 %v2060_v52, %v6622_v13  ;;  %v6636_v57 = vand.u32 4294901760, %v2069_v60  ;;  %v4840_v43 = vpop.f32.mrf.mxu0  ;;  %v4914_v27 = vpop.f32.mrf.mxu1  ;;  %5010 = vmatprep.mubr.f32.mxu1 %v6622_v13  ;;  %v2219_v61 = vsub.f32 %v6606_v12, %v7682_v56  ;;  %5110 = vmatpush3.msra.mxu1 %v7981_v26  ;;  %v7677_v21 = vand.u32 4294901760, %v6620_v5 }
 0x186   :  { %v2066_v48 = vsel %vm2052_vm0, %v1887_v58, 0  ;;  %v1905_v25 = vadd.f32 %v4914_v27, %v1632_v34  ;;  %5011 = vmatmul.mubr.f32.gmra.mxu1 %v6608_v33  ;;  %5211 = vmatprep.subr.mxu1 %v7980_v6  ;;  %v2230_v23 = vand.u32 4294901760, %v2229_v44  ;;  %v1638_v34 = vadd.f32 %v1637_v32, %v6495_v51 }
 0x187   :  { %v6649_v17 = vsub.f32 %v2069_v60, %v6636_v57  ;;  %v6651_v3 = vand.u32 4294901760, %v2066_v48  ;;  %v1649_v50 = vpop.f32.mrf.mxu0  ;;  %v1898_v42 = vpop.f32.mrf.mxu1  ;;  %v2220_v0 = vand.u32 4294901760, %v2219_v61  ;;  %v7678_v39 = vand.u32 4294901760, %v6634_v20 }
 0x188   :  { %v2075_v22 = vsel %vm2052_vm0, %v1905_v25, 0  ;;  %v1899_v24 = vadd.f32 %v1898_v42, %v1626_v28  ;;  %v2249_v31 = vsub.f32 %v6620_v5, %v7677_v21  ;;  %v1656_v60 = vadd.f32 %v4840_v43, %v6502_v36  ;;  %v7982_v42 = vld [vmem:[#allocation28_spill] sm:$0xff] }
 0x189   :  { %v6659_v40 = vsub.f32 %v2066_v48, %v6651_v3  ;;  %v6661_v2 = vand.u32 4294901760, %v2075_v22  ;;  %v4843_v52 = vpop.f32.mrf.mxu0  ;;  %v4917_v49 = vpop.f32.mrf.mxu1  ;;  %4955 = vmatprep.mubr.f32.mxu0 %v2220_v0  ;;  %5013 = vmatprep.mubr.f32.mxu1 %v6651_v3  ;;  %v2239_v16 = vsub.f32 %v6634_v20, %v7678_v39  ;;  %v7676_v44 = vand.u32 4294901760, %v6649_v17 }
 0x18a   :  { %v2072_v58 = vsel %vm2052_vm0, %v1899_v24, 0  ;;  %v1917_v28 = vadd.f32 %v4917_v49, %v1644_v9  ;;  %4956 = vmatmul.mubr.f32.vlgmr.msra.gmra.mxu0 %v2230_v23  ;;  %5014 = vmatmul.mubr.f32.gmra.mxu1 %v6636_v57  ;;  %v2250_v43 = vand.u32 4294901760, %v2249_v31  ;;  %v7983_v23 = vld [vmem:[#allocation19_spill] sm:$0xff] }
 0x18b   :  { %v6673_v27 = vsub.f32 %v2075_v22, %v6661_v2  ;;  %v6675_v61 = vand.u32 4294901760, %v2072_v58  ;;  %v1661_v48 = vpop.f32.mrf.mxu0  ;;  %v1910_v25 = vpop.f32.mrf.mxu1  ;;  %5056 = vmatpush3.msra.mxu0 %v7982_v42  ;;  %v2240_v0 = vand.u32 4294901760, %v2239_v16  ;;  %v7679_v51 = vand.u32 4294901760, %v6659_v40 }
 0x18c   :  { %v2081_v36 = vsel %vm2052_vm0, %v1917_v28, 0  ;;  %v1911_v32 = vadd.f32 %v1910_v25, %v1638_v34  ;;  %v2269_v9 = vsub.f32 %v6649_v17, %v7676_v44  ;;  %5057 = vmatprep.subr.mxu0 %v7983_v23  ;;  %v1650_v34 = vadd.f32 %v1649_v50, %v6506_v14 }
 0x18d   :  { %v6685_v22 = vsub.f32 %v2072_v58, %v6675_v61  ;;  %v6687_v24 = vand.u32 4294901760, %v2081_v36  ;;  %v4846_v49 = vpop.f32.mrf.mxu0  ;;  %v4920_v42 = vpop.f32.mrf.mxu1  ;;  %4958 = vmatprep.mubr.f32.mxu0 %v2240_v0  ;;  %5016 = vmatprep.mubr.f32.mxu1 %v6675_v61  ;;  %v2259_v31 = vsub.f32 %v6659_v40, %v7679_v51  ;;  %v7681_v16 = vand.u32 4294901760, %v6673_v27 }
 0x18e   :  { %v1668_v28 = vadd.f32 %v4843_v52, %v6511_v38  ;;  %v2078_v58 = vsel %vm2052_vm0, %v1911_v32, 0  ;;  %v1929_v25 = vadd.f32 %v4920_v42, %v1656_v60  ;;  %4959 = vmatmul.mubr.f32.gmra.mxu0 %v2250_v43  ;;  %5017 = vmatmul.mubr.f32.gmra.mxu1 %v6661_v2  ;;  %v2270_v50 = vand.u32 4294901760, %v2269_v9  ;;  %v7985_v60 = vld [vmem:[#allocation32_spill] sm:$0xff] }
 0x18f   :  { %7984 = vst [vmem:[#allocation23_spill] sm:$0xff] %v6687_v24  ;;  %v6699_v0 = vsub.f32 %v2081_v36, %v6687_v24  ;;  %v6701_v44 = vand.u32 4294901760, %v2078_v58  ;;  %v1673_v21 = vpop.f32.mrf.mxu0  ;;  %v1922_v39 = vpop.f32.mrf.mxu1  ;;  %v2260_v51 = vand.u32 4294901760, %v2259_v31  ;;  %v7683_v62 = vand.u32 4294901760, %v6685_v22  ;;  %5058 = vmatpush3.msra.mxu0 %v7983_v23 }
 0x190   :  { %v2087_v14 = vsel %vm2052_vm0, %v1929_v25, 0  ;;  %v1923_v38 = vadd.f32 %v1922_v39, %v1650_v34  ;;  %v2289_v52 = vsub.f32 %v6673_v27, %v7681_v16  ;;  %5159 = vmatprep.subr.mxu0 %v7985_v60  ;;  %v1662_v23 = vadd.f32 %v1661_v48, %v6515_v10 }
 0x191   :  { %v6711_v36 = vsub.f32 %v2078_v58, %v6701_v44  ;;  %v6713_v32 = vand.u32 4294901760, %v2087_v14  ;;  %v4849_v43 = vpop.f32.mrf.mxu0  ;;  %v4923_v42 = vpop.f32.mrf.mxu1  ;;  %4961 = vmatprep.mubr.f32.mxu0 %v2260_v51  ;;  %5019 = vmatprep.mubr.f32.mxu1 %v6701_v44  ;;  %v2279_v39 = vsub.f32 %v6685_v22, %v7683_v62  ;;  %v1680_v31 = vadd.f32 %v4846_v49, %v6522_v45 }
 0x192   :  { %v2084_v34 = vsel %vm2052_vm0, %v1923_v38, 0  ;;  %v1941_v58 = vadd.f32 %v4923_v42, %v1668_v28  ;;  %4962 = vmatmul.mubr.f32.gmra.mxu0 %v2270_v50  ;;  %5020 = vmatmul.mubr.f32.gmra.mxu1 %v6687_v24  ;;  %v2290_v45 = vand.u32 4294901760, %v2289_v52  ;;  %v7988_v49 = vand.u32 4294901760, %v6699_v0 }
 0x193   :  { %7986 = vst [vmem:[#allocation10_spill] sm:$0xff] %v6713_v32  ;;  %v6725_v51 = vsub.f32 %v2087_v14, %v6713_v32  ;;  %v6727_v25 = vand.u32 4294901760, %v2084_v34  ;;  %v1685_v16 = vpop.f32.mrf.mxu0  ;;  %v1934_v56 = vpop.f32.mrf.mxu1  ;;  %v2280_v62 = vand.u32 4294901760, %v2279_v39  ;;  %v7688_v9 = vand.u32 4294901760, %v6711_v36 }
 0x194   :  { %v2093_v10 = vsel %vm2052_vm0, %v1941_v58, 0  ;;  %v1935_v48 = vadd.f32 %v1934_v56, %v1662_v23  ;;  %v2309_v28 = vsub.f32 %v6699_v0, %v7988_v49  ;;  %v1674_v52 = vadd.f32 %v1673_v21, %v6526_v54 }
 0x195   :  { %7987 = vst [vmem:[#allocation48_spill] sm:$0xff] %v6727_v25  ;;  %v6735_v38 = vsub.f32 %v2084_v34, %v6727_v25  ;;  %v6737_v14 = vand.u32 4294901760, %v2093_v10  ;;  %v4852_v50 = vpop.f32.mrf.mxu0  ;;  %v4926_v42 = vpop.f32.mrf.mxu1  ;;  %4964 = vmatprep.mubr.f32.mxu0 %v2280_v62  ;;  %5022 = vmatprep.mubr.f32.mxu1 %v6727_v25  ;;  %v2299_v39 = vsub.f32 %v6711_v36, %v7688_v9 }
 0x196   :  { %v1692_v23 = vadd.f32 %v4849_v43, %v6531_v1  ;;  %v2090_v34 = vsel %vm2052_vm0, %v1935_v48, 0  ;;  %v1953_v58 = vadd.f32 %v4926_v42, %v1680_v31  ;;  %4965 = vmatmul.mubr.f32.gmra.mxu0 %v2290_v45  ;;  %5023 = vmatmul.mubr.f32.gmra.mxu1 %v6713_v32  ;;  %v2310_v1 = vand.u32 4294901760, %v2309_v28 }
 0x197   :  { %7989 = vst [vmem:[#allocation50_spill] sm:$0xff] %v6737_v14  ;;  %v6749_v62 = vsub.f32 %v2093_v10, %v6737_v14  ;;  %v6751_v49 = vand.u32 4294901760, %v2090_v34  ;;  %v1697_v25 = vpop.f32.mrf.mxu0  ;;  %v1946_v24 = vpop.f32.mrf.mxu1  ;;  %v2300_v9 = vand.u32 4294901760, %v2299_v39  ;;  %v7693_v56 = vand.u32 4294901760, %v6735_v38 }
 0x198   :  { %v2099_v54 = vsel %vm2052_vm0, %v1953_v58, 0  ;;  %v1947_v21 = vadd.f32 %v1946_v24, %v1674_v52  ;;  %v7991_v43 = vand.u32 4294901760, %v6725_v51  ;;  %v1686_v28 = vadd.f32 %v1685_v16, %v6535_v30 }
 0x199   :  { %7990 = vst [vmem:[#allocation11_spill] sm:$0xff] %v6751_v49  ;;  %v6759_v48 = vsub.f32 %v2090_v34, %v6751_v49  ;;  %v6761_v10 = vand.u32 4294901760, %v2099_v54  ;;  %v4855_v45 = vpop.f32.mrf.mxu0  ;;  %v4929_v42 = vpop.f32.mrf.mxu1  ;;  %4967 = vmatprep.mubr.f32.mxu0 %v2300_v9  ;;  %5025 = vmatprep.mubr.f32.mxu1 %v6751_v49  ;;  %v2319_v39 = vsub.f32 %v6735_v38, %v7693_v56 }
 0x19a   :  { %v2329_v31 = vsub.f32 %v6725_v51, %v7991_v43  ;;  %v1704_v52 = vadd.f32 %v4852_v50, %v6540_v37  ;;  %v2096_v34 = vsel %vm2052_vm0, %v1947_v21, 0  ;;  %v1965_v58 = vadd.f32 %v4929_v42, %v1692_v23  ;;  %4968 = vmatmul.mubr.f32.gmra.mxu0 %v2310_v1  ;;  %5026 = vmatmul.mubr.f32.gmra.mxu1 %v6737_v14 }
 0x19b   :  { %7992 = vst [vmem:[#allocation26_spill] sm:$0xff] %v6761_v10  ;;  %v6773_v9 = vsub.f32 %v2099_v54, %v6761_v10  ;;  %v6775_v43 = vand.u32 4294901760, %v2096_v34  ;;  %v1709_v49 = vpop.f32.mrf.mxu0  ;;  %v1958_v32 = vpop.f32.mrf.mxu1  ;;  %v2320_v56 = vand.u32 4294901760, %v2319_v39  ;;  %v7698_v24 = vand.u32 4294901760, %v6759_v48 }
 0x19c   :  { %v2105_v30 = vsel %vm2052_vm0, %v1965_v58, 0  ;;  %v1959_v16 = vadd.f32 %v1958_v32, %v1686_v28  ;;  %v2330_v37 = vand.u32 4294901760, %v2329_v31  ;;  %v7994_v50 = vand.u32 4294901760, %v6749_v62 }
 0x19d   :  { %7993 = vst [vmem:[#allocation12_spill] sm:$0xff] %v6775_v43  ;;  %v6783_v21 = vsub.f32 %v2096_v34, %v6775_v43  ;;  %v6785_v54 = vand.u32 4294901760, %v2105_v30  ;;  %v4858_v1 = vpop.f32.mrf.mxu0  ;;  %v4932_v42 = vpop.f32.mrf.mxu1  ;;  %4970 = vmatprep.mubr.f32.mxu0 %v2320_v56  ;;  %5028 = vmatprep.mubr.f32.mxu1 %v6775_v43  ;;  %v2339_v39 = vsub.f32 %v6759_v48, %v7698_v24 }
 0x19e   :  { %v2349_v23 = vsub.f32 %v6749_v62, %v7994_v50  ;;  %v1698_v31 = vadd.f32 %v1697_v25, %v6544_v8  ;;  %v1716_v28 = vadd.f32 %v4855_v45, %v6549_v55  ;;  %v2102_v34 = vsel %vm2052_vm0, %v1959_v16, 0  ;;  %4971 = vmatmul.mubr.f32.gmra.mxu0 %v2330_v37  ;;  %5029 = vmatmul.mubr.f32.gmra.mxu1 %v6761_v10 }
 0x19f   :  { %7995 = vst [vmem:[#allocation52_spill] sm:$0xff] %v6785_v54  ;;  %v1977_v58 = vadd.f32 %v4932_v42, %v1704_v52  ;;  %v6797_v56 = vsub.f32 %v2105_v30, %v6785_v54  ;;  %v6799_v50 = vand.u32 4294901760, %v2102_v34  ;;  %v1721_v43 = vpop.f32.mrf.mxu0  ;;  %v1970_v14 = vpop.f32.mrf.mxu1  ;;  %v2340_v24 = vand.u32 4294901760, %v2339_v39 }
 0x1a0   :  { %v7703_v32 = vand.u32 4294901760, %v6783_v21  ;;  %v1971_v25 = vadd.f32 %v1970_v14, %v1698_v31  ;;  %v2350_v55 = vand.u32 4294901760, %v2349_v23  ;;  %v7997_v45 = vand.u32 4294901760, %v6773_v9 }
 0x1a1   :  { %7996 = vst [vmem:[#allocation14_spill] sm:$0xff] %v6799_v50  ;;  %v2111_v8 = vsel %vm2052_vm0, %v1977_v58, 0  ;;  %v6808_v30 = vsub.f32 %v2102_v34, %v6799_v50  ;;  %v4861_v42 = vpop.f32.mrf.mxu0  ;;  %v4935_v10 = vpop.f32.mrf.mxu1  ;;  %4973 = vmatprep.mubr.f32.mxu0 %v2340_v24  ;;  %5031 = vmatprep.mubr.f32.mxu1 %v6799_v50  ;;  %v1710_v23 = vadd.f32 %v1709_v49, %v6554_v18 }
 0x1a2   :  { %v2369_v52 = vsub.f32 %v6773_v9, %v7997_v45  ;;  %v6810_v37 = vand.u32 4294901760, %v2111_v8  ;;  %v2359_v14 = vsub.f32 %v6783_v21, %v7703_v32  ;;  %v1728_v39 = vadd.f32 %v4858_v1, %v6559_v35  ;;  %4974 = vmatmul.mubr.f32.gmra.mxu0 %v2350_v55  ;;  %5032 = vmatmul.mubr.f32.gmra.mxu1 %v6785_v54 }
 0x1a3   :  { %v2108_v31 = vsel %vm2052_vm0, %v1971_v25, 0  ;;  %v1989_v58 = vadd.f32 %v4935_v10, %v1716_v28  ;;  %v1733_v45 = vpop.f32.mrf.mxu0  ;;  %v1982_v16 = vpop.f32.mrf.mxu1  ;;  %v7708_v32 = vand.u32 4294901760, %v6808_v30  ;;  %v8000_v1 = vand.u32 4294901760, %v6797_v56 }
 0x1a4   :  { %7998 = vst [vmem:[#allocation53_spill] sm:$0xff] %v6810_v37  ;;  %v6821_v34 = vsub.f32 %v2111_v8, %v6810_v37  ;;  %v6823_v24 = vand.u32 4294901760, %v2108_v31  ;;  %v2360_v50 = vand.u32 4294901760, %v2359_v14  ;;  %v1983_v49 = vadd.f32 %v1982_v16, %v1710_v23 }
 0x1a5   :  { %v2117_v18 = vsel %vm2052_vm0, %v1989_v58, 0  ;;  %v2370_v35 = vand.u32 4294901760, %v2369_v52  ;;  %v2389_v10 = vsub.f32 %v6797_v56, %v8000_v1  ;;  %v4864_v55 = vpop.f32.mrf.mxu0  ;;  %v4938_v54 = vpop.f32.mrf.mxu1  ;;  %v2379_v52 = vsub.f32 %v6808_v30, %v7708_v32 }
 0x1a6   :  { %7999 = vst [vmem:[#allocation27_spill] sm:$0xff] %v6823_v24  ;;  %v6832_v8 = vsub.f32 %v2108_v31, %v6823_v24  ;;  %v6834_v25 = vand.u32 4294901760, %v2117_v18  ;;  %4976 = vmatprep.mubr.f32.mxu0 %v2360_v50  ;;  %5034 = vmatprep.mubr.f32.mxu1 %v6823_v24  ;;  %v1722_v16 = vadd.f32 %v1721_v43, %v6564_v11  ;;  %v2114_v23 = vsel %vm2052_vm0, %v1983_v49, 0 }
 0x1a7   :  { %v1740_v14 = vadd.f32 %v4861_v42, %v6569_v47  ;;  %v2001_v58 = vadd.f32 %v4938_v54, %v1728_v39  ;;  %4977 = vmatmul.mubr.f32.gmra.mxu0 %v2370_v35  ;;  %5035 = vmatmul.mubr.f32.gmra.mxu1 %v6810_v37  ;;  %v6847_v50 = vand.u32 4294901760, %v2114_v23  ;;  %v1745_v1 = vpop.f32.mrf.mxu0  ;;  %v1994_v28 = vpop.f32.mrf.mxu1  ;;  %v2380_v24 = vand.u32 4294901760, %v2379_v52 }
 0x1a8   :  { %v6845_v31 = vsub.f32 %v2117_v18, %v6834_v25  ;;  %v7713_v32 = vand.u32 4294901760, %v6832_v8  ;;  %v1995_v43 = vadd.f32 %v1994_v28, %v1722_v16  ;;  %v2390_v47 = vand.u32 4294901760, %v2389_v10 }
 0x1a9   :  { %8001 = vst [vmem:[#allocation17_spill] sm:$0xff] %v6847_v50  ;;  %v2123_v11 = vsel %vm2052_vm0, %v2001_v58, 0  ;;  %v8002_v42 = vand.u32 4294901760, %v6821_v34  ;;  %v6856_v18 = vsub.f32 %v2114_v23, %v6847_v50  ;;  %v4867_v35 = vpop.f32.mrf.mxu0  ;;  %v4941_v37 = vpop.f32.mrf.mxu1  ;;  %4979 = vmatprep.mubr.f32.mxu0 %v2380_v24  ;;  %5037 = vmatprep.mubr.f32.mxu1 %v6847_v50  ;;  %v1734_v28 = vadd.f32 %v1733_v45, %v6575_v4 }
 0x1aa   :  { %v6858_v49 = vand.u32 4294901760, %v2123_v11  ;;  %v2399_v10 = vsub.f32 %v6832_v8, %v7713_v32  ;;  %v1752_v52 = vadd.f32 %v4864_v55, %v6582_v53  ;;  %v2120_v16 = vsel %vm2052_vm0, %v1995_v43, 0 }
 0x1ab   :  { %v2409_v54 = vsub.f32 %v6821_v34, %v8002_v42  ;;  %v2013_v58 = vadd.f32 %v4941_v37, %v1740_v14  ;;  %4980 = vmatmul.mubr.f32.gmra.mxu0 %v2390_v47  ;;  %5038 = vmatmul.mubr.f32.gmra.mxu1 %v6834_v25  ;;  %v6871_v24 = vand.u32 4294901760, %v2120_v16  ;;  %v1757_v42 = vpop.f32.mrf.mxu0  ;;  %v2006_v39 = vpop.f32.mrf.mxu1  ;;  %v7716_v32 = vand.u32 4294901760, %v6856_v18 }
 0x1ac   :  { %v6869_v23 = vsub.f32 %v2123_v11, %v6858_v49  ;;  %v2400_v50 = vand.u32 4294901760, %v2399_v10  ;;  %v2007_v45 = vadd.f32 %v2006_v39, %v1734_v28  ;;  %v8004_v55 = vand.u32 4294901760, %v6845_v31 }
 0x1ad   :  { %8003 = vst [vmem:[#allocation54_spill] sm:$0xff] %v6871_v24  ;;  %v2129_v4 = vsel %vm2052_vm0, %v2013_v58, 0  ;;  %v2410_v53 = vand.u32 4294901760, %v2409_v54  ;;  %v6880_v11 = vsub.f32 %v2120_v16, %v6871_v24  ;;  %v4944_v47 = vpop.f32.mrf.mxu1  ;;  %5040 = vmatprep.mubr.f32.mxu1 %v6871_v24  ;;  %v2419_v39 = vsub.f32 %v6856_v18, %v7716_v32 }
 0x1ae   :  { %v2429_v37 = vsub.f32 %v6845_v31, %v8004_v55  ;;  %v6882_v43 = vand.u32 4294901760, %v2129_v4  ;;  %4982 = vmatprep.mubr.f32.mxu0 %v2400_v50  ;;  %v1746_v54 = vadd.f32 %v1745_v1, %v6589_v19  ;;  %v1764_v10 = vadd.f32 %v4867_v35, %v6597_v41  ;;  %v4870_v55 = vpop.f32.mrf.mxu0 }
 0x1af   :  { %v2126_v28 = vsel %vm2052_vm0, %v2007_v45, 0  ;;  %v2025_v58 = vadd.f32 %v4944_v47, %v1752_v52  ;;  %4983 = vmatmul.mubr.f32.gmra.mxu0 %v2410_v53  ;;  %5041 = vmatmul.mubr.f32.gmra.mxu1 %v6858_v49  ;;  %v2018_v14 = vpop.f32.mrf.mxu1  ;;  %v2420_v24 = vand.u32 4294901760, %v2419_v39  ;;  %v7719_v32 = vand.u32 4294901760, %v6880_v11 }
 0x1b0   :  { %8005 = vst [vmem:[#allocation20_spill] sm:$0xff] %v6882_v43  ;;  %v6893_v16 = vsub.f32 %v2129_v4, %v6882_v43  ;;  %v6895_v50 = vand.u32 4294901760, %v2126_v28  ;;  %v2019_v1 = vadd.f32 %v2018_v14, %v1746_v54  ;;  %v2430_v41 = vand.u32 4294901760, %v2429_v37 }
 0x1b1   :  { %v2135_v19 = vsel %vm2052_vm0, %v2025_v58, 0  ;;  %v8007_v35 = vand.u32 4294901760, %v6869_v23  ;;  %v4947_v47 = vpop.f32.mrf.mxu1  ;;  %4985 = vmatprep.mubr.f32.mxu0 %v2420_v24  ;;  %v2439_v14 = vsub.f32 %v6880_v11, %v7719_v32  ;;  %v1758_v37 = vadd.f32 %v1757_v42, %v6602_v63  ;;  %v1769_v24 = vpop.f32.mrf.mxu0 }
 0x1b2   :  { %8006 = vst [vmem:[#allocation25_spill] sm:$0xff] %v6895_v50  ;;  %v6904_v4 = vsub.f32 %v2126_v28, %v6895_v50  ;;  %v6906_v53 = vand.u32 4294901760, %v2135_v19  ;;  %5043 = vmatprep.mubr.f32.mxu1 %v6895_v50  ;;  %v1776_v39 = vadd.f32 %v4870_v55, %v6612_v15  ;;  %v2132_v54 = vsel %vm2052_vm0, %v2019_v1, 0 }
 0x1b3   :  { %v2449_v52 = vsub.f32 %v6869_v23, %v8007_v35  ;;  %v2037_v58 = vadd.f32 %v4947_v47, %v1764_v10  ;;  %4986 = vmatmul.mubr.f32.gmra.mxu0 %v2430_v41  ;;  %5044 = vmatmul.mubr.f32.gmra.mxu1 %v6882_v43  ;;  %v6919_v35 = vand.u32 4294901760, %v2132_v54  ;;  %v2030_v45 = vpop.f32.mrf.mxu1  ;;  %v2440_v50 = vand.u32 4294901760, %v2439_v14 }
 0x1b4   :  { %v6917_v28 = vsub.f32 %v2135_v19, %v6906_v53  ;;  %v7722_v32 = vand.u32 4294901760, %v6904_v4  ;;  %v2031_v42 = vadd.f32 %v2030_v45, %v1758_v37  ;;  %v8009_v55 = vand.u32 4294901760, %v6893_v16 }
 0x1b5   :  { %8008 = vst [vmem:[#allocation5_spill] sm:$0xff] %v6919_v35  ;;  %v2141_v63 = vsel %vm2052_vm0, %v2037_v58, 0  ;;  %v2450_v15 = vand.u32 4294901760, %v2449_v52  ;;  %v6928_v19 = vsub.f32 %v2132_v54, %v6919_v35  ;;  %v4950_v47 = vpop.f32.mrf.mxu1  ;;  %4988 = vmatprep.mubr.f32.mxu0 %v2440_v50  ;;  %5046 = vmatprep.mubr.f32.mxu1 %v6919_v35  ;;  %v1770_v52 = vadd.f32 %v1769_v24, %v6617_v46 }
 0x1b6   :  { %v2469_v10 = vsub.f32 %v6893_v16, %v8009_v55  ;;  %v6930_v41 = vand.u32 4294901760, %v2141_v63  ;;  %v2459_v45 = vsub.f32 %v6904_v4, %v7722_v32  ;;  %v2138_v14 = vsel %vm2052_vm0, %v2031_v42, 0 }
 0x1b7   :  { %v2049_v37 = vadd.f32 %v4950_v47, %v1776_v39  ;;  %4989 = vmatmul.mubr.f32.gmra.mxu0 %v2450_v15  ;;  %5047 = vmatmul.mubr.f32.gmra.mxu1 %v6906_v53  ;;  %v6942_v58 = vand.u32 4294901760, %v2138_v14  ;;  %v2042_v50 = vpop.f32.mrf.mxu1  ;;  %v2478_v1 = vand.u32 4294901760, %v6928_v19  ;;  %v8010_v46 = vand.u32 4294901760, %v6917_v28 }
 0x1b8   :  { %v6940_v54 = vsub.f32 %v2141_v63, %v6930_v41  ;;  %v2460_v55 = vand.u32 4294901760, %v2459_v45  ;;  %v2043_v32 = vadd.f32 %v2042_v50, %v1770_v52  ;;  %v2470_v43 = vand.u32 4294901760, %v2469_v10 }
 0x1b9   :  { %v2147_v35 = vsel %vm2052_vm0, %v2049_v37, 0  ;;  %v2489_v39 = vsub.f32 %v6917_v28, %v8010_v46  ;;  %v6951_v42 = vsub.f32 %v2138_v14, %v6942_v58  ;;  %5049 = vmatprep.mubr.f32.mxu1 %v6942_v58  ;;  %v2479_v15 = vsub.f32 %v6928_v19, %v2478_v1 }
 0x1ba   :  { %v7725_v24 = vand.u32 4294901760, %v6940_v54  ;;  %v6953_v63 = vand.u32 4294901760, %v2147_v35  ;;  %4991 = vmatprep.mubr.f32.mxu0 %v2460_v55  ;;  %v2144_v10 = vsel %vm2052_vm0, %v2043_v32, 0 }
 0x1bb   :  { %4992 = vmatmul.mubr.f32.gmra.mxu0 %v2470_v43  ;;  %5050 = vmatmul.mubr.f32.gmra.mxu1 %v6930_v41  ;;  %v6964_v45 = vand.u32 4294901760, %v2144_v10  ;;  %v2480_v52 = vand.u32 4294901760, %v2479_v15  ;;  %v2498_v14 = vand.u32 4294901760, %v6951_v42  ;;  %v2490_v37 = vand.u32 4294901760, %v2489_v39 }
 0x1bc   :  { %v6962_v47 = vsub.f32 %v2147_v35, %v6953_v63  ;;  %v2509_v50 = vsub.f32 %v6940_v54, %v7725_v24  ;;  %v8011_v35 = vand.u32 4294901760, %v6606_v12  ;;  %v8013_v24 = vand.u32 4294901760, %v6634_v20 }
 0x1bd   :  { %v6972_v32 = vsub.f32 %v2144_v10, %v6964_v45  ;;  %4994 = vmatprep.mubr.f32.mxu0 %v2480_v52  ;;  %5052 = vmatprep.mubr.f32.mxu1 %v6964_v45  ;;  %v2499_v43 = vsub.f32 %v6951_v42, %v2498_v14 }
 0x1be   :  { %v2528_v55 = vand.u32 4294901760, %v6962_v47  ;;  %v2510_v15 = vand.u32 4294901760, %v2509_v50 }
 0x1bf   :  { %4995 = vmatmul.mubr.f32.gmra.mxu0 %v2490_v37  ;;  %5053 = vmatmul.mubr.f32.gmra.mxu1 %v6953_v63  ;;  %v2500_v46 = vand.u32 4294901760, %v2499_v43  ;;  %v2518_v39 = vand.u32 4294901760, %v6972_v32  ;;  %v8012_v37 = vand.u32 4294901760, %v6592_v29 }
 0x1c0   :  { %5111 = vmatprep.mubr.f32.mxu1 %v8011_v35  ;;  %v2529_v10 = vsub.f32 %v6962_v47, %v2528_v55  ;;  %v8014_v35 = vand.u32 4294901760, %v6620_v5 }
 0x1c1   :  { %4997 = vmatprep.mubr.f32.mxu0 %v2500_v46  ;;  %v2519_v52 = vsub.f32 %v6972_v32, %v2518_v39  ;;  %v8015_v46 = vand.u32 4294901760, %v6659_v40 }
 0x1c2   :  { %v2530_v50 = vand.u32 4294901760, %v2529_v10 }
 0x1c3   :  { %4998 = vmatmul.mubr.f32.gmra.mxu0 %v2510_v15  ;;  %5112 = vmatmul.mubr.f32.vlgmr.msra.gmra.mxu1 %v8012_v37  ;;  %v2520_v43 = vand.u32 4294901760, %v2519_v52 }
 0x1c4   :  { %5114 = vmatprep.mubr.f32.mxu1 %v8013_v24  ;;  %5212 = vmatpush3.msra.mxu1 %v7980_v6  ;;  %v8016_v24 = vand.u32 4294901760, %v6649_v17  ;;  %v8017_v6 = vand.u32 4294901760, %v6685_v22 }
 0x1c5   :  { %5213 = vmatprep.subr.mxu1 %v7981_v26  ;;  %5000 = vmatprep.mubr.f32.mxu0 %v2520_v43 }
 0x1c6   :  { %5214 = vmatpush3.msra.mxu1 %v7981_v26  ;;  %v8018_v26 = vld [vmem:[#allocation21_spill] sm:$0xff] }
 0x1c7   :  { %5001 = vmatmul.mubr.f32.gmra.mxu0 %v2530_v50  ;;  %5115 = vmatmul.mubr.f32.gmra.mxu1 %v8014_v35 }
 0x1c8   :  { %5059 = vmatprep.mubr.f32.mxu0 %v6606_v12  ;;  %5117 = vmatprep.mubr.f32.mxu1 %v8015_v46  ;;  %v8019_v12 = vand.u32 4294901760, %v6673_v27 }
 0x1cb   :  { %5060 = vmatmul.mubr.f32.vlgmr.msra.gmra.mxu0 %v6592_v29  ;;  %5118 = vmatmul.mubr.f32.gmra.mxu1 %v8016_v24  ;;  %v8020_v29 = vand.u32 4294901760, %v6711_v36 }
 0x1cc   :  { %5062 = vmatprep.mubr.f32.mxu0 %v6634_v20  ;;  %5120 = vmatprep.mubr.f32.mxu1 %v8017_v6  ;;  %v8021_v20 = vand.u32 4294901760, %v6699_v0 }
 0x1cd   :  { %5160 = vmatpush3.msra.mxu0 %v7985_v60  ;;  %v8022_v60 = vand.u32 4294901760, %v6735_v38 }
 0x1ce   :  { %5161 = vmatprep.subr.mxu0 %v8018_v26 }
 0x1cf   :  { %5063 = vmatmul.mubr.f32.gmra.mxu0 %v6620_v5  ;;  %5121 = vmatmul.mubr.f32.gmra.mxu1 %v8019_v12  ;;  %v8023_v5 = vand.u32 4294901760, %v6725_v51 }
 0x1d0   :  { %5065 = vmatprep.mubr.f32.mxu0 %v6659_v40  ;;  %5123 = vmatprep.mubr.f32.mxu1 %v8020_v29  ;;  %v8024_v40 = vand.u32 4294901760, %v6759_v48 }
 0x1d1   :  { %5162 = vmatpush3.msra.mxu0 %v8018_v26 }
 0x1d3   :  { %5066 = vmatmul.mubr.f32.gmra.mxu0 %v6649_v17  ;;  %5124 = vmatmul.mubr.f32.gmra.mxu1 %v8021_v20  ;;  %v8025_v17 = vand.u32 4294901760, %v6749_v62 }
 0x1d4   :  { %5068 = vmatprep.mubr.f32.mxu0 %v6685_v22  ;;  %5126 = vmatprep.mubr.f32.mxu1 %v8022_v60  ;;  %v8026_v22 = vand.u32 4294901760, %v6783_v21 }
 0x1d7   :  { %5069 = vmatmul.mubr.f32.gmra.mxu0 %v6673_v27  ;;  %5127 = vmatmul.mubr.f32.gmra.mxu1 %v8023_v5  ;;  %v8027_v27 = vand.u32 4294901760, %v6773_v9 }
 0x1d8   :  { %5071 = vmatprep.mubr.f32.mxu0 %v6711_v36  ;;  %5129 = vmatprep.mubr.f32.mxu1 %v8024_v40  ;;  %v8028_v36 = vand.u32 4294901760, %v6808_v30 }
 0x1db   :  { %5072 = vmatmul.mubr.f32.gmra.mxu0 %v6699_v0  ;;  %5130 = vmatmul.mubr.f32.gmra.mxu1 %v8025_v17  ;;  %v8029_v0 = vand.u32 4294901760, %v6797_v56 }
 0x1dc   :  { %5074 = vmatprep.mubr.f32.mxu0 %v6735_v38  ;;  %5132 = vmatprep.mubr.f32.mxu1 %v8026_v22  ;;  %v8030_v38 = vand.u32 4294901760, %v6832_v8 }
 0x1df   :  { %5075 = vmatmul.mubr.f32.gmra.mxu0 %v6725_v51  ;;  %5133 = vmatmul.mubr.f32.gmra.mxu1 %v8027_v27  ;;  %v8031_v51 = vand.u32 4294901760, %v6821_v34 }
 0x1e0   :  { %5077 = vmatprep.mubr.f32.mxu0 %v6759_v48  ;;  %5135 = vmatprep.mubr.f32.mxu1 %v8028_v36  ;;  %v8032_v48 = vand.u32 4294901760, %v6856_v18 }
 0x1e3   :  { %5078 = vmatmul.mubr.f32.gmra.mxu0 %v6749_v62  ;;  %5136 = vmatmul.mubr.f32.gmra.mxu1 %v8029_v0  ;;  %v8033_v62 = vand.u32 4294901760, %v6845_v31 }
 0x1e4   :  { %5080 = vmatprep.mubr.f32.mxu0 %v6783_v21  ;;  %5138 = vmatprep.mubr.f32.mxu1 %v8030_v38  ;;  %v8034_v21 = vand.u32 4294901760, %v6880_v11 }
 0x1e7   :  { %5081 = vmatmul.mubr.f32.gmra.mxu0 %v6773_v9  ;;  %5139 = vmatmul.mubr.f32.gmra.mxu1 %v8031_v51  ;;  %v8035_v9 = vand.u32 4294901760, %v6869_v23 }
 0x1e8   :  { %5083 = vmatprep.mubr.f32.mxu0 %v6808_v30  ;;  %5141 = vmatprep.mubr.f32.mxu1 %v8032_v48  ;;  %v8036_v30 = vand.u32 4294901760, %v6904_v4 }
 0x1eb   :  { %5084 = vmatmul.mubr.f32.gmra.mxu0 %v6797_v56  ;;  %5142 = vmatmul.mubr.f32.gmra.mxu1 %v8033_v62  ;;  %v8037_v56 = vand.u32 4294901760, %v6893_v16 }
 0x1ec   :  { %5086 = vmatprep.mubr.f32.mxu0 %v6832_v8  ;;  %5144 = vmatprep.mubr.f32.mxu1 %v8034_v21  ;;  %v8039_v8 = vand.u32 4294901760, %v6940_v54 }
 0x1ef   :  { %5087 = vmatmul.mubr.f32.gmra.mxu0 %v6821_v34  ;;  %5145 = vmatmul.mubr.f32.gmra.mxu1 %v8035_v9  ;;  %v8038_v34 = vand.u32 4294901760, %v6917_v28 }
 0x1f0   :  { %5089 = vmatprep.mubr.f32.mxu0 %v6856_v18  ;;  %5147 = vmatprep.mubr.f32.mxu1 %v8036_v30  ;;  %v8050_v18 = vld [vmem:[#allocation53_spill] sm:$0xff] }
 0x1f3   :  { %5090 = vmatmul.mubr.f32.gmra.mxu0 %v6845_v31  ;;  %5148 = vmatmul.mubr.f32.gmra.mxu1 %v8037_v56  ;;  %v8049_v31 = vld [vmem:[#allocation27_spill] sm:$0xff] }
 0x1f4   :  { %5092 = vmatprep.mubr.f32.mxu0 %v6880_v11  ;;  %5150 = vmatprep.mubr.f32.mxu1 %v2478_v1  ;;  %v8052_v11 = vld [vmem:[#allocation54_spill] sm:$0xff] }
 0x1f7   :  { %5093 = vmatmul.mubr.f32.gmra.mxu0 %v6869_v23  ;;  %5151 = vmatmul.mubr.f32.gmra.mxu1 %v8038_v34  ;;  %v8051_v23 = vld [vmem:[#allocation17_spill] sm:$0xff] }
 0x1f8   :  { %5095 = vmatprep.mubr.f32.mxu0 %v6904_v4  ;;  %5153 = vmatprep.mubr.f32.mxu1 %v2498_v14  ;;  %v8054_v4 = vld [vmem:[#allocation20_spill] sm:$0xff] }
 0x1fb   :  { %5096 = vmatmul.mubr.f32.gmra.mxu0 %v6893_v16  ;;  %5154 = vmatmul.mubr.f32.gmra.mxu1 %v8039_v8  ;;  %v8053_v16 = vld [vmem:[#allocation25_spill] sm:$0xff] }
 0x1fc   :  { %5098 = vmatprep.mubr.f32.mxu0 %v6928_v19  ;;  %5156 = vmatprep.mubr.f32.mxu1 %v2518_v39 }
 0x1ff   :  { %5099 = vmatmul.mubr.f32.gmra.mxu0 %v6917_v28  ;;  %5157 = vmatmul.mubr.f32.gmra.mxu1 %v2528_v55  ;;  %v8055_v28 = vld [vmem:[#allocation5_spill] sm:$0xff] }
 0x200   :  { %5101 = vmatprep.mubr.f32.mxu0 %v6951_v42  ;;  %5215 = vmatprep.mubr.f32.mxu1 %v6594_v59 }
 0x203   :  { %5102 = vmatmul.mubr.f32.gmra.mxu0 %v6940_v54  ;;  %5216 = vmatmul.mubr.f32.vlgmr.msra.gmra.mxu1 %v6579_v7 }
 0x204   :  { %5104 = vmatprep.mubr.f32.mxu0 %v6972_v32  ;;  %5218 = vmatprep.mubr.f32.mxu1 %v6622_v13 }
 0x207   :  { %5105 = vmatmul.mubr.f32.gmra.mxu0 %v6962_v47  ;;  %5219 = vmatmul.mubr.f32.gmra.mxu1 %v6608_v33 }
 0x208   :  { %5163 = vmatprep.mubr.f32.mxu0 %v6594_v59  ;;  %5221 = vmatprep.mubr.f32.mxu1 %v6651_v3  ;;  %v8040_v59 = vld [vmem:[#allocation23_spill] sm:$0xff] }
 0x20b   :  { %5164 = vmatmul.mubr.f32.vlgmr.msra.gmra.mxu0 %v6579_v7  ;;  %5222 = vmatmul.mubr.f32.gmra.mxu1 %v6636_v57  ;;  %v8041_v7 = vld [vmem:[#allocation48_spill] sm:$0xff] }
 0x20c   :  { %5166 = vmatprep.mubr.f32.mxu0 %v6622_v13  ;;  %5224 = vmatprep.mubr.f32.mxu1 %v6675_v61  ;;  %v8042_v13 = vld [vmem:[#allocation10_spill] sm:$0xff] }
 0x20f   :  { %5167 = vmatmul.mubr.f32.gmra.mxu0 %v6608_v33  ;;  %5225 = vmatmul.mubr.f32.gmra.mxu1 %v6661_v2  ;;  %v8043_v33 = vld [vmem:[#allocation11_spill] sm:$0xff] }
 0x210   :  { %5169 = vmatprep.mubr.f32.mxu0 %v6651_v3  ;;  %5227 = vmatprep.mubr.f32.mxu1 %v6701_v44  ;;  %v8044_v3 = vld [vmem:[#allocation50_spill] sm:$0xff] }
 0x213   :  { %5170 = vmatmul.mubr.f32.gmra.mxu0 %v6636_v57  ;;  %5228 = vmatmul.mubr.f32.gmra.mxu1 %v8040_v59  ;;  %v8045_v57 = vld [vmem:[#allocation12_spill] sm:$0xff] }
 0x214   :  { %5172 = vmatprep.mubr.f32.mxu0 %v6675_v61  ;;  %5230 = vmatprep.mubr.f32.mxu1 %v8041_v7  ;;  %v8046_v61 = vld [vmem:[#allocation26_spill] sm:$0xff] }
 0x217   :  { %5173 = vmatmul.mubr.f32.gmra.mxu0 %v6661_v2  ;;  %5231 = vmatmul.mubr.f32.gmra.mxu1 %v8042_v13  ;;  %v8047_v2 = vld [vmem:[#allocation14_spill] sm:$0xff] }
 0x218   :  { %5175 = vmatprep.mubr.f32.mxu0 %v6701_v44  ;;  %5233 = vmatprep.mubr.f32.mxu1 %v8043_v33  ;;  %v8048_v44 = vld [vmem:[#allocation52_spill] sm:$0xff] }
 0x21b   :  { %5176 = vmatmul.mubr.f32.gmra.mxu0 %v8040_v59  ;;  %5234 = vmatmul.mubr.f32.gmra.mxu1 %v8044_v3 }
 0x21c   :  { %5178 = vmatprep.mubr.f32.mxu0 %v8041_v7  ;;  %5236 = vmatprep.mubr.f32.mxu1 %v8045_v57 }
 0x21f   :  { %5179 = vmatmul.mubr.f32.gmra.mxu0 %v8042_v13  ;;  %5237 = vmatmul.mubr.f32.gmra.mxu1 %v8046_v61 }
 0x220   :  { %5181 = vmatprep.mubr.f32.mxu0 %v8043_v33  ;;  %5239 = vmatprep.mubr.f32.mxu1 %v8047_v2 }
 0x223   :  { %5182 = vmatmul.mubr.f32.gmra.mxu0 %v8044_v3  ;;  %5240 = vmatmul.mubr.f32.gmra.mxu1 %v8048_v44 }
 0x224   :  { %5184 = vmatprep.mubr.f32.mxu0 %v8045_v57  ;;  %5242 = vmatprep.mubr.f32.mxu1 %v8049_v31 }
 0x227   :  { %5185 = vmatmul.mubr.f32.gmra.mxu0 %v8046_v61  ;;  %5243 = vmatmul.mubr.f32.gmra.mxu1 %v8050_v18 }
 0x228   :  { %5187 = vmatprep.mubr.f32.mxu0 %v8047_v2  ;;  %5245 = vmatprep.mubr.f32.mxu1 %v8051_v23 }
 0x22b   :  { %5188 = vmatmul.mubr.f32.gmra.mxu0 %v8048_v44  ;;  %5246 = vmatmul.mubr.f32.gmra.mxu1 %v6834_v25 }
 0x22c   :  { %5190 = vmatprep.mubr.f32.mxu0 %v8049_v31  ;;  %5248 = vmatprep.mubr.f32.mxu1 %v8052_v11 }
 0x22f   :  { %5191 = vmatmul.mubr.f32.gmra.mxu0 %v8050_v18  ;;  %5249 = vmatmul.mubr.f32.gmra.mxu1 %v6858_v49 }
 0x230   :  { %5193 = vmatprep.mubr.f32.mxu0 %v8051_v23  ;;  %5251 = vmatprep.mubr.f32.mxu1 %v8053_v16 }
 0x233   :  { %5194 = vmatmul.mubr.f32.gmra.mxu0 %v6834_v25  ;;  %5252 = vmatmul.mubr.f32.gmra.mxu1 %v8054_v4 }
 0x234   :  { %5196 = vmatprep.mubr.f32.mxu0 %v8052_v11  ;;  %5254 = vmatprep.mubr.f32.mxu1 %v8055_v28 }
 0x237   :  { %5197 = vmatmul.mubr.f32.gmra.mxu0 %v6858_v49  ;;  %5255 = vmatmul.mubr.f32.gmra.mxu1 %v6906_v53 }
 0x238   :  { %5199 = vmatprep.mubr.f32.mxu0 %v8053_v16  ;;  %5257 = vmatprep.mubr.f32.mxu1 %v6942_v58 }
 0x23b   :  { %5200 = vmatmul.mubr.f32.gmra.mxu0 %v8054_v4  ;;  %5258 = vmatmul.mubr.f32.gmra.mxu1 %v6930_v41 }
 0x23c   :  { %5202 = vmatprep.mubr.f32.mxu0 %v8055_v28  ;;  %5260 = vmatprep.mubr.f32.mxu1 %v6964_v45 }
 0x23f   :  { %5203 = vmatmul.mubr.f32.gmra.mxu0 %v6906_v53  ;;  %5261 = vmatmul.mubr.f32.gmra.mxu1 %v6953_v63 }
 0x240   :  { %5205 = vmatprep.mubr.f32.mxu0 %v6942_v58 }
 0x242   :  { %v5009_v25 = vpop.f32.mrf.mxu1 }
 0x243   :  { %5206 = vmatmul.mubr.f32.gmra.mxu0 %v6930_v41 }
 0x244   :  { %5208 = vmatprep.mubr.f32.mxu0 %v6964_v45  ;;  %v2613_v49 = vpop.f32.mrf.mxu1 }
 0x246   :  { %v5012_v1 = vpop.f32.mrf.mxu1 }
 0x247   :  { %5209 = vmatmul.mubr.f32.gmra.mxu0 %v6953_v63 }
 0x248   :  { %v2625_v19 = vpop.f32.mrf.mxu1 }
 0x24a   :  { %v4957_v54 = vpop.f32.mrf.mxu0  ;;  %v5015_v42 = vpop.f32.mrf.mxu1 }
 0x24b   :  { %v7152_v47 = vadd.f32 %v5009_v25, %v4957_v54 }
 0x24c   :  { %v2222_v14 = vpop.f32.mrf.mxu0  ;;  %v2637_v53 = vpop.f32.mrf.mxu1 }
 0x24d   :  { %v7154_v55 = vadd.f32 %v2613_v49, %v2222_v14 }
 0x24e   :  { %v4960_v32 = vpop.f32.mrf.mxu0  ;;  %v5018_v58 = vpop.f32.mrf.mxu1 }
 0x24f   :  { %v7156_v39 = vadd.f32 %v5012_v1, %v4960_v32 }
 0x250   :  { %v2242_v41 = vpop.f32.mrf.mxu0  ;;  %v2649_v15 = vpop.f32.mrf.mxu1 }
 0x251   :  { %v7158_v45 = vadd.f32 %v2625_v19, %v2242_v41 }
 0x252   :  { %v4963_v10 = vpop.f32.mrf.mxu0  ;;  %v5021_v52 = vpop.f32.mrf.mxu1 }
 0x253   :  { %v7160_v63 = vadd.f32 %v5015_v42, %v4963_v10 }
 0x254   :  { %v2262_v37 = vpop.f32.mrf.mxu0  ;;  %v2661_v43 = vpop.f32.mrf.mxu1 }
 0x255   :  { %v7162_v50 = vadd.f32 %v2637_v53, %v2262_v37 }
 0x256   :  { %v4966_v35 = vpop.f32.mrf.mxu0  ;;  %v5024_v46 = vpop.f32.mrf.mxu1 }
 0x257   :  { %v7164_v24 = vadd.f32 %v5018_v58, %v4966_v35 }
 0x258   :  { %v2282_v6 = vpop.f32.mrf.mxu0  ;;  %v2673_v26 = vpop.f32.mrf.mxu1 }
 0x259   :  { %v7166_v12 = vadd.f32 %v2649_v15, %v2282_v6 }
 0x25a   :  { %v4969_v29 = vpop.f32.mrf.mxu0  ;;  %v5027_v20 = vpop.f32.mrf.mxu1 }
 0x25b   :  { %v7168_v60 = vadd.f32 %v5021_v52, %v4969_v29 }
 0x25c   :  { %v2302_v5 = vpop.f32.mrf.mxu0  ;;  %v2685_v40 = vpop.f32.mrf.mxu1 }
 0x25d   :  { %v7170_v17 = vadd.f32 %v2661_v43, %v2302_v5 }
 0x25e   :  { %v4972_v22 = vpop.f32.mrf.mxu0  ;;  %v5030_v27 = vpop.f32.mrf.mxu1 }
 0x25f   :  { %v7172_v36 = vadd.f32 %v5024_v46, %v4972_v22 }
 0x260   :  { %v2322_v0 = vpop.f32.mrf.mxu0  ;;  %v2697_v38 = vpop.f32.mrf.mxu1 }
 0x261   :  { %v7174_v51 = vadd.f32 %v2673_v26, %v2322_v0 }
 0x262   :  { %v4975_v48 = vpop.f32.mrf.mxu0  ;;  %v5033_v62 = vpop.f32.mrf.mxu1 }
 0x263   :  { %v7176_v21 = vadd.f32 %v5027_v20, %v4975_v48 }
 0x264   :  { %v2342_v9 = vpop.f32.mrf.mxu0  ;;  %v2709_v30 = vpop.f32.mrf.mxu1 }
 0x265   :  { %v7178_v56 = vadd.f32 %v2685_v40, %v2342_v9 }
 0x267   :  { %v4978_v34 = vpop.f32.mrf.mxu0  ;;  %v5036_v8 = vpop.f32.mrf.mxu1 }
 0x268   :  { %v7180_v59 = vadd.f32 %v5030_v27, %v4978_v34 }
 0x269   :  { %v2362_v7 = vpop.f32.mrf.mxu0  ;;  %v2721_v13 = vpop.f32.mrf.mxu1 }
 0x26a   :  { %v7182_v33 = vadd.f32 %v2697_v38, %v2362_v7 }
 0x26b   :  { %v4981_v3 = vpop.f32.mrf.mxu0  ;;  %v5039_v57 = vpop.f32.mrf.mxu1 }
 0x26c   :  { %v7184_v61 = vadd.f32 %v5033_v62, %v4981_v3 }
 0x26d   :  { %v2382_v2 = vpop.f32.mrf.mxu0  ;;  %v2733_v44 = vpop.f32.mrf.mxu1 }
 0x26e   :  { %v7186_v31 = vadd.f32 %v2709_v30, %v2382_v2 }
 0x26f   :  { %v4984_v18 = vpop.f32.mrf.mxu0  ;;  %v5042_v23 = vpop.f32.mrf.mxu1 }
 0x270   :  { %v7188_v11 = vadd.f32 %v5036_v8, %v4984_v18 }
 0x271   :  { %v2402_v16 = vpop.f32.mrf.mxu0  ;;  %v2745_v4 = vpop.f32.mrf.mxu1 }
 0x272   :  { %8056 = vst [vmem:[#allocation31_spill] sm:$0xff] %v7188_v11  ;;  %v7190_v28 = vadd.f32 %v2721_v13, %v2402_v16 }
 0x273   :  { %v4987_v25 = vpop.f32.mrf.mxu0  ;;  %v5045_v49 = vpop.f32.mrf.mxu1 }
 0x274   :  { %8057 = vst [vmem:[#allocation36_spill] sm:$0xff] %v7190_v28  ;;  %v7192_v1 = vadd.f32 %v5039_v57, %v4987_v25 }
 0x275   :  { %v2422_v19 = vpop.f32.mrf.mxu0  ;;  %v2757_v54 = vpop.f32.mrf.mxu1 }
 0x276   :  { %8058 = vst [vmem:[#allocation38_spill] sm:$0xff] %v7192_v1  ;;  %v7194_v42 = vadd.f32 %v2733_v44, %v2422_v19 }
 0x277   :  { %v4990_v14 = vpop.f32.mrf.mxu0  ;;  %v5048_v53 = vpop.f32.mrf.mxu1 }
 0x278   :  { %8059 = vst [vmem:[#allocation40_spill] sm:$0xff] %v7194_v42  ;;  %v7196_v32 = vadd.f32 %v5042_v23, %v4990_v14 }
 0x279   :  { %v2442_v58 = vpop.f32.mrf.mxu0  ;;  %v2769_v41 = vpop.f32.mrf.mxu1 }
 0x27a   :  { %8060 = vst [vmem:[#allocation29_spill] sm:$0xff] %v7196_v32  ;;  %v7198_v15 = vadd.f32 %v2745_v4, %v2442_v58 }
 0x27b   :  { %v4993_v10 = vpop.f32.mrf.mxu0  ;;  %v5051_v52 = vpop.f32.mrf.mxu1 }
 0x27c   :  { %8061 = vst [vmem:[#allocation13_spill] sm:$0xff] %v7198_v15  ;;  %v7200_v37 = vadd.f32 %v5045_v49, %v4993_v10 }
 0x27d   :  { %v2462_v43 = vpop.f32.mrf.mxu0  ;;  %v2781_v35 = vpop.f32.mrf.mxu1 }
 0x27e   :  { %8062 = vst [vmem:[#allocation15_spill] sm:$0xff] %v7200_v37  ;;  %v7202_v46 = vadd.f32 %v2757_v54, %v2462_v43 }
 0x27f   :  { %v4996_v6 = vpop.f32.mrf.mxu0  ;;  %v5054_v26 = vpop.f32.mrf.mxu1 }
 0x280   :  { %8063 = vst [vmem:[#allocation22_spill] sm:$0xff] %v7202_v46  ;;  %v7204_v29 = vadd.f32 %v5048_v53, %v4996_v6 }
 0x281   :  { %v2482_v20 = vpop.f32.mrf.mxu0  ;;  %v2793_v5 = vpop.f32.mrf.mxu1 }
 0x282   :  { %8064 = vst [vmem:[#allocation24_spill] sm:$0xff] %v7204_v29  ;;  %v7206_v40 = vadd.f32 %v2769_v41, %v2482_v20 }
 0x283   :  { %v4999_v22 = vpop.f32.mrf.mxu0  ;;  %v7208_v27 = vpop.f32.mrf.mxu1 }
 0x284   :  { %8065 = vst [vmem:[#allocation34_spill] sm:$0xff] %v7206_v40  ;;  %v7210_v0 = vadd.f32 %v5051_v52, %v4999_v22 }
 0x285   :  { %v2502_v38 = vpop.f32.mrf.mxu0  ;;  %v7212_v48 = vpop.f32.mrf.mxu1 }
 0x286   :  { %8066 = vst [vmem:[#allocation30_spill] sm:$0xff] %v7210_v0  ;;  %v7214_v62 = vadd.f32 %v2781_v35, %v2502_v38 }
 0x287   :  { %v5002_v9 = vpop.f32.mrf.mxu0  ;;  %v7216_v30 = vpop.f32.mrf.mxu1 }
 0x288   :  { %8067 = vst [vmem:[#allocation33_spill] sm:$0xff] %v7214_v62  ;;  %v7218_v34 = vadd.f32 %v5054_v26, %v5002_v9 }
 0x289   :  { %v2522_v8 = vpop.f32.mrf.mxu0  ;;  %v7220_v7 = vpop.f32.mrf.mxu1 }
 0x28a   :  { %8068 = vst [vmem:[#allocation35_spill] sm:$0xff] %v7218_v34  ;;  %v7222_v13 = vadd.f32 %v2793_v5, %v2522_v8 }
 0x28b   :  { %v5061_v3 = vpop.f32.mrf.mxu0  ;;  %v7224_v57 = vpop.f32.mrf.mxu1 }
 0x28c   :  { %8069 = vst [vmem:[#allocation37_spill] sm:$0xff] %v7222_v13 }
 0x28d   :  { %v2875_v2 = vpop.f32.mrf.mxu0  ;;  %v7226_v44 = vpop.f32.mrf.mxu1 }
 0x28f   :  { %v5064_v18 = vpop.f32.mrf.mxu0  ;;  %v7228_v23 = vpop.f32.mrf.mxu1 }
 0x291   :  { %v7230_v16 = vpop.f32.mrf.mxu0  ;;  %v7232_v4 = vpop.f32.mrf.mxu1 }
 0x293   :  { %v7234_v25 = vpop.f32.mrf.mxu0  ;;  %v7236_v49 = vpop.f32.mrf.mxu1 }
 0x295   :  { %v7238_v19 = vpop.f32.mrf.mxu0  ;;  %v7240_v54 = vpop.f32.mrf.mxu1 }
 0x297   :  { %v7242_v14 = vpop.f32.mrf.mxu0  ;;  %v7244_v53 = vpop.f32.mrf.mxu1 }
 0x299   :  { %v7246_v58 = vpop.f32.mrf.mxu0  ;;  %v7248_v41 = vpop.f32.mrf.mxu1 }
 0x29b   :  { %v7250_v10 = vpop.f32.mrf.mxu0  ;;  %v7252_v52 = vpop.f32.mrf.mxu1 }
 0x29d   :  { %v7254_v43 = vpop.f32.mrf.mxu0  ;;  %v7256_v35 = vpop.f32.mrf.mxu1 }
 0x29f   :  { %v7258_v6 = vpop.f32.mrf.mxu0  ;;  %v7260_v26 = vpop.f32.mrf.mxu1 }
 0x2a1   :  { %v7262_v20 = vpop.f32.mrf.mxu0  ;;  %v7264_v5 = vpop.f32.mrf.mxu1 }
 0x2a2   :  { %8070 = vst [vmem:[#allocation6_spill] sm:$0xff] %v7264_v5 }
 0x2a3   :  { %v7266_v22 = vpop.f32.mrf.mxu0  ;;  %v7268_v38 = vpop.f32.mrf.mxu1 }
 0x2a4   :  { %8071 = vst [vmem:[#allocation39_spill] sm:$0xff] %v7268_v38 }
 0x2a5   :  { %v7270_v9 = vpop.f32.mrf.mxu0  ;;  %v7272_v8 = vpop.f32.mrf.mxu1 }
 0x2a6   :  { %8072 = vst [vmem:[#allocation41_spill] sm:$0xff] %v7272_v8 }
 0x2a7   :  { %v7274_v13 = vpop.f32.mrf.mxu0  ;;  %v7276_v34 = vpop.f32.mrf.mxu1 }
 0x2a8   :  { %8073 = vst [vmem:[#allocation42_spill] sm:$0xff] %v7276_v34 }
 0x2a9   :  { %v7278_v62 = vpop.f32.mrf.mxu0  ;;  %v7280_v0 = vpop.f32.mrf.mxu1 }
 0x2aa   :  { %8074 = vst [vmem:[#allocation7_spill] sm:$0xff] %v7280_v0 }
 0x2ab   :  { %v7282_v40 = vpop.f32.mrf.mxu0  ;;  %v7284_v29 = vpop.f32.mrf.mxu1 }
 0x2ac   :  { %8075 = vst [vmem:[#allocation43_spill] sm:$0xff] %v7284_v29 }
 0x2ad   :  { %v7286_v46 = vpop.f32.mrf.mxu0  ;;  %v7288_v37 = vpop.f32.mrf.mxu1 }
 0x2ae   :  { %8076 = vst [vmem:[#allocation44_spill] sm:$0xff] %v7286_v46  ;;  %8077 = vst [vmem:[#allocation45_spill] sm:$0xff] %v7288_v37 }
 0x2af   :  { %v7290_v15 = vpop.f32.mrf.mxu0  ;;  %v7292_v32 = vpop.f32.mrf.mxu1 }
 0x2b0   :  { %8078 = vst [vmem:[#allocation8_spill] sm:$0xff] %v7290_v15  ;;  %8079 = vst [vmem:[#allocation47_spill] sm:$0xff] %v7292_v32 }
 0x2b1   :  { %v7294_v42 = vpop.f32.mrf.mxu0  ;;  %v7296_v1 = vpop.f32.mrf.mxu1 }
 0x2b2   :  { %8080 = vst [vmem:[#allocation49_spill] sm:$0xff] %v7294_v42  ;;  %8081 = vst [vmem:[#allocation9_spill] sm:$0xff] %v7296_v1 }
 0x2b3   :  { %v7298_v34 = vpop.f32.mrf.mxu0  ;;  %v7300_v8 = vpop.f32.mrf.mxu1 }
 0x2b4   :  { %8082 = vst [vmem:[#allocation51_spill] sm:$0xff] %v7298_v34  ;;  %8083 = vst [vmem:[#allocation55_spill] sm:$0xff] %v7300_v8 }
 0x2b5   :  { %v7302_v0 = vpop.f32.mrf.mxu0  ;;  %v7304_v28 = vpop.f32.mrf.mxu1 }
 0x2b6   :  { %8084 = vst [vmem:[#allocation46_spill] sm:$0xff] %v7302_v0  ;;  %8085 = vst [vmem:[#allocation16_spill] sm:$0xff] %v7304_v28 }
 0x2b7   :  { %v7306_v29 = vpop.f32.mrf.mxu0  ;;  %v7308_v38 = vpop.f32.mrf.mxu1 }
 0x2b8   :  { %8086 = vst [vmem:[#allocation18_spill] sm:$0xff] %v7306_v29  ;;  %8087 = vst [vmem:[#allocation28_spill] sm:$0xff] %v7308_v38 }
 0x2b9   :  { %v7310_v37 = vpop.f32.mrf.mxu0  ;;  %v7312_v15 = vpop.f32.mrf.mxu1 }
 0x2ba   :  { %8088 = vst [vmem:[#allocation19_spill] sm:$0xff] %v7310_v37  ;;  %8089 = vst [vmem:[#allocation32_spill] sm:$0xff] %v7312_v15 }
 0x2bb   :  { %v7314_v32 = vpop.f32.mrf.mxu0  ;;  %v7316_v42 = vpop.f32.mrf.mxu1 }
 0x2bc   :  { %8090 = vst [vmem:[#allocation21_spill] sm:$0xff] %v7314_v32  ;;  %8091 = vst [vmem:[#allocation23_spill] sm:$0xff] %v7316_v42  ;;  %v2883_v42 = vadd.f32 %v5061_v3, %v7152_v47 }
 0x2bd   :  { %v7318_v1 = vpop.f32.mrf.mxu0  ;;  %v7320_v34 = vpop.f32.mrf.mxu1 }
 0x2be   :  { %8092 = vst [vmem:[#allocation48_spill] sm:$0xff] %v7318_v1  ;;  %8093 = vst [vmem:[#allocation10_spill] sm:$0xff] %v7320_v34  ;;  %v2876_v34 = vadd.f32 %v2875_v2, %v7154_v55  ;;  %v2911_v55 = vadd.f32 %v7234_v25, %v7160_v63 }
 0x2bf   :  { %v7322_v8 = vpop.f32.mrf.mxu0  ;;  %v7324_v0 = vpop.f32.mrf.mxu1 }
 0x2c0   :  { %8094 = vst [vmem:[#allocation11_spill] sm:$0xff] %v7322_v8  ;;  %8095 = vst [vmem:[#allocation50_spill] sm:$0xff] %v7324_v0  ;;  %v3168_v47 = vadd.f32 %v7212_v48, %v2876_v34 }
 0x2c1   :  { %v7326_v28 = vpop.f32.mrf.mxu0  ;;  %v7328_v29 = vpop.f32.mrf.mxu1 }
 0x2c2   :  { %8096 = vst [vmem:[#allocation12_spill] sm:$0xff] %v7326_v28  ;;  %8097 = vst [vmem:[#allocation26_spill] sm:$0xff] %v7328_v29  ;;  %v2897_v28 = vadd.f32 %v5064_v18, %v7156_v39  ;;  %v3176_v29 = vadd.f32 %v7208_v27, %v2883_v42  ;;  %v2904_v27 = vadd.f32 %v7238_v19, %v7162_v50 }
 0x2c3   :  { %v7330_v38 = vpop.f32.mrf.mxu0  ;;  %v5217_v37 = vpop.f32.mrf.mxu1 }
 0x2c4   :  { %8098 = vst [vmem:[#allocation14_spill] sm:$0xff] %v7330_v38  ;;  %v3192_v39 = vadd.f32 %v7216_v30, %v2897_v28 }
 0x2c5   :  { %v7332_v15 = vpop.f32.mrf.mxu0  ;;  %v3751_v32 = vpop.f32.mrf.mxu1 }
 0x2c6   :  { %8099 = vst [vmem:[#allocation52_spill] sm:$0xff] %v7332_v15  ;;  %v2890_v15 = vadd.f32 %v7230_v16, %v7158_v45 }
 0x2c7   :  { %v7335_v11 = vpop.f32.mrf.mxu0  ;;  %v5220_v1 = vpop.f32.mrf.mxu1 }
 0x2c8   :  { %8100 = vst [vmem:[#allocation27_spill] sm:$0xff] %v7335_v11  ;;  %v3184_v48 = vadd.f32 %v7220_v7, %v2890_v15  ;;  %v3200_v7 = vadd.f32 %v7226_v44, %v2904_v27 }
 0x2c9   :  { %v7338_v8 = vpop.f32.mrf.mxu0  ;;  %v3763_v0 = vpop.f32.mrf.mxu1 }
 0x2ca   :  { %8101 = vst [vmem:[#allocation53_spill] sm:$0xff] %v7338_v8 }
 0x2cb   :  { %v5165_v5 = vpop.f32.mrf.mxu0  ;;  %v5223_v38 = vpop.f32.mrf.mxu1 }
 0x2cc   :  { %v3499_v46 = vadd.f32 %v5165_v5, %v3176_v29 }
 0x2cd   :  { %v3492_v3 = vpop.f32.mrf.mxu0  ;;  %v3775_v11 = vpop.f32.mrf.mxu1 }
 0x2ce   :  { %v3758_v2 = vadd.f32 %v5217_v37, %v3499_v46  ;;  %v3493_v8 = vadd.f32 %v3492_v3, %v3168_v47  ;;  %v2925_v37 = vadd.f32 %v7242_v14, %v7164_v24  ;;  %v3208_v46 = vadd.f32 %v7224_v57, %v2911_v55 }
 0x2cf   :  { %v5168_v18 = vpop.f32.mrf.mxu0  ;;  %v5226_v42 = vpop.f32.mrf.mxu1 }
 0x2d0   :  { %3943 = vst.msk [vmem:[%s7562_s3 + $0x8] sm:$0xff] %vm3941_vm1, %v3758_v2  ;;  %v3752_v45 = vadd.f32 %v3751_v32, %v3493_v8  ;;  %v3511_v29 = vadd.f32 %v5168_v18, %v3192_v39  ;;  %v2918_v32 = vadd.f32 %v7246_v58, %v7166_v12  ;;  %v3224_v14 = vadd.f32 %v7228_v23, %v2925_v37 }
 0x2d1   :  { %v3504_v34 = vpop.f32.mrf.mxu0  ;;  %v3787_v63 = vpop.f32.mrf.mxu1  ;;  %v2967_v18 = vadd.f32 %v7266_v22, %v7176_v21 }
 0x2d2   :  { %3942 = vst.msk [vmem:[%s7562_s3] sm:$0xff] %vm3941_vm1, %v3752_v45  ;;  %v3770_v50 = vadd.f32 %v5220_v1, %v3511_v29  ;;  %v3505_v28 = vadd.f32 %v3504_v34, %v3184_v48  ;;  %v2939_v1 = vadd.f32 %v7250_v10, %v7168_v60  ;;  %v3216_v10 = vadd.f32 %v7232_v4, %v2918_v32 }
 0x2d3   :  { %v5171_v30 = vpop.f32.mrf.mxu0  ;;  %v5229_v16 = vpop.f32.mrf.mxu1  ;;  %v2960_v45 = vadd.f32 %v7270_v9, %v7178_v56  ;;  %v2981_v34 = vadd.f32 %v7274_v13, %v7180_v59  ;;  %v3272_v9 = vadd.f32 %v7252_v52, %v2967_v18 }
 0x2d4   :  { %3945 = vst.msk [vmem:[%s7562_s3 + $0x18] sm:$0xff] %vm3941_vm1, %v3770_v50  ;;  %v3764_v24 = vadd.f32 %v3763_v0, %v3505_v28  ;;  %v3523_v15 = vadd.f32 %v5171_v30, %v3208_v46  ;;  %v2932_v0 = vadd.f32 %v7254_v43, %v7170_v17  ;;  %v3240_v43 = vadd.f32 %v7236_v49, %v2939_v1  ;;  %v8104_v1 = vld [vmem:[#allocation31_spill] sm:$0xff] }
 0x2d5   :  { %v3516_v25 = vpop.f32.mrf.mxu0  ;;  %v3799_v19 = vpop.f32.mrf.mxu1  ;;  %v2974_v50 = vadd.f32 %v7278_v62, %v7182_v33  ;;  %v2995_v30 = vadd.f32 %v7282_v40, %v7184_v61  ;;  %v3288_v52 = vadd.f32 %v7260_v26, %v2981_v34 }
 0x2d6   :  { %3944 = vst.msk [vmem:[%s7562_s3 + $0x10] sm:$0xff] %vm3941_vm1, %v3764_v24  ;;  %v3782_v12 = vadd.f32 %v5223_v38, %v3523_v15  ;;  %v3517_v57 = vadd.f32 %v3516_v25, %v3200_v7  ;;  %v2953_v38 = vadd.f32 %v7258_v6, %v7172_v36  ;;  %v3232_v6 = vadd.f32 %v7240_v54, %v2932_v0  ;;  %v8102_v24 = vld [vmem:[#allocation44_spill] sm:$0xff] }
 0x2d7   :  { %v5174_v58 = vpop.f32.mrf.mxu0  ;;  %v5232_v5 = vpop.f32.mrf.mxu1  ;;  %v2988_v15 = vadd.f32 %v8102_v24, %v7186_v31 }
 0x2d8   :  { %3947 = vst.msk [vmem:[%s7562_s3 + $0x28] sm:$0xff] %vm3941_vm1, %v3782_v12  ;;  %v3776_v60 = vadd.f32 %v3775_v11, %v3517_v57  ;;  %v3535_v44 = vadd.f32 %v5174_v58, %v3224_v14  ;;  %v2946_v11 = vadd.f32 %v7262_v20, %v7174_v51  ;;  %v3256_v20 = vadd.f32 %v7244_v53, %v2953_v38  ;;  %v8105_v12 = vld [vmem:[#allocation8_spill] sm:$0xff]  ;;  %v8106_v14 = vld [vmem:[#allocation39_spill] sm:$0xff]  ;;  %v8109_v38 = vld [vmem:[#allocation41_spill] sm:$0xff] }
 0x2d9   :  { %v3528_v8 = vpop.f32.mrf.mxu0  ;;  %v3811_v47 = vpop.f32.mrf.mxu1  ;;  %v3009_v57 = vadd.f32 %v8105_v12, %v8104_v1  ;;  %v3304_v58 = vadd.f32 %v8106_v14, %v2995_v30  ;;  %v8121_v30 = vld [vmem:[#allocation45_spill] sm:$0xff]  ;;  %v8126_v1 = vld [vmem:[#allocation48_spill] sm:$0xff] }
 0x2da   :  { %3946 = vst.msk [vmem:[%s7562_s3 + $0x20] sm:$0xff] %vm3941_vm1, %v3776_v60  ;;  %v3794_v17 = vadd.f32 %v5226_v42, %v3535_v44  ;;  %v3529_v23 = vadd.f32 %v3528_v8, %v3216_v10  ;;  %v3248_v22 = vadd.f32 %v7248_v41, %v2946_v11  ;;  %v3264_v41 = vadd.f32 %v7256_v35, %v2960_v45  ;;  %v8103_v35 = vld [vmem:[#allocation6_spill] sm:$0xff]  ;;  %v8107_v60 = vld [vmem:[#allocation36_spill] sm:$0xff]  ;;  %v8108_v44 = vld [vmem:[#allocation49_spill] sm:$0xff] }
 0x2db   :  { %v5177_v3 = vpop.f32.mrf.mxu0  ;;  %v5235_v55 = vpop.f32.mrf.mxu1  ;;  %v3280_v7 = vadd.f32 %v8103_v35, %v2974_v50  ;;  %v3002_v10 = vadd.f32 %v8108_v44, %v8107_v60  ;;  %v8115_v45 = vld [vmem:[#allocation7_spill] sm:$0xff] }
 0x2dc   :  { %3949 = vst.msk [vmem:[%s7562_s3 + $0x38] sm:$0xff] %vm3941_vm1, %v3794_v17  ;;  %v3788_v36 = vadd.f32 %v3787_v63, %v3529_v23  ;;  %v3547_v4 = vadd.f32 %v5177_v3, %v3240_v43  ;;  %v3296_v17 = vadd.f32 %v8109_v38, %v2988_v15  ;;  %v8110_v3 = vld [vmem:[#allocation38_spill] sm:$0xff] }
 0x2dd   :  { %v3540_v2 = vpop.f32.mrf.mxu0  ;;  %v3823_v39 = vpop.f32.mrf.mxu1 }
 0x2de   :  { %3948 = vst.msk [vmem:[%s7562_s3 + $0x30] sm:$0xff] %vm3941_vm1, %v3788_v36  ;;  %v3806_v51 = vadd.f32 %v5229_v16, %v3547_v4  ;;  %v3541_v49 = vadd.f32 %v3540_v2, %v3232_v6  ;;  %v8112_v6 = vld [vmem:[#allocation42_spill] sm:$0xff] }
 0x2df   :  { %v5180_v42 = vpop.f32.mrf.mxu0  ;;  %v5238_v27 = vpop.f32.mrf.mxu1  ;;  %v3320_v2 = vadd.f32 %v8112_v6, %v3009_v57 }
 0x2e0   :  { %3951 = vst.msk [vmem:[%s7562_s3 + $0x48] sm:$0xff] %vm3941_vm1, %v3806_v51  ;;  %v3800_v21 = vadd.f32 %v3799_v19, %v3541_v49  ;;  %v3559_v54 = vadd.f32 %v5180_v42, %v3256_v20  ;;  %v8113_v51 = vld [vmem:[#allocation40_spill] sm:$0xff]  ;;  %v8114_v49 = vld [vmem:[#allocation46_spill] sm:$0xff] }
 0x2e1   :  { %v3552_v29 = vpop.f32.mrf.mxu0  ;;  %v3835_v48 = vpop.f32.mrf.mxu1  ;;  %v3016_v20 = vadd.f32 %v8114_v49, %v8113_v51 }
 0x2e2   :  { %3950 = vst.msk [vmem:[%s7562_s3 + $0x40] sm:$0xff] %vm3941_vm1, %v3800_v21  ;;  %v3818_v56 = vadd.f32 %v5232_v5, %v3559_v54  ;;  %v3553_v53 = vadd.f32 %v3552_v29, %v3248_v22  ;;  %v3312_v21 = vadd.f32 %v8115_v45, %v3002_v10  ;;  %v8116_v29 = vld [vmem:[#allocation29_spill] sm:$0xff] }
 0x2e3   :  { %v5183_v63 = vpop.f32.mrf.mxu0  ;;  %v5241_v37 = vpop.f32.mrf.mxu1 }
 0x2e4   :  { %3953 = vst.msk [vmem:[%s7562_s3 + $0x58] sm:$0xff] %vm3941_vm1, %v3818_v56  ;;  %v3812_v59 = vadd.f32 %v3811_v47, %v3553_v53  ;;  %v3571_v13 = vadd.f32 %v5183_v63, %v3272_v9  ;;  %v8118_v9 = vld [vmem:[#allocation43_spill] sm:$0xff] }
 0x2e5   :  { %v3564_v28 = vpop.f32.mrf.mxu0  ;;  %v3847_v46 = vpop.f32.mrf.mxu1 }
 0x2e6   :  { %3952 = vst.msk [vmem:[%s7562_s3 + $0x50] sm:$0xff] %vm3941_vm1, %v3812_v59  ;;  %v3830_v33 = vadd.f32 %v5235_v55, %v3571_v13  ;;  %v3565_v62 = vadd.f32 %v3564_v28, %v3264_v41  ;;  %v8111_v55 = vld [vmem:[#allocation51_spill] sm:$0xff]  ;;  %v8119_v59 = vld [vmem:[#allocation13_spill] sm:$0xff] }
 0x2e7   :  { %v5186_v16 = vpop.f32.mrf.mxu0  ;;  %v5244_v32 = vpop.f32.mrf.mxu1  ;;  %v3023_v11 = vadd.f32 %v8111_v55, %v8110_v3  ;;  %v8120_v13 = vld [vmem:[#allocation19_spill] sm:$0xff] }
 0x2e8   :  { %3955 = vst.msk [vmem:[%s7562_s3 + $0x68] sm:$0xff] %vm3941_vm1, %v3830_v33  ;;  %v3824_v61 = vadd.f32 %v3823_v39, %v3565_v62  ;;  %v3583_v40 = vadd.f32 %v5186_v16, %v3288_v52  ;;  %v3030_v41 = vadd.f32 %v8120_v13, %v8119_v59  ;;  %v3328_v33 = vadd.f32 %v8121_v30, %v3016_v20  ;;  %v8122_v16 = vld [vmem:[#allocation15_spill] sm:$0xff]  ;;  %v8136_v20 = vld [vmem:[#allocation28_spill] sm:$0xff]  ;;  %v8143_v30 = vld [vmem:[#allocation37_spill] sm:$0xff] }
 0x2e9   :  { %v3576_v25 = vpop.f32.mrf.mxu0  ;;  %v3859_v19 = vpop.f32.mrf.mxu1  ;;  %v3336_v63 = vadd.f32 %v8118_v9, %v3023_v11  ;;  %v8140_v9 = vld [vmem:[#allocation35_spill] sm:$0xff] }
 0x2ea   :  { %3954 = vst.msk [vmem:[%s7562_s3 + $0x60] sm:$0xff] %vm3941_vm1, %v3824_v61  ;;  %v3842_v31 = vadd.f32 %v5238_v27, %v3583_v40  ;;  %v3577_v26 = vadd.f32 %v3576_v25, %v3280_v7  ;;  %v8124_v40 = vld [vmem:[#allocation47_spill] sm:$0xff] }
 0x2eb   :  { %v5189_v5 = vpop.f32.mrf.mxu0  ;;  %v5247_v0 = vpop.f32.mrf.mxu1  ;;  %v8142_v13 = vld [vmem:[#allocation23_spill] sm:$0xff] }
 0x2ec   :  { %3957 = vst.msk [vmem:[%s7562_s3 + $0x78] sm:$0xff] %vm3941_vm1, %v3842_v31  ;;  %v3836_v8 = vadd.f32 %v3835_v48, %v3577_v26  ;;  %v3595_v47 = vadd.f32 %v5189_v5, %v3304_v58  ;;  %v8117_v48 = vld [vmem:[#allocation18_spill] sm:$0xff]  ;;  %v8127_v26 = vld [vmem:[#allocation9_spill] sm:$0xff]  ;;  %v8128_v5 = vld [vmem:[#allocation24_spill] sm:$0xff] }
 0x2ed   :  { %v3588_v23 = vpop.f32.mrf.mxu0  ;;  %v3871_v43 = vpop.f32.mrf.mxu1  ;;  %v3037_v34 = vadd.f32 %v8117_v48, %v8116_v29  ;;  %v3344_v14 = vadd.f32 %v8127_v26, %v3030_v41 }
 0x2ee   :  { %3956 = vst.msk [vmem:[%s7562_s3 + $0x70] sm:$0xff] %vm3941_vm1, %v3836_v8  ;;  %v3854_v36 = vadd.f32 %v5241_v37, %v3595_v47  ;;  %v3589_v4 = vadd.f32 %v3588_v23, %v3296_v17  ;;  %v8130_v8 = vld [vmem:[#allocation55_spill] sm:$0xff]  ;;  %v8131_v23 = vld [vmem:[#allocation34_spill] sm:$0xff] }
 0x2ef   :  { %v5192_v39 = vpop.f32.mrf.mxu0  ;;  %v5250_v18 = vpop.f32.mrf.mxu1  ;;  %v3352_v35 = vadd.f32 %v8124_v40, %v3037_v34  ;;  %v8139_v34 = vld [vmem:[#allocation32_spill] sm:$0xff] }
 0x2f0   :  { %3959 = vst.msk [vmem:[%s7562_s3 + $0x88] sm:$0xff] %vm3941_vm1, %v3854_v36  ;;  %v3848_v42 = vadd.f32 %v3847_v46, %v3589_v4  ;;  %v3607_v27 = vadd.f32 %v5192_v39, %v3320_v2  ;;  %v8133_v36 = vld [vmem:[#allocation16_spill] sm:$0xff]  ;;  %v8134_v2 = vld [vmem:[#allocation30_spill] sm:$0xff] }
 0x2f1   :  { %v3600_v54 = vpop.f32.mrf.mxu0  ;;  %v3883_v22 = vpop.f32.mrf.mxu1  ;;  %v8135_v39 = vld [vmem:[#allocation14_spill] sm:$0xff] }
 0x2f2   :  { %3958 = vst.msk [vmem:[%s7562_s3 + $0x80] sm:$0xff] %vm3941_vm1, %v3848_v42  ;;  %v3866_v56 = vadd.f32 %v5244_v32, %v3607_v27  ;;  %v3601_v53 = vadd.f32 %v3600_v54, %v3312_v21  ;;  %v8123_v32 = vld [vmem:[#allocation21_spill] sm:$0xff]  ;;  %v8138_v54 = vld [vmem:[#allocation52_spill] sm:$0xff] }
 0x2f3   :  { %v5195_v37 = vpop.f32.mrf.mxu0  ;;  %v5253_v50 = vpop.f32.mrf.mxu1  ;;  %v3051_v24 = vadd.f32 %v8123_v32, %v8122_v16  ;;  %v8137_v21 = vld [vmem:[#allocation33_spill] sm:$0xff]  ;;  %v8145_v32 = vld [vmem:[#allocation10_spill] sm:$0xff] }
 0x2f4   :  { %3961 = vst.msk [vmem:[%s7562_s3 + $0x98] sm:$0xff] %vm3941_vm1, %v3866_v56  ;;  %v3860_v28 = vadd.f32 %v3859_v19, %v3601_v53  ;;  %v3619_v46 = vadd.f32 %v5195_v37, %v3336_v63  ;;  %v8125_v19 = vld [vmem:[#allocation22_spill] sm:$0xff]  ;;  %v8141_v63 = vld [vmem:[#allocation27_spill] sm:$0xff] }
 0x2f5   :  { %v3612_v62 = vpop.f32.mrf.mxu0  ;;  %v3895_v52 = vpop.f32.mrf.mxu1  ;;  %v3044_v12 = vadd.f32 %v8126_v1, %v8125_v19  ;;  %v3368_v47 = vadd.f32 %v8130_v8, %v3051_v24  ;;  %v3093_v37 = vadd.f32 %v8141_v63, %v8140_v9 }
 0x2f6   :  { %3960 = vst.msk [vmem:[%s7562_s3 + $0x90] sm:$0xff] %vm3941_vm1, %v3860_v28  ;;  %v3878_v15 = vadd.f32 %v5247_v0, %v3619_v46  ;;  %v3613_v61 = vadd.f32 %v3612_v62, %v3328_v33  ;;  %v8129_v0 = vld [vmem:[#allocation11_spill] sm:$0xff]  ;;  %v8144_v33 = vld [vmem:[#allocation53_spill] sm:$0xff] }
 0x2f7   :  { %v5198_v7 = vpop.f32.mrf.mxu0  ;;  %v5256_v25 = vpop.f32.mrf.mxu1  ;;  %v3065_v60 = vadd.f32 %v8129_v0, %v8128_v5  ;;  %v3360_v4 = vadd.f32 %v8133_v36, %v3044_v12  ;;  %v3086_v62 = vadd.f32 %v8144_v33, %v8143_v30 }
 0x2f8   :  { %3963 = vst.msk [vmem:[%s7562_s3 + $0xa8] sm:$0xff] %vm3941_vm1, %v3878_v15  ;;  %v3872_v57 = vadd.f32 %v3871_v43, %v3613_v61  ;;  %v3631_v31 = vadd.f32 %v5198_v7, %v3352_v35  ;;  %v8132_v43 = vld [vmem:[#allocation12_spill] sm:$0xff]  ;;  %v8146_v35 = vld [vmem:[#allocation50_spill] sm:$0xff] }
 0x2f9   :  { %v3624_v58 = vpop.f32.mrf.mxu0  ;;  %v3907_v38 = vpop.f32.mrf.mxu1  ;;  %v3058_v3 = vadd.f32 %v8132_v43, %v8131_v23  ;;  %v3384_v42 = vadd.f32 %v8136_v20, %v3065_v60  ;;  %v3416_v7 = vadd.f32 %v8146_v35, %v3093_v37 }
 0x2fa   :  { %3962 = vst.msk [vmem:[%s7562_s3 + $0xa0] sm:$0xff] %vm3941_vm1, %v3872_v57  ;;  %v3890_v44 = vadd.f32 %v5250_v18, %v3631_v31  ;;  %v3625_v10 = vadd.f32 %v3624_v58, %v3344_v14  ;;  %v3079_v18 = vadd.f32 %v8135_v39, %v8134_v2  ;;  %v8147_v57 = vld [vmem:[#allocation26_spill] sm:$0xff] }
 0x2fb   :  { %v5201_v17 = vpop.f32.mrf.mxu0  ;;  %v5259_v27 = vpop.f32.mrf.mxu1  ;;  %v3376_v56 = vadd.f32 %v8139_v34, %v3058_v3  ;;  %v3408_v31 = vadd.f32 %v8147_v57, %v3086_v62 }
 0x2fc   :  { %3965 = vst.msk [vmem:[%s7562_s3 + $0xb8] sm:$0xff] %vm3941_vm1, %v3890_v44  ;;  %v3884_v55 = vadd.f32 %v3883_v22, %v3625_v10  ;;  %v3643_v11 = vadd.f32 %v5201_v17, %v3368_v47  ;;  %v3072_v22 = vadd.f32 %v8138_v54, %v8137_v21  ;;  %v3400_v41 = vadd.f32 %v8142_v13, %v3079_v18 }
 0x2fd   :  { %v3636_v6 = vpop.f32.mrf.mxu0  ;;  %v3919_v28 = vpop.f32.mrf.mxu1 }
 0x2fe   :  { %3964 = vst.msk [vmem:[%s7562_s3 + $0xb0] sm:$0xff] %vm3941_vm1, %v3884_v55  ;;  %v3902_v51 = vadd.f32 %v5253_v50, %v3643_v11  ;;  %v3637_v49 = vadd.f32 %v3636_v6, %v3360_v4  ;;  %v3392_v24 = vadd.f32 %v8145_v32, %v3072_v22 }
 0x2ff   :  { %v5204_v45 = vpop.f32.mrf.mxu0 }
 0x300   :  { %3967 = vst.msk [vmem:[%s7562_s3 + $0xc8] sm:$0xff] %vm3941_vm1, %v3902_v51  ;;  %v3896_v29 = vadd.f32 %v3895_v52, %v3637_v49  ;;  %v3655_v48 = vadd.f32 %v5204_v45, %v3384_v42 }
 0x301   :  { %v3648_v53 = vpop.f32.mrf.mxu0 }
 0x302   :  { %3966 = vst.msk [vmem:[%s7562_s3 + $0xc0] sm:$0xff] %vm3941_vm1, %v3896_v29  ;;  %v3914_v50 = vadd.f32 %v5256_v25, %v3655_v48  ;;  %v3649_v59 = vadd.f32 %v3648_v53, %v3376_v56  ;;  %v5262_v25 = vpop.f32.mrf.mxu1 }
 0x303   :  { %v5207_v46 = vpop.f32.mrf.mxu0 }
 0x304   :  { %3969 = vst.msk [vmem:[%s7562_s3 + $0xd8] sm:$0xff] %vm3941_vm1, %v3914_v50  ;;  %v3908_v52 = vadd.f32 %v3907_v38, %v3649_v59  ;;  %v3667_v16 = vadd.f32 %v5207_v46, %v3400_v41  ;;  %v3931_v5 = vpop.f32.mrf.mxu1 }
 0x305   :  { %v3660_v15 = vpop.f32.mrf.mxu0 }
 0x306   :  { %3968 = vst.msk [vmem:[%s7562_s3 + $0xd0] sm:$0xff] %vm3941_vm1, %v3908_v52  ;;  %v3926_v61 = vadd.f32 %v5259_v27, %v3667_v16  ;;  %v3661_v40 = vadd.f32 %v3660_v15, %v3392_v24 }
 0x307   :  { %v5210_v19 = vpop.f32.mrf.mxu0 }
 0x308   :  { %3971 = vst.msk [vmem:[%s7562_s3 + $0xe8] sm:$0xff] %vm3941_vm1, %v3926_v61  ;;  %v3920_v1 = vadd.f32 %v3919_v28, %v3661_v40  ;;  %v3679_v12 = vadd.f32 %v5210_v19, %v3416_v7 }
 0x309   :  { %v3672_v26 = vpop.f32.mrf.mxu0 }
 0x30a   :  { %3970 = vst.msk [vmem:[%s7562_s3 + $0xe0] sm:$0xff] %vm3941_vm1, %v3920_v1  ;;  %v3938_v14 = vadd.f32 %v5262_v25, %v3679_v12  ;;  %v3673_v58 = vadd.f32 %v3672_v26, %v3408_v31 }
 0x30c   :  { %3973 = vst.msk [vmem:[%s7562_s3 + $0xf8] sm:$0xff] %vm3941_vm1, %v3938_v14  ;;  %v3932_v0 = vadd.f32 %v3931_v5, %v3673_v58 }
 0x30e   :  { %3972 = vst.msk [vmem:[%s7562_s3 + $0xf0] sm:$0xff] %vm3941_vm1, %v3932_v0 }
 0x30f   :  { %3978 = vsyncpa [#allocation3], 1 }

</bundles_post_ra>
